<compile_context>
chip_gen: v7x
topology: tpu7x:2x2x1
jax: 0.10.0
libtpu: 0.0.40
codegen_flags: <defaults>
</compile_context>

<pallas_src>
import jax
import jax.numpy as jnp
from jax.experimental import pallas as pl
from jax.experimental.pallas import tpu as pltpu

_COLS = 1024              # lane dim: multiple of 128 -> unmasked vld/vst
_MAX_BLOCK_ROWS = 1024    # 1024 x 1024 f32 = 4 MiB per block
_MIN_GRID_STEPS = 2       # keep >= 2 grid steps so v7x's two TCs both get work
_TILE_ELEMS = 8 * _COLS   # one (8, 1024) f32 tile = 8192 elements


def regression_kernel(w_ref, b_ref, x_ref, o_ref):
    # w_ref, b_ref: (1,) f32 scalars in SMEM; x_ref/o_ref: (block_rows, 1024) VMEM tiles.
    o_ref[...] = w_ref[0] * x_ref[...] + b_ref[0]


def _choose_block_rows(rows):
    # Largest block (amortizes per-step overhead) that still leaves at least
    # _MIN_GRID_STEPS grid steps; always a multiple of 8 sublanes.
    target = -(-rows // _MIN_GRID_STEPS)   # cdiv
    target = -(-target // 8) * 8           # round up to 8 sublanes
    return int(max(8, min(_MAX_BLOCK_ROWS, target)))


def _pallas_wxb_2d(x2d, w_arr, b_arr):
    """w * x + b on a (rows, 1024) f32 slab via a tiled, pipelined Pallas kernel."""
    rows, cols = x2d.shape
    block_rows = _choose_block_rows(rows)
    return pl.pallas_call(
        regression_kernel,
        out_shape=jax.ShapeDtypeStruct((rows, cols), jnp.float32),
        grid=(pl.cdiv(rows, block_rows),),   # ragged last block is masked by Pallas
        in_specs=[
            pl.BlockSpec(memory_space=pltpu.SMEM),            # w scalar
            pl.BlockSpec(memory_space=pltpu.SMEM),            # b scalar
            pl.BlockSpec((block_rows, cols), lambda i: (i, 0)),
        ],
        out_specs=pl.BlockSpec((block_rows, cols), lambda i: (i, 0)),
        compiler_params=pltpu.CompilerParams(
            dimension_semantics=("parallel",),
            # 4 double-buffered 4 MiB blocks = 16 MiB + headroom; under v7x's
            # 64 MiB/TC, above v5e's 16 MiB default scoped limit.
            vmem_limit_bytes=48 * 1024 * 1024,
        ),
    )(w_arr, b_arr, x2d)


@jax.jit
def _regression_forward(x, w_arr, b_arr):
    """w * x + b: bulk streamed through Pallas with zero padding / zero extra copies."""
    orig_shape = x.shape
    x_flat = x.reshape(-1)                       # contiguous flatten: free
    n = x_flat.shape[0]

    # Largest prefix that is a whole number of (8, 1024) tiles.
    rows_main = (n // _COLS) // 8 * 8
    main = rows_main * _COLS

    if main == n:
        # Aligned fast path (e.g. 1024x1024): pure zero-copy reshape in/out.
        y = _pallas_wxb_2d(x_flat.reshape(rows_main, _COLS), w_arr, b_arr).reshape(-1)
    else:
        # Ragged: Pallas on the aligned prefix, plain JAX on the <8192-elem tail.
        parts = []
        if rows_main > 0:
            parts.append(
                _pallas_wxb_2d(x_flat[:main].reshape(rows_main, _COLS),
                               w_arr, b_arr).reshape(-1))
        parts.append(w_arr[0] * x_flat[main:] + b_arr[0])
        y = jnp.concatenate(parts)
    return y.reshape(orig_shape)


def regression_model(x, w, b, *, min_pallas_elems=(_MAX_BLOCK_ROWS * _COLS) // 2):
    """Forward pass of RegressionModel: w * x + b (matches PyTorch semantics)."""
    x = jnp.asarray(x, dtype=jnp.float32)
    if x.size < min_pallas_elems:
        # Below ~one block the fixed launch/staging cost dwarfs the VPU work;
        # the XLA-fused elementwise op is strictly faster.
        return jnp.float32(w) * x + jnp.float32(b)
    w_arr = jnp.asarray([w], dtype=jnp.float32)
    b_arr = jnp.asarray([b], dtype=jnp.float32)
    return _regression_forward(x, w_arr, b_arr)


if __name__ == "__main__":
    # Deterministic parameters from the module definition: w = 1.0, b = 1.0
    w = 1.0
    b = 1.0

    # The module's canonical input (9 elements) -> fast plain-JAX fallback.
    x_small = jnp.array([1, 5, 10, 10, 25, 50, 70, 75, 100], dtype=jnp.float32)

    key = jax.random.PRNGKey(0)
    k1, k2 = jax.random.split(key)
    # Aligned input: zero-copy Pallas path, block_rows=512, grid=(2,).
    x_aligned = jax.random.normal(k1, (1024, 1024), dtype=jnp.float32)
    # Ragged input: Pallas on the aligned prefix + plain-JAX tail.
    x_ragged = jax.random.normal(k2, (513, 1027), dtype=jnp.float32)

    y_small = jax.block_until_ready(regression_model(x_small, w, b))
    y_aligned = jax.block_until_ready(regression_model(x_aligned, w, b))
    y_ragged = jax.block_until_ready(regression_model(x_ragged, w, b))

    # Reference checks (pure JAX).
    ref_small = w * x_small + b
    ref_aligned = w * x_aligned + b
    ref_ragged = w * x_ragged + b

    assert y_small.shape == x_small.shape
    assert y_aligned.shape == x_aligned.shape
    assert y_ragged.shape == x_ragged.shape
    assert jnp.allclose(y_small, ref_small, atol=1e-6)
    assert jnp.allclose(y_aligned, ref_aligned, atol=1e-6)
    assert jnp.allclose(y_ragged, ref_ragged, atol=1e-6)

    print("KERNEL_OK")
</pallas_src>

<mosaic_0001>
module attributes {stable_mosaic.version = 11 : i64} {
  func.func @regression_kernel(%arg0: i32, %arg1: memref<1xf32, #tpu.memory_space<smem>>, %arg2: memref<1xf32, #tpu.memory_space<smem>>, %arg3: memref<512x1024xf32, #tpu.memory_space<vmem>>, %arg4: memref<512x1024xf32, #tpu.memory_space<vmem>>) attributes {dimension_semantics = [#tpu.dimension_semantics<parallel>], iteration_bounds = array<i64: 2>, scalar_prefetch = 0 : i64, scratch_operands = 0 : i64, tpu.core_type = #tpu.core_type<tc>, window_params = [{transform_indices = @transform_0, window_bounds = array<i64: 1>}, {transform_indices = @transform_1, window_bounds = array<i64: 1>}, {transform_indices = @transform_2, window_bounds = array<i64: 512, 1024>}, {transform_indices = @transform_3, window_bounds = array<i64: 512, 1024>}]} {
    %c0 = arith.constant 0 : index
    %0 = memref.load %arg1[%c0] : memref<1xf32, #tpu.memory_space<smem>>
    %c0_0 = arith.constant 0 : index
    %c0_1 = arith.constant 0 : index
    %1 = vector.load %arg3[%c0_0, %c0_1] : memref<512x1024xf32, #tpu.memory_space<vmem>>, vector<512x1024xf32>
    %2 = vector.broadcast %0 : f32 to vector<512x1024xf32>
    %3 = arith.mulf %2, %1 : vector<512x1024xf32>
    %c0_2 = arith.constant 0 : index
    %4 = memref.load %arg2[%c0_2] : memref<1xf32, #tpu.memory_space<smem>>
    %5 = vector.broadcast %4 : f32 to vector<512x1024xf32>
    %6 = arith.addf %3, %5 : vector<512x1024xf32>
    %c0_3 = arith.constant 0 : index
    %c0_4 = arith.constant 0 : index
    %7 = vector.load %arg4[%c0_3, %c0_4] : memref<512x1024xf32, #tpu.memory_space<vmem>>, vector<512x1024xf32>
    tpu.vector_store %arg4[%c0_3, %c0_4], %6 {strides = array<i32>} : memref<512x1024xf32, #tpu.memory_space<vmem>>, vector<512x1024xf32>,
    return
  }
  func.func @transform_0(%arg0: i32) -> i32 {
    %c0_i32 = arith.constant 0 : i32
    %c0_i32_0 = arith.constant 0 : i32
    return %c0_i32 : i32
  }
  func.func @transform_1(%arg0: i32) -> i32 {
    %c0_i32 = arith.constant 0 : i32
    %c0_i32_0 = arith.constant 0 : i32
    return %c0_i32 : i32
  }
  func.func @transform_2(%arg0: i32) -> (i32, i32) {
    %c0_i32 = arith.constant 0 : i32
    %c0_i32_0 = arith.constant 0 : i32
    return %arg0, %c0_i32 : i32, i32
  }
  func.func @transform_3(%arg0: i32) -> (i32, i32) {
    %c0_i32 = arith.constant 0 : i32
    %c0_i32_0 = arith.constant 0 : i32
    return %arg0, %c0_i32 : i32, i32
  }
}

</mosaic_0001>

<bundles_post_ra>
// kernel: _regression_forward.1
= control target key start
LH: loop header
LB: loop body
LE: loop exit
PB: predicated region body
PF: predicated region fallthrough
CT: control target
= control target key end

     0   :  { %s4757_s0 = inlined_call_operand.<no memory space> [shape: f32[1], index: 0, kind: input, shape index: {}]   ;;  %s4758_s1 = inlined_call_operand.<no memory space> [shape: f32[1], index: 1, kind: input, shape index: {}]   ;;  %s4759_s2 = inlined_call_operand.hbm [shape: f32[1024,1024], index: 2, kind: input, shape index: {}]   ;;  %s4760_s3 = inlined_call_operand.hbm [shape: f32[1024,1024], index: 3, kind: output, shape index: {}]  }
   0x1   :  { %8 = sst [smem:[#allocation2]] %s4757_s0 }
   0x2   :  { %9 = sst [smem:[#allocation3]] %s4758_s1 }
   0x3   :  { %10 = vsyncpa [#allocation5], 0 }
   0x4   :  { %12 = vsyncpa [#allocation5 + $0x1], 0 }
   0x5   :  { %13 = vsyncpa [#allocation6], 0 }
   0x6   :  { %15 = vsyncpa [#allocation6 + $0x1], 0  ;;  %s2534_s16 = smov 0   ;;  %s2536_s17 = smov 0  }
   0x7   :  { %s2538_s18 = smov 0   ;;  %s2540_s19 = smov 0  }
   0x8 LB: > { %s2555_s0 = sadd.s32 4294967295, %s2500_s19   ;;  %s2334_s1 = sadd.s32 4294967294, %s2500_s19   ;;  %s2500_s19 = sphi %s2540_s19, %s4773_s19   ;;  %s2496_s18 = sphi %s2538_s18, %s4772_s18   ;;  %s2492_s17 = sphi %s2536_s17, %s4771_s17   ;;  %s2488_s16 = sphi %s2534_s16, %s4770_s16  }
   0x9   : > { %s2559_s20 = sadd.s32 1, %s2500_s19   ;;  %s70_s21 = sadd.s32 1, %s2496_s18 }
   0xa   : > { %s67_s22 = ssub.s32 %s2500_s19, %s2559_s20  ;;  %p77_p0 = scmp.ne.s32.totalorder %s2496_s18, %s2492_s17 }
   0xb   : > { %p68_p1 = scmp.eq.s32.totalorder %s67_s22, 0  ;;  %p78_p2 = scmp.eq.s32.totalorder %s2500_s19, 0 }
   0xc   : > { %p83_p3 = scmp.ne.s32.totalorder %s2492_s17, %s2488_s16  ;;  %p84_p4 = scmp.eq.s32.totalorder %s2555_s0, 0 }
   0xd   : > { %s2571_s23 = scalar_select %p68_p1, %s2496_s18, %s70_s21  }
   0xe   : > { %p2573_p5 = por %p78_p2, %p77_p0  ;;  %p2577_p6 = por %p84_p4, %p83_p3 }
   0xf   : > { %p107_p7 = scmp.eq.s32.totalorder %s2555_s0, 1  ;;  %p113_p8 = scmp.eq.s32.totalorder %s2334_s1, 1 }
  0x10   : > { %p2366_p10 = scmp.lt.s32.totalorder %s2500_s19, 2  ;;  %s139_s28 = sand.u32 1, %s2496_s18  }
  0x11   : > { %p2584_p11 = por %p107_p7, %p77_p0  ;;  %p2588_p12 = por %p113_p8, %p83_p3 }
  0x12   : > { %s2351_s29 = sshll.u32 %s2500_s19, 16  ;;  %s2337_s30 = sshll.u32 %s139_s28, 12 }
  0x13   : > { %s4764_s26 = scalar_select %p2584_p11, 1, 0 }
  0x14   : > { %s4765_s27 = scalar_select %p2588_p12, 1, 0 }
  0x15   : > { %s2597_s6 = scalar_lea.hbm %s4759_s2, %s2351_s29  ;;  %s143_s7 = scalar_lea.vmem [#allocation4], %s2337_s30 }
  0x16   : > { %s151_s8 = sshll.u32 %s143_s7, 4  ;;  %p2601_p13 = pnand %p2366_p10, %p2573_p5  ;;  %s2605_s8 = int_to_ptr.vmem [resolvable:$true] %s151_s8 }
  0x17   : > { %s2607_s10 = scalar_lea.sflag [#allocation5], %s139_s28  ;;  %s2404_s11 = scalar_lea.hbm %s2597_s6, 65536 }
  0x18   : > { %p2405_p0 = scmp.ne.s32.totalorder %s2597_s6, %s2404_s11  ;;  %p2406_p1 = pneg %p2601_p13 }
  0x19   : > { %s2409_s14 = scalar_lea.hbm %s4759_s2, 131072  ;;  %p2410_p4 = scmp.lt.u32.totalorder %s2597_s6, %s4759_s2 }
  0x1a   : > { %p2407_p2 = pnand %p2406_p1, %p2405_p0  ;;  %p2411_p5 = scmp.lt.u32.totalorder %s2409_s14, %s2404_s11 }
  0x1b   : > { %p2413_p8 = scmp.lt.u32.totalorder %s2404_s11, %s2597_s6 }
  0x1c   : > { %p2408_p3 = pneg %p2407_p2  ;;  %p2412_p7 = por %p2411_p5, %p2410_p4 }
  0x1e   : > { %p2414_p10 = por %p2413_p8, %p2412_p7 }
  0x20   : > { %p2415_p9 = pnand %p2414_p10, %p2408_p3 }
  0x22   : > { %2418 = shalt.err (!%p2415_p9)
}
  0x23   : > { %s2419_s21 = scalar_lea.vmem %s2605_s8, 65536  ;;  %s2502_s22 = smov [#allocation4]  }
  0x24   : > { %p2420_p0 = scmp.ne.s32.totalorder %s2605_s8, %s2419_s21  ;;  %s2424_s24 = sshll.u32 %s2502_s22, 4  ;;  %s2425_s24 = int_to_ptr.vmem [resolvable:$false] %s2424_s24 }
  0x25   : > { %s2426_s28 = scalar_lea.vmem %s2425_s24, 131072  ;;  %p2427_p11 = scmp.lt.s32.totalorder %s2605_s8, %s2425_s24 }
  0x26   : > { %p2422_p2 = pnand %p2420_p0, %p2406_p1  ;;  %p2428_p4 = scmp.lt.s32.totalorder %s2426_s28, %s2419_s21 }
  0x28   : > { %p2423_p12 = pneg %p2422_p2  ;;  %p2429_p5 = por %p2428_p4, %p2427_p11 }
  0x2a   : > { %p2430_p7 = pnand %p2429_p5, %p2423_p12 }
  0x2c   : > { %2433 = shalt.err (!%p2430_p7)
}
  0x2d   : > { %s2503_s29 = smov 1024   ;;  %s2504_s30 = smov 64  }
  0x2e   : > { %2361 = dma.hbm_to_vmem [thread:$0]  (!%p2601_p13), %s2597_s6, 65536, %s2605_s8, %s2607_s10, %s2503_s29, %s2503_s29, %s2504_s30  }
  0x2f   : > { %p2341_p9 = scmp.ge.s32.totalorder %s2500_s19, 1  ;;  %p159_p1 = scmp.lt.s32.totalorder %s2500_s19, 3 }
  0x31   : > { %p160_p3 = pnand %p2341_p9, %p159_p1 }
  0x32   : > { %s2638_s4 = sand.u32 (!%p160_p3), 1, %s2492_s17  }
  0x33   : > { %163 = sbr.rel (%p160_p3) target bundleno = 390 (0x186), region = 32  ;;  %s2342_s5 = sshll.u32 (!%p160_p3), %s2638_s4, 12 }
  0x34   : > { %s166_s7 = scalar_lea.sflag (!%p160_p3), [#allocation5], %s2638_s4  ;;  %s2644_s11 = scalar_lea.vmem (!%p160_p3), [#allocation4], %s2342_s5 }
  0x3a   : > { %2479 = dma.done.wait (%p2577_p6), %s166_s7, 65536  }
  0x3b   : > { %2481 = vsyncadd (%p2577_p6), %s166_s7, 4294901760  ;;  %s194_s6 = sld [smem:[#allocation2]]  ;;  %v195_v0 = vld [vmem:[%s2644_s11] sm:$0xff]  ;;  %v196_v3 = vld [vmem:[%s2644_s11 + $0x8] sm:$0xff]  ;;  %s2683_s25 = scalar_lea.vmem [#allocation7], %s2342_s5 }
  0x3c   : > { %s1220_s8 = sld [smem:[#allocation3]]  ;;  %v197_v6 = vld [vmem:[%s2644_s11 + $0x10] sm:$0xff]  ;;  %v198_v7 = vld [vmem:[%s2644_s11 + $0x18] sm:$0xff]  ;;  %v199_v8 = vld [vmem:[%s2644_s11 + $0x20] sm:$0xff]  ;;  %s2353_s9 = sshll.u32 %s2555_s0, 16 }
  0x3d   : > { %v200_v12 = vld [vmem:[%s2644_s11 + $0x28] sm:$0xff]  ;;  %v201_v13 = vld [vmem:[%s2644_s11 + $0x30] sm:$0xff]  ;;  %v202_v14 = vld [vmem:[%s2644_s11 + $0x38] sm:$0xff]  ;;  %s2261_s10 = sshll.u32 %s2683_s25, 4  ;;  %s4704_s13 = scalar_lea.hbm %s4760_s3, %s2353_s9  ;;  %s4706_s10 = int_to_ptr.vmem [resolvable:$true] %s2261_s10 }
  0x3e   : > { %v203_v19 = vld [vmem:[%s2644_s11 + $0x40] sm:$0xff]  ;;  %v204_v20 = vld [vmem:[%s2644_s11 + $0x48] sm:$0xff]  ;;  %v205_v21 = vld [vmem:[%s2644_s11 + $0x50] sm:$0xff]  ;;  %s2247_s14 = scalar_lea.sflag [#allocation6], %s2638_s4  ;;  %s2434_s15 = scalar_lea.vmem %s4706_s10, 65536 }
  0x3f   : > { %v206_v26 = vld [vmem:[%s2644_s11 + $0x58] sm:$0xff]  ;;  %v207_v27 = vld [vmem:[%s2644_s11 + $0x60] sm:$0xff]  ;;  %v208_v28 = vld [vmem:[%s2644_s11 + $0x68] sm:$0xff]  ;;  %p2435_p6 = scmp.ne.s32.totalorder %s4706_s10, %s2434_s15  ;;  %p4767_p11 = scmp.ne.s32.totalorder %s4764_s26, 0 }
  0x40   : > { %v209_v33 = vld [vmem:[%s2644_s11 + $0x70] sm:$0xff]  ;;  %v210_v34 = vld [vmem:[%s2644_s11 + $0x78] sm:$0xff]  ;;  %v211_v39 = vld [vmem:[%s2644_s11 + $0x80] sm:$0xff]  ;;  %s2505_s1 = smov [#allocation7]  }
  0x41   : > { %v2651_v1 = vstv %s194_s6  ;;  %v212_v40 = vld [vmem:[%s2644_s11 + $0x88] sm:$0xff]  ;;  %v213_v45 = vld [vmem:[%s2644_s11 + $0x90] sm:$0xff]  ;;  %v214_v46 = vld [vmem:[%s2644_s11 + $0x98] sm:$0xff]  ;;  %p2436_p12 = pnand %p2435_p6, %p4767_p11  ;;  %s2438_s21 = sshll.u32 %s2505_s1, 4  ;;  %s2439_s21 = int_to_ptr.vmem [resolvable:$false] %s2438_s21 }
  0x42   : > { %v2653_v2 = vstv %s1220_s8  ;;  %v708_v4 = vmul.f32 %v2651_v1, %v195_v0  ;;  %v709_v5 = vmul.f32 %v2651_v1, %v196_v3  ;;  %v710_v9 = vmul.f32 %v2651_v1, %v197_v6  ;;  %v215_v47 = vld [vmem:[%s2644_s11 + $0xa0] sm:$0xff]  ;;  %v216_v52 = vld [vmem:[%s2644_s11 + $0xa8] sm:$0xff]  ;;  %v217_v53 = vld [vmem:[%s2644_s11 + $0xb0] sm:$0xff]  ;;  %s2440_s22 = scalar_lea.vmem %s2439_s21, 131072  ;;  %p2441_p8 = scmp.lt.s32.totalorder %s4706_s10, %s2439_s21 }
  0x43   : > { %v711_v10 = vmul.f32 %v2651_v1, %v198_v7  ;;  %v712_v11 = vmul.f32 %v2651_v1, %v199_v8  ;;  %v713_v17 = vmul.f32 %v2651_v1, %v200_v12  ;;  %v714_v18 = vmul.f32 %v2651_v1, %v201_v13  ;;  %v218_v58 = vld [vmem:[%s2644_s11 + $0xb8] sm:$0xff]  ;;  %v219_v63 = vld [vmem:[%s2644_s11 + $0xc0] sm:$0xff]  ;;  %v220_v0 = vld [vmem:[%s2644_s11 + $0xc8] sm:$0xff]  ;;  %p2437_p13 = pneg %p2436_p12  ;;  %p2442_p10 = scmp.lt.s32.totalorder %s2440_s22, %s2434_s15 }
  0x44   : > { %v1222_v15 = vadd.f32 %v2653_v2, %v708_v4  ;;  %v1223_v16 = vadd.f32 %v2653_v2, %v709_v5  ;;  %v1224_v22 = vadd.f32 %v2653_v2, %v710_v9  ;;  %v715_v25 = vmul.f32 %v2651_v1, %v202_v14  ;;  %v221_v7 = vld [vmem:[%s2644_s11 + $0xd0] sm:$0xff]  ;;  %v222_v8 = vld [vmem:[%s2644_s11 + $0xd8] sm:$0xff]  ;;  %v223_v9 = vld [vmem:[%s2644_s11 + $0xe0] sm:$0xff] }
  0x45   : > { %v1225_v23 = vadd.f32 %v2653_v2, %v711_v10  ;;  %v1226_v24 = vadd.f32 %v2653_v2, %v712_v11  ;;  %v1227_v29 = vadd.f32 %v2653_v2, %v713_v17  ;;  %v1228_v30 = vadd.f32 %v2653_v2, %v714_v18  ;;  %v224_v14 = vld [vmem:[%s2644_s11 + $0xe8] sm:$0xff]  ;;  %p2443_p0 = por %p2442_p10, %p2441_p8 }
  0x46   : > { %1734 = vst [vmem:[%s2683_s25] sm:$0xff] %v1222_v15  ;;  %1735 = vst [vmem:[%s2683_s25 + $0x8] sm:$0xff] %v1223_v16  ;;  %v716_v31 = vmul.f32 %v2651_v1, %v203_v19  ;;  %v717_v32 = vmul.f32 %v2651_v1, %v204_v20  ;;  %v1229_v35 = vadd.f32 %v2653_v2, %v715_v25  ;;  %v225_v15 = vld [vmem:[%s2644_s11 + $0xf0] sm:$0xff]  ;;  %v226_v20 = vld [vmem:[%s2644_s11 + $0xf8] sm:$0xff] }
  0x47   : > { %1736 = vst [vmem:[%s2683_s25 + $0x10] sm:$0xff] %v1224_v22  ;;  %1737 = vst [vmem:[%s2683_s25 + $0x18] sm:$0xff] %v1225_v23  ;;  %v718_v36 = vmul.f32 %v2651_v1, %v205_v21  ;;  %v719_v37 = vmul.f32 %v2651_v1, %v206_v26  ;;  %v720_v38 = vmul.f32 %v2651_v1, %v207_v27  ;;  %v227_v25 = vld [vmem:[%s2644_s11 + $0x100] sm:$0xff]  ;;  %v228_v26 = vld [vmem:[%s2644_s11 + $0x108] sm:$0xff]  ;;  %p2444_p2 = pnand %p2443_p0, %p2437_p13 }
  0x48   : > { %1738 = vst [vmem:[%s2683_s25 + $0x20] sm:$0xff] %v1226_v24  ;;  %1739 = vst [vmem:[%s2683_s25 + $0x28] sm:$0xff] %v1227_v29  ;;  %v1230_v41 = vadd.f32 %v2653_v2, %v716_v31  ;;  %v1231_v42 = vadd.f32 %v2653_v2, %v717_v32  ;;  %v721_v43 = vmul.f32 %v2651_v1, %v208_v28  ;;  %v229_v31 = vld [vmem:[%s2644_s11 + $0x110] sm:$0xff]  ;;  %v230_v32 = vld [vmem:[%s2644_s11 + $0x118] sm:$0xff] }
  0x49   : > { %1740 = vst [vmem:[%s2683_s25 + $0x30] sm:$0xff] %v1228_v30  ;;  %v722_v44 = vmul.f32 %v2651_v1, %v209_v33  ;;  %1741 = vst [vmem:[%s2683_s25 + $0x38] sm:$0xff] %v1229_v35  ;;  %v1232_v48 = vadd.f32 %v2653_v2, %v718_v36  ;;  %v1233_v49 = vadd.f32 %v2653_v2, %v719_v37  ;;  %v231_v33 = vld [vmem:[%s2644_s11 + $0x120] sm:$0xff] }
  0x4a   : > { %v1234_v50 = vadd.f32 %v2653_v2, %v720_v38  ;;  %v723_v51 = vmul.f32 %v2651_v1, %v210_v34  ;;  %1742 = vst [vmem:[%s2683_s25 + $0x40] sm:$0xff] %v1230_v41  ;;  %1743 = vst [vmem:[%s2683_s25 + $0x48] sm:$0xff] %v1231_v42  ;;  %v1235_v54 = vadd.f32 %v2653_v2, %v721_v43  ;;  %v232_v38 = vld [vmem:[%s2644_s11 + $0x128] sm:$0xff] }
  0x4b   : > { %v1236_v55 = vadd.f32 %v2653_v2, %v722_v44  ;;  %v724_v56 = vmul.f32 %v2651_v1, %v211_v39  ;;  %v725_v57 = vmul.f32 %v2651_v1, %v212_v40  ;;  %1744 = vst [vmem:[%s2683_s25 + $0x50] sm:$0xff] %v1232_v48  ;;  %1745 = vst [vmem:[%s2683_s25 + $0x58] sm:$0xff] %v1233_v49  ;;  %v233_v39 = vld [vmem:[%s2644_s11 + $0x130] sm:$0xff]  ;;  %v234_v44 = vld [vmem:[%s2644_s11 + $0x138] sm:$0xff] }
  0x4c   : > { %1746 = vst [vmem:[%s2683_s25 + $0x60] sm:$0xff] %v1234_v50  ;;  %v1237_v59 = vadd.f32 %v2653_v2, %v723_v51  ;;  %v726_v60 = vmul.f32 %v2651_v1, %v213_v45  ;;  %v727_v61 = vmul.f32 %v2651_v1, %v214_v46  ;;  %v728_v62 = vmul.f32 %v2651_v1, %v215_v47  ;;  %v235_v49 = vld [vmem:[%s2644_s11 + $0x140] sm:$0xff]  ;;  %v236_v50 = vld [vmem:[%s2644_s11 + $0x148] sm:$0xff] }
  0x4d   : > { %1747 = vst [vmem:[%s2683_s25 + $0x68] sm:$0xff] %v1235_v54  ;;  %1748 = vst [vmem:[%s2683_s25 + $0x70] sm:$0xff] %v1236_v55  ;;  %v1238_v3 = vadd.f32 %v2653_v2, %v724_v56  ;;  %v1239_v4 = vadd.f32 %v2653_v2, %v725_v57  ;;  %v729_v5 = vmul.f32 %v2651_v1, %v216_v52  ;;  %v237_v55 = vld [vmem:[%s2644_s11 + $0x150] sm:$0xff]  ;;  %v238_v56 = vld [vmem:[%s2644_s11 + $0x158] sm:$0xff] }
  0x4e   : > { %v730_v6 = vmul.f32 %v2651_v1, %v217_v53  ;;  %1749 = vst [vmem:[%s2683_s25 + $0x78] sm:$0xff] %v1237_v59  ;;  %v1240_v10 = vadd.f32 %v2653_v2, %v726_v60  ;;  %v1241_v11 = vadd.f32 %v2653_v2, %v727_v61  ;;  %v1242_v12 = vadd.f32 %v2653_v2, %v728_v62  ;;  %v239_v57 = vld [vmem:[%s2644_s11 + $0x160] sm:$0xff]  ;;  %v240_v62 = vld [vmem:[%s2644_s11 + $0x168] sm:$0xff] }
  0x4f   : > { %v731_v13 = vmul.f32 %v2651_v1, %v218_v58  ;;  %1750 = vst [vmem:[%s2683_s25 + $0x80] sm:$0xff] %v1238_v3  ;;  %1751 = vst [vmem:[%s2683_s25 + $0x88] sm:$0xff] %v1239_v4  ;;  %v1243_v16 = vadd.f32 %v2653_v2, %v729_v5  ;;  %v732_v18 = vmul.f32 %v2651_v1, %v219_v63  ;;  %v241_v63 = vld [vmem:[%s2644_s11 + $0x170] sm:$0xff] }
  0x50   : > { %v1244_v17 = vadd.f32 %v2653_v2, %v730_v6  ;;  %v733_v19 = vmul.f32 %v2651_v1, %v220_v0  ;;  %1752 = vst [vmem:[%s2683_s25 + $0x90] sm:$0xff] %v1240_v10  ;;  %1753 = vst [vmem:[%s2683_s25 + $0x98] sm:$0xff] %v1241_v11  ;;  %v734_v22 = vmul.f32 %v2651_v1, %v221_v7  ;;  %v242_v6 = vld [vmem:[%s2644_s11 + $0x178] sm:$0xff]  ;;  %v243_v11 = vld [vmem:[%s2644_s11 + $0x180] sm:$0xff] }
  0x51   : > { %1754 = vst [vmem:[%s2683_s25 + $0xa0] sm:$0xff] %v1242_v12  ;;  %v1245_v21 = vadd.f32 %v2653_v2, %v731_v13  ;;  %v735_v23 = vmul.f32 %v2651_v1, %v222_v8  ;;  %v736_v24 = vmul.f32 %v2651_v1, %v223_v9  ;;  %1755 = vst [vmem:[%s2683_s25 + $0xa8] sm:$0xff] %v1243_v16  ;;  %v244_v12 = vld [vmem:[%s2644_s11 + $0x188] sm:$0xff] }
  0x52   : > { %1756 = vst [vmem:[%s2683_s25 + $0xb0] sm:$0xff] %v1244_v17  ;;  %v1246_v27 = vadd.f32 %v2653_v2, %v732_v18  ;;  %v1247_v28 = vadd.f32 %v2653_v2, %v733_v19  ;;  %v737_v29 = vmul.f32 %v2651_v1, %v224_v14  ;;  %v738_v30 = vmul.f32 %v2651_v1, %v225_v15  ;;  %v245_v17 = vld [vmem:[%s2644_s11 + $0x190] sm:$0xff]  ;;  %v246_v18 = vld [vmem:[%s2644_s11 + $0x198] sm:$0xff]  ;;  %v247_v19 = vld [vmem:[%s2644_s11 + $0x1a0] sm:$0xff] }
  0x53   : > { %1757 = vst [vmem:[%s2683_s25 + $0xb8] sm:$0xff] %v1245_v21  ;;  %v1248_v34 = vadd.f32 %v2653_v2, %v734_v22  ;;  %v1249_v35 = vadd.f32 %v2653_v2, %v735_v23  ;;  %v1250_v36 = vadd.f32 %v2653_v2, %v736_v24  ;;  %v739_v37 = vmul.f32 %v2651_v1, %v226_v20  ;;  %v248_v24 = vld [vmem:[%s2644_s11 + $0x1a8] sm:$0xff] }
  0x54   : > { %1758 = vst [vmem:[%s2683_s25 + $0xc0] sm:$0xff] %v1246_v27  ;;  %1759 = vst [vmem:[%s2683_s25 + $0xc8] sm:$0xff] %v1247_v28  ;;  %v1251_v40 = vadd.f32 %v2653_v2, %v737_v29  ;;  %v1252_v41 = vadd.f32 %v2653_v2, %v738_v30  ;;  %v740_v42 = vmul.f32 %v2651_v1, %v227_v25  ;;  %v249_v25 = vld [vmem:[%s2644_s11 + $0x1b0] sm:$0xff]  ;;  %v250_v30 = vld [vmem:[%s2644_s11 + $0x1b8] sm:$0xff] }
  0x55   : > { %v741_v43 = vmul.f32 %v2651_v1, %v228_v26  ;;  %1760 = vst [vmem:[%s2683_s25 + $0xd0] sm:$0xff] %v1248_v34  ;;  %1761 = vst [vmem:[%s2683_s25 + $0xd8] sm:$0xff] %v1249_v35  ;;  %v1253_v45 = vadd.f32 %v2653_v2, %v739_v37  ;;  %v742_v46 = vmul.f32 %v2651_v1, %v229_v31  ;;  %v251_v35 = vld [vmem:[%s2644_s11 + $0x1c0] sm:$0xff] }
  0x56   : > { %1762 = vst [vmem:[%s2683_s25 + $0xe0] sm:$0xff] %v1250_v36  ;;  %v743_v47 = vmul.f32 %v2651_v1, %v230_v32  ;;  %v744_v48 = vmul.f32 %v2651_v1, %v231_v33  ;;  %1763 = vst [vmem:[%s2683_s25 + $0xe8] sm:$0xff] %v1251_v40  ;;  %v1254_v51 = vadd.f32 %v2653_v2, %v740_v42  ;;  %v252_v36 = vld [vmem:[%s2644_s11 + $0x1c8] sm:$0xff]  ;;  %v254_v42 = vld [vmem:[%s2644_s11 + $0x1d8] sm:$0xff] }
  0x57   : > { %1764 = vst [vmem:[%s2683_s25 + $0xf0] sm:$0xff] %v1252_v41  ;;  %v1255_v52 = vadd.f32 %v2653_v2, %v741_v43  ;;  %v745_v53 = vmul.f32 %v2651_v1, %v232_v38  ;;  %v746_v54 = vmul.f32 %v2651_v1, %v233_v39  ;;  %1765 = vst [vmem:[%s2683_s25 + $0xf8] sm:$0xff] %v1253_v45  ;;  %v253_v41 = vld [vmem:[%s2644_s11 + $0x1d0] sm:$0xff]  ;;  %v255_v43 = vld [vmem:[%s2644_s11 + $0x1e0] sm:$0xff] }
  0x58   : > { %v1256_v58 = vadd.f32 %v2653_v2, %v742_v46  ;;  %v1257_v59 = vadd.f32 %v2653_v2, %v743_v47  ;;  %v1258_v60 = vadd.f32 %v2653_v2, %v744_v48  ;;  %v747_v61 = vmul.f32 %v2651_v1, %v234_v44  ;;  %1766 = vst [vmem:[%s2683_s25 + $0x100] sm:$0xff] %v1254_v51  ;;  %v256_v48 = vld [vmem:[%s2644_s11 + $0x1e8] sm:$0xff] }
  0x59   : > { %1767 = vst [vmem:[%s2683_s25 + $0x108] sm:$0xff] %v1255_v52  ;;  %v1259_v0 = vadd.f32 %v2653_v2, %v745_v53  ;;  %v1260_v3 = vadd.f32 %v2653_v2, %v746_v54  ;;  %v748_v4 = vmul.f32 %v2651_v1, %v235_v49  ;;  %v749_v5 = vmul.f32 %v2651_v1, %v236_v50  ;;  %v257_v49 = vld [vmem:[%s2644_s11 + $0x1f0] sm:$0xff]  ;;  %v258_v54 = vld [vmem:[%s2644_s11 + $0x1f8] sm:$0xff] }
  0x5a   : > { %1768 = vst [vmem:[%s2683_s25 + $0x110] sm:$0xff] %v1256_v58  ;;  %1769 = vst [vmem:[%s2683_s25 + $0x118] sm:$0xff] %v1257_v59  ;;  %v1261_v7 = vadd.f32 %v2653_v2, %v747_v61  ;;  %v750_v8 = vmul.f32 %v2651_v1, %v237_v55  ;;  %v751_v9 = vmul.f32 %v2651_v1, %v238_v56  ;;  %v259_v59 = vld [vmem:[%s2644_s11 + $0x200] sm:$0xff] }
  0x5b   : > { %1770 = vst [vmem:[%s2683_s25 + $0x120] sm:$0xff] %v1258_v60  ;;  %v752_v10 = vmul.f32 %v2651_v1, %v239_v57  ;;  %1771 = vst [vmem:[%s2683_s25 + $0x128] sm:$0xff] %v1259_v0  ;;  %v1262_v13 = vadd.f32 %v2653_v2, %v748_v4  ;;  %v1263_v14 = vadd.f32 %v2653_v2, %v749_v5  ;;  %v260_v60 = vld [vmem:[%s2644_s11 + $0x208] sm:$0xff]  ;;  %v262_v4 = vld [vmem:[%s2644_s11 + $0x218] sm:$0xff] }
  0x5c   : > { %1772 = vst [vmem:[%s2683_s25 + $0x130] sm:$0xff] %v1260_v3  ;;  %v753_v15 = vmul.f32 %v2651_v1, %v240_v62  ;;  %v754_v16 = vmul.f32 %v2651_v1, %v241_v63  ;;  %1773 = vst [vmem:[%s2683_s25 + $0x138] sm:$0xff] %v1261_v7  ;;  %v1264_v20 = vadd.f32 %v2653_v2, %v750_v8  ;;  %v261_v3 = vld [vmem:[%s2644_s11 + $0x210] sm:$0xff]  ;;  %v263_v5 = vld [vmem:[%s2644_s11 + $0x220] sm:$0xff] }
  0x5d   : > { %v1265_v21 = vadd.f32 %v2653_v2, %v751_v9  ;;  %v1266_v22 = vadd.f32 %v2653_v2, %v752_v10  ;;  %v755_v23 = vmul.f32 %v2651_v1, %v242_v6  ;;  %1774 = vst [vmem:[%s2683_s25 + $0x140] sm:$0xff] %v1262_v13  ;;  %1775 = vst [vmem:[%s2683_s25 + $0x148] sm:$0xff] %v1263_v14  ;;  %v264_v10 = vld [vmem:[%s2644_s11 + $0x228] sm:$0xff] }
  0x5e   : > { %v1267_v26 = vadd.f32 %v2653_v2, %v753_v15  ;;  %v1268_v27 = vadd.f32 %v2653_v2, %v754_v16  ;;  %v756_v28 = vmul.f32 %v2651_v1, %v243_v11  ;;  %v757_v29 = vmul.f32 %v2651_v1, %v244_v12  ;;  %1776 = vst [vmem:[%s2683_s25 + $0x150] sm:$0xff] %v1264_v20  ;;  %v265_v11 = vld [vmem:[%s2644_s11 + $0x230] sm:$0xff]  ;;  %v266_v16 = vld [vmem:[%s2644_s11 + $0x238] sm:$0xff] }
  0x5f   : > { %1777 = vst [vmem:[%s2683_s25 + $0x158] sm:$0xff] %v1265_v21  ;;  %1778 = vst [vmem:[%s2683_s25 + $0x160] sm:$0xff] %v1266_v22  ;;  %v1269_v31 = vadd.f32 %v2653_v2, %v755_v23  ;;  %v758_v32 = vmul.f32 %v2651_v1, %v245_v17  ;;  %v759_v33 = vmul.f32 %v2651_v1, %v246_v18  ;;  %v267_v21 = vld [vmem:[%s2644_s11 + $0x240] sm:$0xff]  ;;  %v268_v22 = vld [vmem:[%s2644_s11 + $0x248] sm:$0xff] }
  0x60   : > { %v760_v34 = vmul.f32 %v2651_v1, %v247_v19  ;;  %1779 = vst [vmem:[%s2683_s25 + $0x168] sm:$0xff] %v1267_v26  ;;  %1780 = vst [vmem:[%s2683_s25 + $0x170] sm:$0xff] %v1268_v27  ;;  %v1270_v37 = vadd.f32 %v2653_v2, %v756_v28  ;;  %v1271_v38 = vadd.f32 %v2653_v2, %v757_v29  ;;  %v269_v27 = vld [vmem:[%s2644_s11 + $0x250] sm:$0xff]  ;;  %v270_v28 = vld [vmem:[%s2644_s11 + $0x258] sm:$0xff] }
  0x61   : > { %v761_v39 = vmul.f32 %v2651_v1, %v248_v24  ;;  %v762_v40 = vmul.f32 %v2651_v1, %v249_v25  ;;  %1781 = vst [vmem:[%s2683_s25 + $0x178] sm:$0xff] %v1269_v31  ;;  %v1272_v44 = vadd.f32 %v2653_v2, %v758_v32  ;;  %v1273_v45 = vadd.f32 %v2653_v2, %v759_v33  ;;  %v271_v29 = vld [vmem:[%s2644_s11 + $0x260] sm:$0xff] }
  0x62   : > { %v1274_v46 = vadd.f32 %v2653_v2, %v760_v34  ;;  %v763_v47 = vmul.f32 %v2651_v1, %v250_v30  ;;  %1782 = vst [vmem:[%s2683_s25 + $0x180] sm:$0xff] %v1270_v37  ;;  %1783 = vst [vmem:[%s2683_s25 + $0x188] sm:$0xff] %v1271_v38  ;;  %v764_v52 = vmul.f32 %v2651_v1, %v251_v35  ;;  %v272_v34 = vld [vmem:[%s2644_s11 + $0x268] sm:$0xff]  ;;  %v273_v35 = vld [vmem:[%s2644_s11 + $0x270] sm:$0xff] }
  0x63   : > { %v1275_v50 = vadd.f32 %v2653_v2, %v761_v39  ;;  %v1276_v51 = vadd.f32 %v2653_v2, %v762_v40  ;;  %v765_v53 = vmul.f32 %v2651_v1, %v252_v36  ;;  %1784 = vst [vmem:[%s2683_s25 + $0x190] sm:$0xff] %v1272_v44  ;;  %1785 = vst [vmem:[%s2683_s25 + $0x198] sm:$0xff] %v1273_v45  ;;  %v274_v40 = vld [vmem:[%s2644_s11 + $0x278] sm:$0xff]  ;;  %v275_v45 = vld [vmem:[%s2644_s11 + $0x280] sm:$0xff] }
  0x64   : > { %1786 = vst [vmem:[%s2683_s25 + $0x1a0] sm:$0xff] %v1274_v46  ;;  %v1277_v55 = vadd.f32 %v2653_v2, %v763_v47  ;;  %v766_v56 = vmul.f32 %v2651_v1, %v253_v41  ;;  %v767_v57 = vmul.f32 %v2651_v1, %v254_v42  ;;  %v768_v58 = vmul.f32 %v2651_v1, %v255_v43  ;;  %v276_v46 = vld [vmem:[%s2644_s11 + $0x288] sm:$0xff] }
  0x65   : > { %1787 = vst [vmem:[%s2683_s25 + $0x1a8] sm:$0xff] %v1275_v50  ;;  %1788 = vst [vmem:[%s2683_s25 + $0x1b0] sm:$0xff] %v1276_v51  ;;  %v1278_v61 = vadd.f32 %v2653_v2, %v764_v52  ;;  %v1279_v62 = vadd.f32 %v2653_v2, %v765_v53  ;;  %v769_v63 = vmul.f32 %v2651_v1, %v256_v48  ;;  %v277_v51 = vld [vmem:[%s2644_s11 + $0x290] sm:$0xff]  ;;  %v278_v52 = vld [vmem:[%s2644_s11 + $0x298] sm:$0xff] }
  0x66   : > { %v770_v0 = vmul.f32 %v2651_v1, %v257_v49  ;;  %1789 = vst [vmem:[%s2683_s25 + $0x1b8] sm:$0xff] %v1277_v55  ;;  %v1280_v6 = vadd.f32 %v2653_v2, %v766_v56  ;;  %v1281_v7 = vadd.f32 %v2653_v2, %v767_v57  ;;  %v1282_v8 = vadd.f32 %v2653_v2, %v768_v58  ;;  %v279_v53 = vld [vmem:[%s2644_s11 + $0x2a0] sm:$0xff]  ;;  %v280_v58 = vld [vmem:[%s2644_s11 + $0x2a8] sm:$0xff] }
  0x67   : > { %v771_v9 = vmul.f32 %v2651_v1, %v258_v54  ;;  %1790 = vst [vmem:[%s2683_s25 + $0x1c0] sm:$0xff] %v1278_v61  ;;  %1791 = vst [vmem:[%s2683_s25 + $0x1c8] sm:$0xff] %v1279_v62  ;;  %v1283_v12 = vadd.f32 %v2653_v2, %v769_v63  ;;  %v772_v14 = vmul.f32 %v2651_v1, %v259_v59  ;;  %v281_v59 = vld [vmem:[%s2644_s11 + $0x2b0] sm:$0xff] }
  0x68   : > { %v1284_v13 = vadd.f32 %v2653_v2, %v770_v0  ;;  %v773_v15 = vmul.f32 %v2651_v1, %v260_v60  ;;  %1792 = vst [vmem:[%s2683_s25 + $0x1d0] sm:$0xff] %v1280_v6  ;;  %1793 = vst [vmem:[%s2683_s25 + $0x1d8] sm:$0xff] %v1281_v7  ;;  %v774_v18 = vmul.f32 %v2651_v1, %v261_v3  ;;  %v282_v0 = vld [vmem:[%s2644_s11 + $0x2b8] sm:$0xff]  ;;  %v283_v7 = vld [vmem:[%s2644_s11 + $0x2c0] sm:$0xff] }
  0x69   : > { %1794 = vst [vmem:[%s2683_s25 + $0x1e0] sm:$0xff] %v1282_v8  ;;  %v1285_v17 = vadd.f32 %v2653_v2, %v771_v9  ;;  %v775_v19 = vmul.f32 %v2651_v1, %v262_v4  ;;  %v776_v20 = vmul.f32 %v2651_v1, %v263_v5  ;;  %1795 = vst [vmem:[%s2683_s25 + $0x1e8] sm:$0xff] %v1283_v12  ;;  %v284_v8 = vld [vmem:[%s2644_s11 + $0x2c8] sm:$0xff] }
  0x6a   : > { %1796 = vst [vmem:[%s2683_s25 + $0x1f0] sm:$0xff] %v1284_v13  ;;  %v1286_v23 = vadd.f32 %v2653_v2, %v772_v14  ;;  %v1287_v24 = vadd.f32 %v2653_v2, %v773_v15  ;;  %v777_v25 = vmul.f32 %v2651_v1, %v264_v10  ;;  %v778_v26 = vmul.f32 %v2651_v1, %v265_v11  ;;  %v285_v13 = vld [vmem:[%s2644_s11 + $0x2d0] sm:$0xff]  ;;  %v286_v14 = vld [vmem:[%s2644_s11 + $0x2d8] sm:$0xff]  ;;  %v287_v15 = vld [vmem:[%s2644_s11 + $0x2e0] sm:$0xff] }
  0x6b   : > { %1797 = vst [vmem:[%s2683_s25 + $0x1f8] sm:$0xff] %v1285_v17  ;;  %v1288_v30 = vadd.f32 %v2653_v2, %v774_v18  ;;  %v1289_v31 = vadd.f32 %v2653_v2, %v775_v19  ;;  %v1290_v32 = vadd.f32 %v2653_v2, %v776_v20  ;;  %v779_v33 = vmul.f32 %v2651_v1, %v266_v16  ;;  %v288_v20 = vld [vmem:[%s2644_s11 + $0x2e8] sm:$0xff] }
  0x6c   : > { %1798 = vst [vmem:[%s2683_s25 + $0x200] sm:$0xff] %v1286_v23  ;;  %1799 = vst [vmem:[%s2683_s25 + $0x208] sm:$0xff] %v1287_v24  ;;  %v1291_v36 = vadd.f32 %v2653_v2, %v777_v25  ;;  %v1292_v37 = vadd.f32 %v2653_v2, %v778_v26  ;;  %v780_v38 = vmul.f32 %v2651_v1, %v267_v21  ;;  %v289_v21 = vld [vmem:[%s2644_s11 + $0x2f0] sm:$0xff]  ;;  %v290_v26 = vld [vmem:[%s2644_s11 + $0x2f8] sm:$0xff] }
  0x6d   : > { %v781_v39 = vmul.f32 %v2651_v1, %v268_v22  ;;  %1800 = vst [vmem:[%s2683_s25 + $0x210] sm:$0xff] %v1288_v30  ;;  %1801 = vst [vmem:[%s2683_s25 + $0x218] sm:$0xff] %v1289_v31  ;;  %v1293_v41 = vadd.f32 %v2653_v2, %v779_v33  ;;  %v782_v42 = vmul.f32 %v2651_v1, %v269_v27  ;;  %v291_v31 = vld [vmem:[%s2644_s11 + $0x300] sm:$0xff] }
  0x6e   : > { %1802 = vst [vmem:[%s2683_s25 + $0x220] sm:$0xff] %v1290_v32  ;;  %v783_v43 = vmul.f32 %v2651_v1, %v270_v28  ;;  %v784_v44 = vmul.f32 %v2651_v1, %v271_v29  ;;  %1803 = vst [vmem:[%s2683_s25 + $0x228] sm:$0xff] %v1291_v36  ;;  %v1294_v47 = vadd.f32 %v2653_v2, %v780_v38  ;;  %v292_v32 = vld [vmem:[%s2644_s11 + $0x308] sm:$0xff]  ;;  %v294_v38 = vld [vmem:[%s2644_s11 + $0x318] sm:$0xff] }
  0x6f   : > { %1804 = vst [vmem:[%s2683_s25 + $0x230] sm:$0xff] %v1292_v37  ;;  %v1295_v48 = vadd.f32 %v2653_v2, %v781_v39  ;;  %v785_v49 = vmul.f32 %v2651_v1, %v272_v34  ;;  %v786_v50 = vmul.f32 %v2651_v1, %v273_v35  ;;  %1805 = vst [vmem:[%s2683_s25 + $0x238] sm:$0xff] %v1293_v41  ;;  %v293_v37 = vld [vmem:[%s2644_s11 + $0x310] sm:$0xff]  ;;  %v295_v39 = vld [vmem:[%s2644_s11 + $0x320] sm:$0xff] }
  0x70   : > { %v1296_v54 = vadd.f32 %v2653_v2, %v782_v42  ;;  %v1297_v55 = vadd.f32 %v2653_v2, %v783_v43  ;;  %v1298_v56 = vadd.f32 %v2653_v2, %v784_v44  ;;  %v787_v57 = vmul.f32 %v2651_v1, %v274_v40  ;;  %1806 = vst [vmem:[%s2683_s25 + $0x240] sm:$0xff] %v1294_v47  ;;  %v296_v44 = vld [vmem:[%s2644_s11 + $0x328] sm:$0xff] }
  0x71   : > { %1807 = vst [vmem:[%s2683_s25 + $0x248] sm:$0xff] %v1295_v48  ;;  %v1299_v60 = vadd.f32 %v2653_v2, %v785_v49  ;;  %v1300_v61 = vadd.f32 %v2653_v2, %v786_v50  ;;  %v788_v62 = vmul.f32 %v2651_v1, %v275_v45  ;;  %v789_v63 = vmul.f32 %v2651_v1, %v276_v46  ;;  %v297_v45 = vld [vmem:[%s2644_s11 + $0x330] sm:$0xff]  ;;  %v298_v50 = vld [vmem:[%s2644_s11 + $0x338] sm:$0xff] }
  0x72   : > { %1808 = vst [vmem:[%s2683_s25 + $0x250] sm:$0xff] %v1296_v54  ;;  %1809 = vst [vmem:[%s2683_s25 + $0x258] sm:$0xff] %v1297_v55  ;;  %v1301_v3 = vadd.f32 %v2653_v2, %v787_v57  ;;  %v790_v4 = vmul.f32 %v2651_v1, %v277_v51  ;;  %v791_v5 = vmul.f32 %v2651_v1, %v278_v52  ;;  %v299_v55 = vld [vmem:[%s2644_s11 + $0x340] sm:$0xff] }
  0x73   : > { %1810 = vst [vmem:[%s2683_s25 + $0x260] sm:$0xff] %v1298_v56  ;;  %v792_v6 = vmul.f32 %v2651_v1, %v279_v53  ;;  %1811 = vst [vmem:[%s2683_s25 + $0x268] sm:$0xff] %v1299_v60  ;;  %v1302_v9 = vadd.f32 %v2653_v2, %v788_v62  ;;  %v1303_v10 = vadd.f32 %v2653_v2, %v789_v63  ;;  %v300_v56 = vld [vmem:[%s2644_s11 + $0x348] sm:$0xff]  ;;  %v302_v62 = vld [vmem:[%s2644_s11 + $0x358] sm:$0xff] }
  0x74   : > { %1812 = vst [vmem:[%s2683_s25 + $0x270] sm:$0xff] %v1300_v61  ;;  %v793_v11 = vmul.f32 %v2651_v1, %v280_v58  ;;  %v794_v12 = vmul.f32 %v2651_v1, %v281_v59  ;;  %1813 = vst [vmem:[%s2683_s25 + $0x278] sm:$0xff] %v1301_v3  ;;  %v1304_v16 = vadd.f32 %v2653_v2, %v790_v4  ;;  %v301_v61 = vld [vmem:[%s2644_s11 + $0x350] sm:$0xff]  ;;  %v303_v63 = vld [vmem:[%s2644_s11 + $0x360] sm:$0xff] }
  0x75   : > { %v1305_v17 = vadd.f32 %v2653_v2, %v791_v5  ;;  %v1306_v18 = vadd.f32 %v2653_v2, %v792_v6  ;;  %v795_v19 = vmul.f32 %v2651_v1, %v282_v0  ;;  %1814 = vst [vmem:[%s2683_s25 + $0x280] sm:$0xff] %v1302_v9  ;;  %1815 = vst [vmem:[%s2683_s25 + $0x288] sm:$0xff] %v1303_v10  ;;  %v304_v6 = vld [vmem:[%s2644_s11 + $0x368] sm:$0xff] }
  0x76   : > { %v1307_v22 = vadd.f32 %v2653_v2, %v793_v11  ;;  %v1308_v23 = vadd.f32 %v2653_v2, %v794_v12  ;;  %v796_v24 = vmul.f32 %v2651_v1, %v283_v7  ;;  %v797_v25 = vmul.f32 %v2651_v1, %v284_v8  ;;  %1816 = vst [vmem:[%s2683_s25 + $0x290] sm:$0xff] %v1304_v16  ;;  %v305_v7 = vld [vmem:[%s2644_s11 + $0x370] sm:$0xff]  ;;  %v306_v12 = vld [vmem:[%s2644_s11 + $0x378] sm:$0xff] }
  0x77   : > { %1817 = vst [vmem:[%s2683_s25 + $0x298] sm:$0xff] %v1305_v17  ;;  %1818 = vst [vmem:[%s2683_s25 + $0x2a0] sm:$0xff] %v1306_v18  ;;  %v1309_v27 = vadd.f32 %v2653_v2, %v795_v19  ;;  %v798_v28 = vmul.f32 %v2651_v1, %v285_v13  ;;  %v799_v29 = vmul.f32 %v2651_v1, %v286_v14  ;;  %v307_v17 = vld [vmem:[%s2644_s11 + $0x380] sm:$0xff]  ;;  %v308_v18 = vld [vmem:[%s2644_s11 + $0x388] sm:$0xff] }
  0x78   : > { %v800_v30 = vmul.f32 %v2651_v1, %v287_v15  ;;  %1819 = vst [vmem:[%s2683_s25 + $0x2a8] sm:$0xff] %v1307_v22  ;;  %1820 = vst [vmem:[%s2683_s25 + $0x2b0] sm:$0xff] %v1308_v23  ;;  %v1310_v33 = vadd.f32 %v2653_v2, %v796_v24  ;;  %v1311_v34 = vadd.f32 %v2653_v2, %v797_v25  ;;  %v309_v23 = vld [vmem:[%s2644_s11 + $0x390] sm:$0xff]  ;;  %v310_v24 = vld [vmem:[%s2644_s11 + $0x398] sm:$0xff] }
  0x79   : > { %v801_v35 = vmul.f32 %v2651_v1, %v288_v20  ;;  %v802_v36 = vmul.f32 %v2651_v1, %v289_v21  ;;  %1821 = vst [vmem:[%s2683_s25 + $0x2b8] sm:$0xff] %v1309_v27  ;;  %v1312_v40 = vadd.f32 %v2653_v2, %v798_v28  ;;  %v1313_v41 = vadd.f32 %v2653_v2, %v799_v29  ;;  %v311_v25 = vld [vmem:[%s2644_s11 + $0x3a0] sm:$0xff] }
  0x7a   : > { %v1314_v42 = vadd.f32 %v2653_v2, %v800_v30  ;;  %v803_v43 = vmul.f32 %v2651_v1, %v290_v26  ;;  %1822 = vst [vmem:[%s2683_s25 + $0x2c0] sm:$0xff] %v1310_v33  ;;  %1823 = vst [vmem:[%s2683_s25 + $0x2c8] sm:$0xff] %v1311_v34  ;;  %v804_v48 = vmul.f32 %v2651_v1, %v291_v31  ;;  %v312_v30 = vld [vmem:[%s2644_s11 + $0x3a8] sm:$0xff]  ;;  %v313_v31 = vld [vmem:[%s2644_s11 + $0x3b0] sm:$0xff] }
  0x7b   : > { %v1315_v46 = vadd.f32 %v2653_v2, %v801_v35  ;;  %v1316_v47 = vadd.f32 %v2653_v2, %v802_v36  ;;  %v805_v49 = vmul.f32 %v2651_v1, %v292_v32  ;;  %1824 = vst [vmem:[%s2683_s25 + $0x2d0] sm:$0xff] %v1312_v40  ;;  %1825 = vst [vmem:[%s2683_s25 + $0x2d8] sm:$0xff] %v1313_v41  ;;  %v314_v36 = vld [vmem:[%s2644_s11 + $0x3b8] sm:$0xff]  ;;  %v315_v41 = vld [vmem:[%s2644_s11 + $0x3c0] sm:$0xff] }
  0x7c   : > { %1826 = vst [vmem:[%s2683_s25 + $0x2e0] sm:$0xff] %v1314_v42  ;;  %v1317_v51 = vadd.f32 %v2653_v2, %v803_v43  ;;  %v806_v52 = vmul.f32 %v2651_v1, %v293_v37  ;;  %v807_v53 = vmul.f32 %v2651_v1, %v294_v38  ;;  %v808_v54 = vmul.f32 %v2651_v1, %v295_v39  ;;  %v316_v42 = vld [vmem:[%s2644_s11 + $0x3c8] sm:$0xff] }
  0x7d   : > { %1827 = vst [vmem:[%s2683_s25 + $0x2e8] sm:$0xff] %v1315_v46  ;;  %1828 = vst [vmem:[%s2683_s25 + $0x2f0] sm:$0xff] %v1316_v47  ;;  %v1318_v57 = vadd.f32 %v2653_v2, %v804_v48  ;;  %v1319_v58 = vadd.f32 %v2653_v2, %v805_v49  ;;  %v809_v59 = vmul.f32 %v2651_v1, %v296_v44  ;;  %v317_v47 = vld [vmem:[%s2644_s11 + $0x3d0] sm:$0xff]  ;;  %v318_v48 = vld [vmem:[%s2644_s11 + $0x3d8] sm:$0xff] }
  0x7e   : > { %v810_v60 = vmul.f32 %v2651_v1, %v297_v45  ;;  %1829 = vst [vmem:[%s2683_s25 + $0x2f8] sm:$0xff] %v1317_v51  ;;  %v1320_v0 = vadd.f32 %v2653_v2, %v806_v52  ;;  %v1321_v3 = vadd.f32 %v2653_v2, %v807_v53  ;;  %v1322_v4 = vadd.f32 %v2653_v2, %v808_v54  ;;  %v319_v49 = vld [vmem:[%s2644_s11 + $0x3e0] sm:$0xff]  ;;  %v320_v54 = vld [vmem:[%s2644_s11 + $0x3e8] sm:$0xff] }
  0x7f   : > { %v811_v5 = vmul.f32 %v2651_v1, %v298_v50  ;;  %1830 = vst [vmem:[%s2683_s25 + $0x300] sm:$0xff] %v1318_v57  ;;  %1831 = vst [vmem:[%s2683_s25 + $0x308] sm:$0xff] %v1319_v58  ;;  %v1323_v8 = vadd.f32 %v2653_v2, %v809_v59  ;;  %v812_v10 = vmul.f32 %v2651_v1, %v299_v55  ;;  %v321_v55 = vld [vmem:[%s2644_s11 + $0x3f0] sm:$0xff] }
  0x80   : > { %v1324_v9 = vadd.f32 %v2653_v2, %v810_v60  ;;  %v813_v11 = vmul.f32 %v2651_v1, %v300_v56  ;;  %1832 = vst [vmem:[%s2683_s25 + $0x310] sm:$0xff] %v1320_v0  ;;  %1833 = vst [vmem:[%s2683_s25 + $0x318] sm:$0xff] %v1321_v3  ;;  %v814_v14 = vmul.f32 %v2651_v1, %v301_v61  ;;  %v322_v60 = vld [vmem:[%s2644_s11 + $0x3f8] sm:$0xff]  ;;  %v323_v3 = vld [vmem:[%s2644_s11 + $0x400] sm:$0xff] }
  0x81   : > { %1834 = vst [vmem:[%s2683_s25 + $0x320] sm:$0xff] %v1322_v4  ;;  %v1325_v13 = vadd.f32 %v2653_v2, %v811_v5  ;;  %v815_v15 = vmul.f32 %v2651_v1, %v302_v62  ;;  %v816_v16 = vmul.f32 %v2651_v1, %v303_v63  ;;  %1835 = vst [vmem:[%s2683_s25 + $0x328] sm:$0xff] %v1323_v8  ;;  %v324_v4 = vld [vmem:[%s2644_s11 + $0x408] sm:$0xff] }
  0x82   : > { %1836 = vst [vmem:[%s2683_s25 + $0x330] sm:$0xff] %v1324_v9  ;;  %v1326_v19 = vadd.f32 %v2653_v2, %v812_v10  ;;  %v1327_v20 = vadd.f32 %v2653_v2, %v813_v11  ;;  %v817_v21 = vmul.f32 %v2651_v1, %v304_v6  ;;  %v818_v22 = vmul.f32 %v2651_v1, %v305_v7  ;;  %v325_v9 = vld [vmem:[%s2644_s11 + $0x410] sm:$0xff]  ;;  %v326_v10 = vld [vmem:[%s2644_s11 + $0x418] sm:$0xff]  ;;  %v327_v11 = vld [vmem:[%s2644_s11 + $0x420] sm:$0xff] }
  0x83   : > { %1837 = vst [vmem:[%s2683_s25 + $0x338] sm:$0xff] %v1325_v13  ;;  %v1328_v26 = vadd.f32 %v2653_v2, %v814_v14  ;;  %v1329_v27 = vadd.f32 %v2653_v2, %v815_v15  ;;  %v1330_v28 = vadd.f32 %v2653_v2, %v816_v16  ;;  %v819_v29 = vmul.f32 %v2651_v1, %v306_v12  ;;  %v328_v16 = vld [vmem:[%s2644_s11 + $0x428] sm:$0xff] }
  0x84   : > { %1838 = vst [vmem:[%s2683_s25 + $0x340] sm:$0xff] %v1326_v19  ;;  %1839 = vst [vmem:[%s2683_s25 + $0x348] sm:$0xff] %v1327_v20  ;;  %v1331_v32 = vadd.f32 %v2653_v2, %v817_v21  ;;  %v1332_v33 = vadd.f32 %v2653_v2, %v818_v22  ;;  %v820_v34 = vmul.f32 %v2651_v1, %v307_v17  ;;  %v329_v17 = vld [vmem:[%s2644_s11 + $0x430] sm:$0xff]  ;;  %v330_v22 = vld [vmem:[%s2644_s11 + $0x438] sm:$0xff] }
  0x85   : > { %v821_v35 = vmul.f32 %v2651_v1, %v308_v18  ;;  %1840 = vst [vmem:[%s2683_s25 + $0x350] sm:$0xff] %v1328_v26  ;;  %1841 = vst [vmem:[%s2683_s25 + $0x358] sm:$0xff] %v1329_v27  ;;  %v1333_v37 = vadd.f32 %v2653_v2, %v819_v29  ;;  %v822_v38 = vmul.f32 %v2651_v1, %v309_v23  ;;  %v331_v27 = vld [vmem:[%s2644_s11 + $0x440] sm:$0xff] }
  0x86   : > { %1842 = vst [vmem:[%s2683_s25 + $0x360] sm:$0xff] %v1330_v28  ;;  %v823_v39 = vmul.f32 %v2651_v1, %v310_v24  ;;  %v824_v40 = vmul.f32 %v2651_v1, %v311_v25  ;;  %1843 = vst [vmem:[%s2683_s25 + $0x368] sm:$0xff] %v1331_v32  ;;  %v1334_v43 = vadd.f32 %v2653_v2, %v820_v34  ;;  %v332_v28 = vld [vmem:[%s2644_s11 + $0x448] sm:$0xff]  ;;  %v334_v34 = vld [vmem:[%s2644_s11 + $0x458] sm:$0xff] }
  0x87   : > { %1844 = vst [vmem:[%s2683_s25 + $0x370] sm:$0xff] %v1332_v33  ;;  %v1335_v44 = vadd.f32 %v2653_v2, %v821_v35  ;;  %v825_v45 = vmul.f32 %v2651_v1, %v312_v30  ;;  %v826_v46 = vmul.f32 %v2651_v1, %v313_v31  ;;  %1845 = vst [vmem:[%s2683_s25 + $0x378] sm:$0xff] %v1333_v37  ;;  %v333_v33 = vld [vmem:[%s2644_s11 + $0x450] sm:$0xff]  ;;  %v335_v35 = vld [vmem:[%s2644_s11 + $0x460] sm:$0xff] }
  0x88   : > { %v1336_v50 = vadd.f32 %v2653_v2, %v822_v38  ;;  %v1337_v51 = vadd.f32 %v2653_v2, %v823_v39  ;;  %v1338_v52 = vadd.f32 %v2653_v2, %v824_v40  ;;  %v827_v53 = vmul.f32 %v2651_v1, %v314_v36  ;;  %1846 = vst [vmem:[%s2683_s25 + $0x380] sm:$0xff] %v1334_v43  ;;  %v336_v40 = vld [vmem:[%s2644_s11 + $0x468] sm:$0xff] }
  0x89   : > { %1847 = vst [vmem:[%s2683_s25 + $0x388] sm:$0xff] %v1335_v44  ;;  %v1339_v56 = vadd.f32 %v2653_v2, %v825_v45  ;;  %v1340_v57 = vadd.f32 %v2653_v2, %v826_v46  ;;  %v828_v58 = vmul.f32 %v2651_v1, %v315_v41  ;;  %v829_v59 = vmul.f32 %v2651_v1, %v316_v42  ;;  %v337_v41 = vld [vmem:[%s2644_s11 + $0x470] sm:$0xff]  ;;  %v338_v46 = vld [vmem:[%s2644_s11 + $0x478] sm:$0xff] }
  0x8a   : > { %1848 = vst [vmem:[%s2683_s25 + $0x390] sm:$0xff] %v1336_v50  ;;  %1849 = vst [vmem:[%s2683_s25 + $0x398] sm:$0xff] %v1337_v51  ;;  %v1341_v61 = vadd.f32 %v2653_v2, %v827_v53  ;;  %v830_v62 = vmul.f32 %v2651_v1, %v317_v47  ;;  %v831_v63 = vmul.f32 %v2651_v1, %v318_v48  ;;  %v339_v51 = vld [vmem:[%s2644_s11 + $0x480] sm:$0xff] }
  0x8b   : > { %1850 = vst [vmem:[%s2683_s25 + $0x3a0] sm:$0xff] %v1338_v52  ;;  %v832_v0 = vmul.f32 %v2651_v1, %v319_v49  ;;  %1851 = vst [vmem:[%s2683_s25 + $0x3a8] sm:$0xff] %v1339_v56  ;;  %v1342_v5 = vadd.f32 %v2653_v2, %v828_v58  ;;  %v1343_v6 = vadd.f32 %v2653_v2, %v829_v59  ;;  %v340_v52 = vld [vmem:[%s2644_s11 + $0x488] sm:$0xff]  ;;  %v342_v58 = vld [vmem:[%s2644_s11 + $0x498] sm:$0xff] }
  0x8c   : > { %1852 = vst [vmem:[%s2683_s25 + $0x3b0] sm:$0xff] %v1340_v57  ;;  %v833_v7 = vmul.f32 %v2651_v1, %v320_v54  ;;  %v834_v8 = vmul.f32 %v2651_v1, %v321_v55  ;;  %1853 = vst [vmem:[%s2683_s25 + $0x3b8] sm:$0xff] %v1341_v61  ;;  %v1344_v12 = vadd.f32 %v2653_v2, %v830_v62  ;;  %v341_v57 = vld [vmem:[%s2644_s11 + $0x490] sm:$0xff]  ;;  %v343_v59 = vld [vmem:[%s2644_s11 + $0x4a0] sm:$0xff] }
  0x8d   : > { %v1345_v13 = vadd.f32 %v2653_v2, %v831_v63  ;;  %v1346_v14 = vadd.f32 %v2653_v2, %v832_v0  ;;  %v835_v15 = vmul.f32 %v2651_v1, %v322_v60  ;;  %1854 = vst [vmem:[%s2683_s25 + $0x3c0] sm:$0xff] %v1342_v5  ;;  %1855 = vst [vmem:[%s2683_s25 + $0x3c8] sm:$0xff] %v1343_v6  ;;  %v344_v0 = vld [vmem:[%s2644_s11 + $0x4a8] sm:$0xff] }
  0x8e   : > { %v1347_v18 = vadd.f32 %v2653_v2, %v833_v7  ;;  %v1348_v19 = vadd.f32 %v2653_v2, %v834_v8  ;;  %v836_v20 = vmul.f32 %v2651_v1, %v323_v3  ;;  %v837_v21 = vmul.f32 %v2651_v1, %v324_v4  ;;  %1856 = vst [vmem:[%s2683_s25 + $0x3d0] sm:$0xff] %v1344_v12  ;;  %v345_v3 = vld [vmem:[%s2644_s11 + $0x4b0] sm:$0xff]  ;;  %v346_v8 = vld [vmem:[%s2644_s11 + $0x4b8] sm:$0xff] }
  0x8f   : > { %1857 = vst [vmem:[%s2683_s25 + $0x3d8] sm:$0xff] %v1345_v13  ;;  %1858 = vst [vmem:[%s2683_s25 + $0x3e0] sm:$0xff] %v1346_v14  ;;  %v1349_v23 = vadd.f32 %v2653_v2, %v835_v15  ;;  %v838_v24 = vmul.f32 %v2651_v1, %v325_v9  ;;  %v839_v25 = vmul.f32 %v2651_v1, %v326_v10  ;;  %v347_v13 = vld [vmem:[%s2644_s11 + $0x4c0] sm:$0xff]  ;;  %v348_v14 = vld [vmem:[%s2644_s11 + $0x4c8] sm:$0xff] }
  0x90   : > { %v840_v26 = vmul.f32 %v2651_v1, %v327_v11  ;;  %1859 = vst [vmem:[%s2683_s25 + $0x3e8] sm:$0xff] %v1347_v18  ;;  %1860 = vst [vmem:[%s2683_s25 + $0x3f0] sm:$0xff] %v1348_v19  ;;  %v1350_v29 = vadd.f32 %v2653_v2, %v836_v20  ;;  %v1351_v30 = vadd.f32 %v2653_v2, %v837_v21  ;;  %v349_v19 = vld [vmem:[%s2644_s11 + $0x4d0] sm:$0xff]  ;;  %v350_v20 = vld [vmem:[%s2644_s11 + $0x4d8] sm:$0xff] }
  0x91   : > { %v841_v31 = vmul.f32 %v2651_v1, %v328_v16  ;;  %v842_v32 = vmul.f32 %v2651_v1, %v329_v17  ;;  %1861 = vst [vmem:[%s2683_s25 + $0x3f8] sm:$0xff] %v1349_v23  ;;  %v1352_v36 = vadd.f32 %v2653_v2, %v838_v24  ;;  %v1353_v37 = vadd.f32 %v2653_v2, %v839_v25  ;;  %v351_v21 = vld [vmem:[%s2644_s11 + $0x4e0] sm:$0xff] }
  0x92   : > { %v1354_v38 = vadd.f32 %v2653_v2, %v840_v26  ;;  %v843_v39 = vmul.f32 %v2651_v1, %v330_v22  ;;  %1862 = vst [vmem:[%s2683_s25 + $0x400] sm:$0xff] %v1350_v29  ;;  %1863 = vst [vmem:[%s2683_s25 + $0x408] sm:$0xff] %v1351_v30  ;;  %v844_v44 = vmul.f32 %v2651_v1, %v331_v27  ;;  %v352_v26 = vld [vmem:[%s2644_s11 + $0x4e8] sm:$0xff]  ;;  %v353_v27 = vld [vmem:[%s2644_s11 + $0x4f0] sm:$0xff] }
  0x93   : > { %v1355_v42 = vadd.f32 %v2653_v2, %v841_v31  ;;  %v1356_v43 = vadd.f32 %v2653_v2, %v842_v32  ;;  %v845_v45 = vmul.f32 %v2651_v1, %v332_v28  ;;  %1864 = vst [vmem:[%s2683_s25 + $0x410] sm:$0xff] %v1352_v36  ;;  %1865 = vst [vmem:[%s2683_s25 + $0x418] sm:$0xff] %v1353_v37  ;;  %v354_v32 = vld [vmem:[%s2644_s11 + $0x4f8] sm:$0xff]  ;;  %v355_v37 = vld [vmem:[%s2644_s11 + $0x500] sm:$0xff] }
  0x94   : > { %1866 = vst [vmem:[%s2683_s25 + $0x420] sm:$0xff] %v1354_v38  ;;  %v1357_v47 = vadd.f32 %v2653_v2, %v843_v39  ;;  %v846_v48 = vmul.f32 %v2651_v1, %v333_v33  ;;  %v847_v49 = vmul.f32 %v2651_v1, %v334_v34  ;;  %v848_v50 = vmul.f32 %v2651_v1, %v335_v35  ;;  %v356_v38 = vld [vmem:[%s2644_s11 + $0x508] sm:$0xff] }
  0x95   : > { %1867 = vst [vmem:[%s2683_s25 + $0x428] sm:$0xff] %v1355_v42  ;;  %1868 = vst [vmem:[%s2683_s25 + $0x430] sm:$0xff] %v1356_v43  ;;  %v1358_v53 = vadd.f32 %v2653_v2, %v844_v44  ;;  %v1359_v54 = vadd.f32 %v2653_v2, %v845_v45  ;;  %v849_v55 = vmul.f32 %v2651_v1, %v336_v40  ;;  %v357_v43 = vld [vmem:[%s2644_s11 + $0x510] sm:$0xff]  ;;  %v358_v44 = vld [vmem:[%s2644_s11 + $0x518] sm:$0xff] }
  0x96   : > { %v850_v56 = vmul.f32 %v2651_v1, %v337_v41  ;;  %1869 = vst [vmem:[%s2683_s25 + $0x438] sm:$0xff] %v1357_v47  ;;  %v1360_v60 = vadd.f32 %v2653_v2, %v846_v48  ;;  %v1361_v61 = vadd.f32 %v2653_v2, %v847_v49  ;;  %v1362_v62 = vadd.f32 %v2653_v2, %v848_v50  ;;  %v359_v45 = vld [vmem:[%s2644_s11 + $0x520] sm:$0xff]  ;;  %v360_v50 = vld [vmem:[%s2644_s11 + $0x528] sm:$0xff] }
  0x97   : > { %v851_v63 = vmul.f32 %v2651_v1, %v338_v46  ;;  %1870 = vst [vmem:[%s2683_s25 + $0x440] sm:$0xff] %v1358_v53  ;;  %1871 = vst [vmem:[%s2683_s25 + $0x448] sm:$0xff] %v1359_v54  ;;  %v1363_v4 = vadd.f32 %v2653_v2, %v849_v55  ;;  %v852_v6 = vmul.f32 %v2651_v1, %v339_v51  ;;  %v361_v51 = vld [vmem:[%s2644_s11 + $0x530] sm:$0xff] }
  0x98   : > { %v1364_v5 = vadd.f32 %v2653_v2, %v850_v56  ;;  %v853_v7 = vmul.f32 %v2651_v1, %v340_v52  ;;  %1872 = vst [vmem:[%s2683_s25 + $0x450] sm:$0xff] %v1360_v60  ;;  %1873 = vst [vmem:[%s2683_s25 + $0x458] sm:$0xff] %v1361_v61  ;;  %v854_v10 = vmul.f32 %v2651_v1, %v341_v57  ;;  %v362_v56 = vld [vmem:[%s2644_s11 + $0x538] sm:$0xff]  ;;  %v363_v61 = vld [vmem:[%s2644_s11 + $0x540] sm:$0xff] }
  0x99   : > { %1874 = vst [vmem:[%s2683_s25 + $0x460] sm:$0xff] %v1362_v62  ;;  %v1365_v9 = vadd.f32 %v2653_v2, %v851_v63  ;;  %v855_v11 = vmul.f32 %v2651_v1, %v342_v58  ;;  %v856_v12 = vmul.f32 %v2651_v1, %v343_v59  ;;  %1875 = vst [vmem:[%s2683_s25 + $0x468] sm:$0xff] %v1363_v4  ;;  %v364_v62 = vld [vmem:[%s2644_s11 + $0x548] sm:$0xff] }
  0x9a   : > { %1876 = vst [vmem:[%s2683_s25 + $0x470] sm:$0xff] %v1364_v5  ;;  %v1366_v15 = vadd.f32 %v2653_v2, %v852_v6  ;;  %v1367_v16 = vadd.f32 %v2653_v2, %v853_v7  ;;  %v857_v17 = vmul.f32 %v2651_v1, %v344_v0  ;;  %v858_v18 = vmul.f32 %v2651_v1, %v345_v3  ;;  %v365_v5 = vld [vmem:[%s2644_s11 + $0x550] sm:$0xff]  ;;  %v366_v6 = vld [vmem:[%s2644_s11 + $0x558] sm:$0xff]  ;;  %v367_v7 = vld [vmem:[%s2644_s11 + $0x560] sm:$0xff] }
  0x9b   : > { %1877 = vst [vmem:[%s2683_s25 + $0x478] sm:$0xff] %v1365_v9  ;;  %v1368_v22 = vadd.f32 %v2653_v2, %v854_v10  ;;  %v1369_v23 = vadd.f32 %v2653_v2, %v855_v11  ;;  %v1370_v24 = vadd.f32 %v2653_v2, %v856_v12  ;;  %v859_v25 = vmul.f32 %v2651_v1, %v346_v8  ;;  %v368_v12 = vld [vmem:[%s2644_s11 + $0x568] sm:$0xff] }
  0x9c   : > { %1878 = vst [vmem:[%s2683_s25 + $0x480] sm:$0xff] %v1366_v15  ;;  %1879 = vst [vmem:[%s2683_s25 + $0x488] sm:$0xff] %v1367_v16  ;;  %v1371_v28 = vadd.f32 %v2653_v2, %v857_v17  ;;  %v1372_v29 = vadd.f32 %v2653_v2, %v858_v18  ;;  %v860_v30 = vmul.f32 %v2651_v1, %v347_v13  ;;  %v369_v13 = vld [vmem:[%s2644_s11 + $0x570] sm:$0xff]  ;;  %v370_v18 = vld [vmem:[%s2644_s11 + $0x578] sm:$0xff] }
  0x9d   : > { %v861_v31 = vmul.f32 %v2651_v1, %v348_v14  ;;  %1880 = vst [vmem:[%s2683_s25 + $0x490] sm:$0xff] %v1368_v22  ;;  %1881 = vst [vmem:[%s2683_s25 + $0x498] sm:$0xff] %v1369_v23  ;;  %v1373_v33 = vadd.f32 %v2653_v2, %v859_v25  ;;  %v862_v34 = vmul.f32 %v2651_v1, %v349_v19  ;;  %v371_v23 = vld [vmem:[%s2644_s11 + $0x580] sm:$0xff] }
  0x9e   : > { %1882 = vst [vmem:[%s2683_s25 + $0x4a0] sm:$0xff] %v1370_v24  ;;  %v863_v35 = vmul.f32 %v2651_v1, %v350_v20  ;;  %v864_v36 = vmul.f32 %v2651_v1, %v351_v21  ;;  %1883 = vst [vmem:[%s2683_s25 + $0x4a8] sm:$0xff] %v1371_v28  ;;  %v1374_v39 = vadd.f32 %v2653_v2, %v860_v30  ;;  %v372_v24 = vld [vmem:[%s2644_s11 + $0x588] sm:$0xff]  ;;  %v374_v30 = vld [vmem:[%s2644_s11 + $0x598] sm:$0xff] }
  0x9f   : > { %1884 = vst [vmem:[%s2683_s25 + $0x4b0] sm:$0xff] %v1372_v29  ;;  %v1375_v40 = vadd.f32 %v2653_v2, %v861_v31  ;;  %v865_v41 = vmul.f32 %v2651_v1, %v352_v26  ;;  %v866_v42 = vmul.f32 %v2651_v1, %v353_v27  ;;  %1885 = vst [vmem:[%s2683_s25 + $0x4b8] sm:$0xff] %v1373_v33  ;;  %v373_v29 = vld [vmem:[%s2644_s11 + $0x590] sm:$0xff]  ;;  %v375_v31 = vld [vmem:[%s2644_s11 + $0x5a0] sm:$0xff] }
  0xa0   : > { %v1376_v46 = vadd.f32 %v2653_v2, %v862_v34  ;;  %v1377_v47 = vadd.f32 %v2653_v2, %v863_v35  ;;  %v1378_v48 = vadd.f32 %v2653_v2, %v864_v36  ;;  %v867_v49 = vmul.f32 %v2651_v1, %v354_v32  ;;  %1886 = vst [vmem:[%s2683_s25 + $0x4c0] sm:$0xff] %v1374_v39  ;;  %v376_v36 = vld [vmem:[%s2644_s11 + $0x5a8] sm:$0xff] }
  0xa1   : > { %1887 = vst [vmem:[%s2683_s25 + $0x4c8] sm:$0xff] %v1375_v40  ;;  %v1379_v52 = vadd.f32 %v2653_v2, %v865_v41  ;;  %v1380_v53 = vadd.f32 %v2653_v2, %v866_v42  ;;  %v868_v54 = vmul.f32 %v2651_v1, %v355_v37  ;;  %v869_v55 = vmul.f32 %v2651_v1, %v356_v38  ;;  %v377_v37 = vld [vmem:[%s2644_s11 + $0x5b0] sm:$0xff]  ;;  %v378_v42 = vld [vmem:[%s2644_s11 + $0x5b8] sm:$0xff] }
  0xa2   : > { %1888 = vst [vmem:[%s2683_s25 + $0x4d0] sm:$0xff] %v1376_v46  ;;  %1889 = vst [vmem:[%s2683_s25 + $0x4d8] sm:$0xff] %v1377_v47  ;;  %v1381_v57 = vadd.f32 %v2653_v2, %v867_v49  ;;  %v870_v58 = vmul.f32 %v2651_v1, %v357_v43  ;;  %v871_v59 = vmul.f32 %v2651_v1, %v358_v44  ;;  %v379_v47 = vld [vmem:[%s2644_s11 + $0x5c0] sm:$0xff] }
  0xa3   : > { %1890 = vst [vmem:[%s2683_s25 + $0x4e0] sm:$0xff] %v1378_v48  ;;  %v872_v60 = vmul.f32 %v2651_v1, %v359_v45  ;;  %1891 = vst [vmem:[%s2683_s25 + $0x4e8] sm:$0xff] %v1379_v52  ;;  %v1382_v63 = vadd.f32 %v2653_v2, %v868_v54  ;;  %v1383_v0 = vadd.f32 %v2653_v2, %v869_v55  ;;  %v380_v48 = vld [vmem:[%s2644_s11 + $0x5c8] sm:$0xff]  ;;  %v382_v54 = vld [vmem:[%s2644_s11 + $0x5d8] sm:$0xff] }
  0xa4   : > { %1892 = vst [vmem:[%s2683_s25 + $0x4f0] sm:$0xff] %v1380_v53  ;;  %v873_v3 = vmul.f32 %v2651_v1, %v360_v50  ;;  %v874_v4 = vmul.f32 %v2651_v1, %v361_v51  ;;  %1893 = vst [vmem:[%s2683_s25 + $0x4f8] sm:$0xff] %v1381_v57  ;;  %v1384_v8 = vadd.f32 %v2653_v2, %v870_v58  ;;  %v381_v53 = vld [vmem:[%s2644_s11 + $0x5d0] sm:$0xff]  ;;  %v383_v55 = vld [vmem:[%s2644_s11 + $0x5e0] sm:$0xff] }
  0xa5   : > { %v1385_v9 = vadd.f32 %v2653_v2, %v871_v59  ;;  %v1386_v10 = vadd.f32 %v2653_v2, %v872_v60  ;;  %v875_v11 = vmul.f32 %v2651_v1, %v362_v56  ;;  %1894 = vst [vmem:[%s2683_s25 + $0x500] sm:$0xff] %v1382_v63  ;;  %1895 = vst [vmem:[%s2683_s25 + $0x508] sm:$0xff] %v1383_v0  ;;  %v384_v60 = vld [vmem:[%s2644_s11 + $0x5e8] sm:$0xff] }
  0xa6   : > { %v1387_v14 = vadd.f32 %v2653_v2, %v873_v3  ;;  %v1388_v15 = vadd.f32 %v2653_v2, %v874_v4  ;;  %v876_v16 = vmul.f32 %v2651_v1, %v363_v61  ;;  %v877_v17 = vmul.f32 %v2651_v1, %v364_v62  ;;  %1896 = vst [vmem:[%s2683_s25 + $0x510] sm:$0xff] %v1384_v8  ;;  %v385_v61 = vld [vmem:[%s2644_s11 + $0x5f0] sm:$0xff]  ;;  %v386_v4 = vld [vmem:[%s2644_s11 + $0x5f8] sm:$0xff] }
  0xa7   : > { %1897 = vst [vmem:[%s2683_s25 + $0x518] sm:$0xff] %v1385_v9  ;;  %1898 = vst [vmem:[%s2683_s25 + $0x520] sm:$0xff] %v1386_v10  ;;  %v1389_v19 = vadd.f32 %v2653_v2, %v875_v11  ;;  %v878_v20 = vmul.f32 %v2651_v1, %v365_v5  ;;  %v879_v21 = vmul.f32 %v2651_v1, %v366_v6  ;;  %v387_v9 = vld [vmem:[%s2644_s11 + $0x600] sm:$0xff]  ;;  %v388_v10 = vld [vmem:[%s2644_s11 + $0x608] sm:$0xff] }
  0xa8   : > { %v880_v22 = vmul.f32 %v2651_v1, %v367_v7  ;;  %1899 = vst [vmem:[%s2683_s25 + $0x528] sm:$0xff] %v1387_v14  ;;  %1900 = vst [vmem:[%s2683_s25 + $0x530] sm:$0xff] %v1388_v15  ;;  %v1390_v25 = vadd.f32 %v2653_v2, %v876_v16  ;;  %v1391_v26 = vadd.f32 %v2653_v2, %v877_v17  ;;  %v389_v15 = vld [vmem:[%s2644_s11 + $0x610] sm:$0xff]  ;;  %v390_v16 = vld [vmem:[%s2644_s11 + $0x618] sm:$0xff] }
  0xa9   : > { %v881_v27 = vmul.f32 %v2651_v1, %v368_v12  ;;  %v882_v28 = vmul.f32 %v2651_v1, %v369_v13  ;;  %1901 = vst [vmem:[%s2683_s25 + $0x538] sm:$0xff] %v1389_v19  ;;  %v1392_v32 = vadd.f32 %v2653_v2, %v878_v20  ;;  %v1393_v33 = vadd.f32 %v2653_v2, %v879_v21  ;;  %v391_v17 = vld [vmem:[%s2644_s11 + $0x620] sm:$0xff] }
  0xaa   : > { %v1394_v34 = vadd.f32 %v2653_v2, %v880_v22  ;;  %v883_v35 = vmul.f32 %v2651_v1, %v370_v18  ;;  %1902 = vst [vmem:[%s2683_s25 + $0x540] sm:$0xff] %v1390_v25  ;;  %1903 = vst [vmem:[%s2683_s25 + $0x548] sm:$0xff] %v1391_v26  ;;  %v884_v40 = vmul.f32 %v2651_v1, %v371_v23  ;;  %v392_v22 = vld [vmem:[%s2644_s11 + $0x628] sm:$0xff]  ;;  %v393_v23 = vld [vmem:[%s2644_s11 + $0x630] sm:$0xff] }
  0xab   : > { %v1395_v38 = vadd.f32 %v2653_v2, %v881_v27  ;;  %v1396_v39 = vadd.f32 %v2653_v2, %v882_v28  ;;  %v885_v41 = vmul.f32 %v2651_v1, %v372_v24  ;;  %1904 = vst [vmem:[%s2683_s25 + $0x550] sm:$0xff] %v1392_v32  ;;  %1905 = vst [vmem:[%s2683_s25 + $0x558] sm:$0xff] %v1393_v33  ;;  %v394_v28 = vld [vmem:[%s2644_s11 + $0x638] sm:$0xff]  ;;  %v395_v33 = vld [vmem:[%s2644_s11 + $0x640] sm:$0xff] }
  0xac   : > { %1906 = vst [vmem:[%s2683_s25 + $0x560] sm:$0xff] %v1394_v34  ;;  %v1397_v43 = vadd.f32 %v2653_v2, %v883_v35  ;;  %v886_v44 = vmul.f32 %v2651_v1, %v373_v29  ;;  %v887_v45 = vmul.f32 %v2651_v1, %v374_v30  ;;  %v888_v46 = vmul.f32 %v2651_v1, %v375_v31  ;;  %v396_v34 = vld [vmem:[%s2644_s11 + $0x648] sm:$0xff] }
  0xad   : > { %1907 = vst [vmem:[%s2683_s25 + $0x568] sm:$0xff] %v1395_v38  ;;  %1908 = vst [vmem:[%s2683_s25 + $0x570] sm:$0xff] %v1396_v39  ;;  %v1398_v49 = vadd.f32 %v2653_v2, %v884_v40  ;;  %v1399_v50 = vadd.f32 %v2653_v2, %v885_v41  ;;  %v889_v51 = vmul.f32 %v2651_v1, %v376_v36  ;;  %v397_v39 = vld [vmem:[%s2644_s11 + $0x650] sm:$0xff]  ;;  %v398_v40 = vld [vmem:[%s2644_s11 + $0x658] sm:$0xff] }
  0xae   : > { %v890_v52 = vmul.f32 %v2651_v1, %v377_v37  ;;  %1909 = vst [vmem:[%s2683_s25 + $0x578] sm:$0xff] %v1397_v43  ;;  %v1400_v56 = vadd.f32 %v2653_v2, %v886_v44  ;;  %v1401_v57 = vadd.f32 %v2653_v2, %v887_v45  ;;  %v1402_v58 = vadd.f32 %v2653_v2, %v888_v46  ;;  %v399_v41 = vld [vmem:[%s2644_s11 + $0x660] sm:$0xff]  ;;  %v400_v46 = vld [vmem:[%s2644_s11 + $0x668] sm:$0xff] }
  0xaf   : > { %v891_v59 = vmul.f32 %v2651_v1, %v378_v42  ;;  %1910 = vst [vmem:[%s2683_s25 + $0x580] sm:$0xff] %v1398_v49  ;;  %1911 = vst [vmem:[%s2683_s25 + $0x588] sm:$0xff] %v1399_v50  ;;  %v1403_v62 = vadd.f32 %v2653_v2, %v889_v51  ;;  %v892_v0 = vmul.f32 %v2651_v1, %v379_v47  ;;  %v401_v47 = vld [vmem:[%s2644_s11 + $0x670] sm:$0xff] }
  0xb0   : > { %v1404_v63 = vadd.f32 %v2653_v2, %v890_v52  ;;  %v893_v3 = vmul.f32 %v2651_v1, %v380_v48  ;;  %1912 = vst [vmem:[%s2683_s25 + $0x590] sm:$0xff] %v1400_v56  ;;  %1913 = vst [vmem:[%s2683_s25 + $0x598] sm:$0xff] %v1401_v57  ;;  %v894_v6 = vmul.f32 %v2651_v1, %v381_v53  ;;  %v402_v52 = vld [vmem:[%s2644_s11 + $0x678] sm:$0xff]  ;;  %v403_v57 = vld [vmem:[%s2644_s11 + $0x680] sm:$0xff] }
  0xb1   : > { %1914 = vst [vmem:[%s2683_s25 + $0x5a0] sm:$0xff] %v1402_v58  ;;  %v1405_v5 = vadd.f32 %v2653_v2, %v891_v59  ;;  %v895_v7 = vmul.f32 %v2651_v1, %v382_v54  ;;  %v896_v8 = vmul.f32 %v2651_v1, %v383_v55  ;;  %1915 = vst [vmem:[%s2683_s25 + $0x5a8] sm:$0xff] %v1403_v62  ;;  %v404_v58 = vld [vmem:[%s2644_s11 + $0x688] sm:$0xff] }
  0xb2   : > { %1916 = vst [vmem:[%s2683_s25 + $0x5b0] sm:$0xff] %v1404_v63  ;;  %v1406_v11 = vadd.f32 %v2653_v2, %v892_v0  ;;  %v1407_v12 = vadd.f32 %v2653_v2, %v893_v3  ;;  %v897_v13 = vmul.f32 %v2651_v1, %v384_v60  ;;  %v898_v14 = vmul.f32 %v2651_v1, %v385_v61  ;;  %v405_v63 = vld [vmem:[%s2644_s11 + $0x690] sm:$0xff]  ;;  %v406_v0 = vld [vmem:[%s2644_s11 + $0x698] sm:$0xff]  ;;  %v407_v3 = vld [vmem:[%s2644_s11 + $0x6a0] sm:$0xff] }
  0xb3   : > { %1917 = vst [vmem:[%s2683_s25 + $0x5b8] sm:$0xff] %v1405_v5  ;;  %v1408_v18 = vadd.f32 %v2653_v2, %v894_v6  ;;  %v1409_v19 = vadd.f32 %v2653_v2, %v895_v7  ;;  %v1410_v20 = vadd.f32 %v2653_v2, %v896_v8  ;;  %v899_v21 = vmul.f32 %v2651_v1, %v386_v4  ;;  %v408_v8 = vld [vmem:[%s2644_s11 + $0x6a8] sm:$0xff] }
  0xb4   : > { %1918 = vst [vmem:[%s2683_s25 + $0x5c0] sm:$0xff] %v1406_v11  ;;  %1919 = vst [vmem:[%s2683_s25 + $0x5c8] sm:$0xff] %v1407_v12  ;;  %v1411_v24 = vadd.f32 %v2653_v2, %v897_v13  ;;  %v1412_v25 = vadd.f32 %v2653_v2, %v898_v14  ;;  %v900_v26 = vmul.f32 %v2651_v1, %v387_v9  ;;  %v409_v9 = vld [vmem:[%s2644_s11 + $0x6b0] sm:$0xff]  ;;  %v410_v14 = vld [vmem:[%s2644_s11 + $0x6b8] sm:$0xff] }
  0xb5   : > { %v901_v27 = vmul.f32 %v2651_v1, %v388_v10  ;;  %1920 = vst [vmem:[%s2683_s25 + $0x5d0] sm:$0xff] %v1408_v18  ;;  %1921 = vst [vmem:[%s2683_s25 + $0x5d8] sm:$0xff] %v1409_v19  ;;  %v1413_v29 = vadd.f32 %v2653_v2, %v899_v21  ;;  %v902_v30 = vmul.f32 %v2651_v1, %v389_v15  ;;  %v411_v19 = vld [vmem:[%s2644_s11 + $0x6c0] sm:$0xff] }
  0xb6   : > { %1922 = vst [vmem:[%s2683_s25 + $0x5e0] sm:$0xff] %v1410_v20  ;;  %v903_v31 = vmul.f32 %v2651_v1, %v390_v16  ;;  %v904_v32 = vmul.f32 %v2651_v1, %v391_v17  ;;  %1923 = vst [vmem:[%s2683_s25 + $0x5e8] sm:$0xff] %v1411_v24  ;;  %v1414_v35 = vadd.f32 %v2653_v2, %v900_v26  ;;  %v412_v20 = vld [vmem:[%s2644_s11 + $0x6c8] sm:$0xff]  ;;  %v414_v26 = vld [vmem:[%s2644_s11 + $0x6d8] sm:$0xff] }
  0xb7   : > { %1924 = vst [vmem:[%s2683_s25 + $0x5f0] sm:$0xff] %v1412_v25  ;;  %v1415_v36 = vadd.f32 %v2653_v2, %v901_v27  ;;  %v905_v37 = vmul.f32 %v2651_v1, %v392_v22  ;;  %v906_v38 = vmul.f32 %v2651_v1, %v393_v23  ;;  %1925 = vst [vmem:[%s2683_s25 + $0x5f8] sm:$0xff] %v1413_v29  ;;  %v413_v25 = vld [vmem:[%s2644_s11 + $0x6d0] sm:$0xff]  ;;  %v415_v27 = vld [vmem:[%s2644_s11 + $0x6e0] sm:$0xff] }
  0xb8   : > { %v1416_v42 = vadd.f32 %v2653_v2, %v902_v30  ;;  %v1417_v43 = vadd.f32 %v2653_v2, %v903_v31  ;;  %v1418_v44 = vadd.f32 %v2653_v2, %v904_v32  ;;  %v907_v45 = vmul.f32 %v2651_v1, %v394_v28  ;;  %1926 = vst [vmem:[%s2683_s25 + $0x600] sm:$0xff] %v1414_v35  ;;  %v416_v32 = vld [vmem:[%s2644_s11 + $0x6e8] sm:$0xff] }
  0xb9   : > { %1927 = vst [vmem:[%s2683_s25 + $0x608] sm:$0xff] %v1415_v36  ;;  %v1419_v48 = vadd.f32 %v2653_v2, %v905_v37  ;;  %v1420_v49 = vadd.f32 %v2653_v2, %v906_v38  ;;  %v908_v50 = vmul.f32 %v2651_v1, %v395_v33  ;;  %v909_v51 = vmul.f32 %v2651_v1, %v396_v34  ;;  %v417_v33 = vld [vmem:[%s2644_s11 + $0x6f0] sm:$0xff]  ;;  %v418_v38 = vld [vmem:[%s2644_s11 + $0x6f8] sm:$0xff] }
  0xba   : > { %1928 = vst [vmem:[%s2683_s25 + $0x610] sm:$0xff] %v1416_v42  ;;  %1929 = vst [vmem:[%s2683_s25 + $0x618] sm:$0xff] %v1417_v43  ;;  %v1421_v53 = vadd.f32 %v2653_v2, %v907_v45  ;;  %v910_v54 = vmul.f32 %v2651_v1, %v397_v39  ;;  %v911_v55 = vmul.f32 %v2651_v1, %v398_v40  ;;  %v419_v43 = vld [vmem:[%s2644_s11 + $0x700] sm:$0xff] }
  0xbb   : > { %1930 = vst [vmem:[%s2683_s25 + $0x620] sm:$0xff] %v1418_v44  ;;  %v912_v56 = vmul.f32 %v2651_v1, %v399_v41  ;;  %1931 = vst [vmem:[%s2683_s25 + $0x628] sm:$0xff] %v1419_v48  ;;  %v1422_v59 = vadd.f32 %v2653_v2, %v908_v50  ;;  %v1423_v60 = vadd.f32 %v2653_v2, %v909_v51  ;;  %v420_v44 = vld [vmem:[%s2644_s11 + $0x708] sm:$0xff]  ;;  %v422_v50 = vld [vmem:[%s2644_s11 + $0x718] sm:$0xff] }
  0xbc   : > { %1932 = vst [vmem:[%s2683_s25 + $0x630] sm:$0xff] %v1420_v49  ;;  %v913_v61 = vmul.f32 %v2651_v1, %v400_v46  ;;  %v914_v62 = vmul.f32 %v2651_v1, %v401_v47  ;;  %1933 = vst [vmem:[%s2683_s25 + $0x638] sm:$0xff] %v1421_v53  ;;  %v1424_v4 = vadd.f32 %v2653_v2, %v910_v54  ;;  %v421_v49 = vld [vmem:[%s2644_s11 + $0x710] sm:$0xff]  ;;  %v423_v51 = vld [vmem:[%s2644_s11 + $0x720] sm:$0xff] }
  0xbd   : > { %v1425_v5 = vadd.f32 %v2653_v2, %v911_v55  ;;  %v1426_v6 = vadd.f32 %v2653_v2, %v912_v56  ;;  %v915_v7 = vmul.f32 %v2651_v1, %v402_v52  ;;  %1934 = vst [vmem:[%s2683_s25 + $0x640] sm:$0xff] %v1422_v59  ;;  %1935 = vst [vmem:[%s2683_s25 + $0x648] sm:$0xff] %v1423_v60  ;;  %v424_v56 = vld [vmem:[%s2644_s11 + $0x728] sm:$0xff] }
  0xbe   : > { %v1427_v10 = vadd.f32 %v2653_v2, %v913_v61  ;;  %v1428_v11 = vadd.f32 %v2653_v2, %v914_v62  ;;  %v916_v12 = vmul.f32 %v2651_v1, %v403_v57  ;;  %v917_v13 = vmul.f32 %v2651_v1, %v404_v58  ;;  %1936 = vst [vmem:[%s2683_s25 + $0x650] sm:$0xff] %v1424_v4  ;;  %v425_v57 = vld [vmem:[%s2644_s11 + $0x730] sm:$0xff]  ;;  %v426_v62 = vld [vmem:[%s2644_s11 + $0x738] sm:$0xff] }
  0xbf   : > { %1937 = vst [vmem:[%s2683_s25 + $0x658] sm:$0xff] %v1425_v5  ;;  %1938 = vst [vmem:[%s2683_s25 + $0x660] sm:$0xff] %v1426_v6  ;;  %v1429_v15 = vadd.f32 %v2653_v2, %v915_v7  ;;  %v918_v16 = vmul.f32 %v2651_v1, %v405_v63  ;;  %v919_v17 = vmul.f32 %v2651_v1, %v406_v0  ;;  %v427_v5 = vld [vmem:[%s2644_s11 + $0x740] sm:$0xff]  ;;  %v428_v6 = vld [vmem:[%s2644_s11 + $0x748] sm:$0xff] }
  0xc0   : > { %v920_v18 = vmul.f32 %v2651_v1, %v407_v3  ;;  %1939 = vst [vmem:[%s2683_s25 + $0x668] sm:$0xff] %v1427_v10  ;;  %1940 = vst [vmem:[%s2683_s25 + $0x670] sm:$0xff] %v1428_v11  ;;  %v1430_v21 = vadd.f32 %v2653_v2, %v916_v12  ;;  %v1431_v22 = vadd.f32 %v2653_v2, %v917_v13  ;;  %v429_v11 = vld [vmem:[%s2644_s11 + $0x750] sm:$0xff]  ;;  %v430_v12 = vld [vmem:[%s2644_s11 + $0x758] sm:$0xff] }
  0xc1   : > { %v921_v23 = vmul.f32 %v2651_v1, %v408_v8  ;;  %v922_v24 = vmul.f32 %v2651_v1, %v409_v9  ;;  %1941 = vst [vmem:[%s2683_s25 + $0x678] sm:$0xff] %v1429_v15  ;;  %v1432_v28 = vadd.f32 %v2653_v2, %v918_v16  ;;  %v1433_v29 = vadd.f32 %v2653_v2, %v919_v17  ;;  %v431_v13 = vld [vmem:[%s2644_s11 + $0x760] sm:$0xff] }
  0xc2   : > { %v1434_v30 = vadd.f32 %v2653_v2, %v920_v18  ;;  %v923_v31 = vmul.f32 %v2651_v1, %v410_v14  ;;  %1942 = vst [vmem:[%s2683_s25 + $0x680] sm:$0xff] %v1430_v21  ;;  %1943 = vst [vmem:[%s2683_s25 + $0x688] sm:$0xff] %v1431_v22  ;;  %v924_v36 = vmul.f32 %v2651_v1, %v411_v19  ;;  %v432_v18 = vld [vmem:[%s2644_s11 + $0x768] sm:$0xff]  ;;  %v433_v19 = vld [vmem:[%s2644_s11 + $0x770] sm:$0xff] }
  0xc3   : > { %v1435_v34 = vadd.f32 %v2653_v2, %v921_v23  ;;  %v1436_v35 = vadd.f32 %v2653_v2, %v922_v24  ;;  %v925_v37 = vmul.f32 %v2651_v1, %v412_v20  ;;  %1944 = vst [vmem:[%s2683_s25 + $0x690] sm:$0xff] %v1432_v28  ;;  %1945 = vst [vmem:[%s2683_s25 + $0x698] sm:$0xff] %v1433_v29  ;;  %v434_v24 = vld [vmem:[%s2644_s11 + $0x778] sm:$0xff]  ;;  %v435_v29 = vld [vmem:[%s2644_s11 + $0x780] sm:$0xff] }
  0xc4   : > { %1946 = vst [vmem:[%s2683_s25 + $0x6a0] sm:$0xff] %v1434_v30  ;;  %v1437_v39 = vadd.f32 %v2653_v2, %v923_v31  ;;  %v926_v40 = vmul.f32 %v2651_v1, %v413_v25  ;;  %v927_v41 = vmul.f32 %v2651_v1, %v414_v26  ;;  %v928_v42 = vmul.f32 %v2651_v1, %v415_v27  ;;  %v436_v30 = vld [vmem:[%s2644_s11 + $0x788] sm:$0xff] }
  0xc5   : > { %1947 = vst [vmem:[%s2683_s25 + $0x6a8] sm:$0xff] %v1435_v34  ;;  %1948 = vst [vmem:[%s2683_s25 + $0x6b0] sm:$0xff] %v1436_v35  ;;  %v1438_v45 = vadd.f32 %v2653_v2, %v924_v36  ;;  %v1439_v46 = vadd.f32 %v2653_v2, %v925_v37  ;;  %v929_v47 = vmul.f32 %v2651_v1, %v416_v32  ;;  %v437_v35 = vld [vmem:[%s2644_s11 + $0x790] sm:$0xff]  ;;  %v438_v36 = vld [vmem:[%s2644_s11 + $0x798] sm:$0xff] }
  0xc6   : > { %v930_v48 = vmul.f32 %v2651_v1, %v417_v33  ;;  %1949 = vst [vmem:[%s2683_s25 + $0x6b8] sm:$0xff] %v1437_v39  ;;  %v1440_v52 = vadd.f32 %v2653_v2, %v926_v40  ;;  %v1441_v53 = vadd.f32 %v2653_v2, %v927_v41  ;;  %v1442_v54 = vadd.f32 %v2653_v2, %v928_v42  ;;  %v439_v37 = vld [vmem:[%s2644_s11 + $0x7a0] sm:$0xff]  ;;  %v440_v42 = vld [vmem:[%s2644_s11 + $0x7a8] sm:$0xff] }
  0xc7   : > { %v931_v55 = vmul.f32 %v2651_v1, %v418_v38  ;;  %1950 = vst [vmem:[%s2683_s25 + $0x6c0] sm:$0xff] %v1438_v45  ;;  %1951 = vst [vmem:[%s2683_s25 + $0x6c8] sm:$0xff] %v1439_v46  ;;  %v1443_v58 = vadd.f32 %v2653_v2, %v929_v47  ;;  %v932_v60 = vmul.f32 %v2651_v1, %v419_v43  ;;  %v441_v43 = vld [vmem:[%s2644_s11 + $0x7b0] sm:$0xff] }
  0xc8   : > { %v1444_v59 = vadd.f32 %v2653_v2, %v930_v48  ;;  %v933_v61 = vmul.f32 %v2651_v1, %v420_v44  ;;  %1952 = vst [vmem:[%s2683_s25 + $0x6d0] sm:$0xff] %v1440_v52  ;;  %1953 = vst [vmem:[%s2683_s25 + $0x6d8] sm:$0xff] %v1441_v53  ;;  %v934_v0 = vmul.f32 %v2651_v1, %v421_v49  ;;  %v442_v48 = vld [vmem:[%s2644_s11 + $0x7b8] sm:$0xff]  ;;  %v443_v53 = vld [vmem:[%s2644_s11 + $0x7c0] sm:$0xff] }
  0xc9   : > { %1954 = vst [vmem:[%s2683_s25 + $0x6e0] sm:$0xff] %v1442_v54  ;;  %v1445_v63 = vadd.f32 %v2653_v2, %v931_v55  ;;  %v935_v3 = vmul.f32 %v2651_v1, %v422_v50  ;;  %v936_v4 = vmul.f32 %v2651_v1, %v423_v51  ;;  %1955 = vst [vmem:[%s2683_s25 + $0x6e8] sm:$0xff] %v1443_v58  ;;  %v444_v54 = vld [vmem:[%s2644_s11 + $0x7c8] sm:$0xff] }
  0xca   : > { %1956 = vst [vmem:[%s2683_s25 + $0x6f0] sm:$0xff] %v1444_v59  ;;  %v1446_v7 = vadd.f32 %v2653_v2, %v932_v60  ;;  %v1447_v8 = vadd.f32 %v2653_v2, %v933_v61  ;;  %v937_v9 = vmul.f32 %v2651_v1, %v424_v56  ;;  %v938_v10 = vmul.f32 %v2651_v1, %v425_v57  ;;  %v445_v59 = vld [vmem:[%s2644_s11 + $0x7d0] sm:$0xff]  ;;  %v446_v60 = vld [vmem:[%s2644_s11 + $0x7d8] sm:$0xff]  ;;  %v447_v61 = vld [vmem:[%s2644_s11 + $0x7e0] sm:$0xff] }
  0xcb   : > { %1957 = vst [vmem:[%s2683_s25 + $0x6f8] sm:$0xff] %v1445_v63  ;;  %v1448_v14 = vadd.f32 %v2653_v2, %v934_v0  ;;  %v1449_v15 = vadd.f32 %v2653_v2, %v935_v3  ;;  %v1450_v16 = vadd.f32 %v2653_v2, %v936_v4  ;;  %v939_v17 = vmul.f32 %v2651_v1, %v426_v62  ;;  %v448_v4 = vld [vmem:[%s2644_s11 + $0x7e8] sm:$0xff] }
  0xcc   : > { %1958 = vst [vmem:[%s2683_s25 + $0x700] sm:$0xff] %v1446_v7  ;;  %1959 = vst [vmem:[%s2683_s25 + $0x708] sm:$0xff] %v1447_v8  ;;  %v1451_v20 = vadd.f32 %v2653_v2, %v937_v9  ;;  %v1452_v21 = vadd.f32 %v2653_v2, %v938_v10  ;;  %v940_v22 = vmul.f32 %v2651_v1, %v427_v5  ;;  %v449_v5 = vld [vmem:[%s2644_s11 + $0x7f0] sm:$0xff]  ;;  %v450_v10 = vld [vmem:[%s2644_s11 + $0x7f8] sm:$0xff] }
  0xcd   : > { %v941_v23 = vmul.f32 %v2651_v1, %v428_v6  ;;  %1960 = vst [vmem:[%s2683_s25 + $0x710] sm:$0xff] %v1448_v14  ;;  %1961 = vst [vmem:[%s2683_s25 + $0x718] sm:$0xff] %v1449_v15  ;;  %v1453_v25 = vadd.f32 %v2653_v2, %v939_v17  ;;  %v942_v26 = vmul.f32 %v2651_v1, %v429_v11  ;;  %v451_v15 = vld [vmem:[%s2644_s11 + $0x800] sm:$0xff] }
  0xce   : > { %1962 = vst [vmem:[%s2683_s25 + $0x720] sm:$0xff] %v1450_v16  ;;  %v943_v27 = vmul.f32 %v2651_v1, %v430_v12  ;;  %v944_v28 = vmul.f32 %v2651_v1, %v431_v13  ;;  %1963 = vst [vmem:[%s2683_s25 + $0x728] sm:$0xff] %v1451_v20  ;;  %v1454_v31 = vadd.f32 %v2653_v2, %v940_v22  ;;  %v452_v16 = vld [vmem:[%s2644_s11 + $0x808] sm:$0xff]  ;;  %v454_v22 = vld [vmem:[%s2644_s11 + $0x818] sm:$0xff] }
  0xcf   : > { %1964 = vst [vmem:[%s2683_s25 + $0x730] sm:$0xff] %v1452_v21  ;;  %v1455_v32 = vadd.f32 %v2653_v2, %v941_v23  ;;  %v945_v33 = vmul.f32 %v2651_v1, %v432_v18  ;;  %v946_v34 = vmul.f32 %v2651_v1, %v433_v19  ;;  %1965 = vst [vmem:[%s2683_s25 + $0x738] sm:$0xff] %v1453_v25  ;;  %v453_v21 = vld [vmem:[%s2644_s11 + $0x810] sm:$0xff]  ;;  %v455_v23 = vld [vmem:[%s2644_s11 + $0x820] sm:$0xff] }
  0xd0   : > { %v1456_v38 = vadd.f32 %v2653_v2, %v942_v26  ;;  %v1457_v39 = vadd.f32 %v2653_v2, %v943_v27  ;;  %v1458_v40 = vadd.f32 %v2653_v2, %v944_v28  ;;  %v947_v41 = vmul.f32 %v2651_v1, %v434_v24  ;;  %1966 = vst [vmem:[%s2683_s25 + $0x740] sm:$0xff] %v1454_v31  ;;  %v456_v28 = vld [vmem:[%s2644_s11 + $0x828] sm:$0xff] }
  0xd1   : > { %1967 = vst [vmem:[%s2683_s25 + $0x748] sm:$0xff] %v1455_v32  ;;  %v1459_v44 = vadd.f32 %v2653_v2, %v945_v33  ;;  %v1460_v45 = vadd.f32 %v2653_v2, %v946_v34  ;;  %v948_v46 = vmul.f32 %v2651_v1, %v435_v29  ;;  %v949_v47 = vmul.f32 %v2651_v1, %v436_v30  ;;  %v457_v29 = vld [vmem:[%s2644_s11 + $0x830] sm:$0xff]  ;;  %v458_v34 = vld [vmem:[%s2644_s11 + $0x838] sm:$0xff] }
  0xd2   : > { %1968 = vst [vmem:[%s2683_s25 + $0x750] sm:$0xff] %v1456_v38  ;;  %1969 = vst [vmem:[%s2683_s25 + $0x758] sm:$0xff] %v1457_v39  ;;  %v1461_v49 = vadd.f32 %v2653_v2, %v947_v41  ;;  %v950_v50 = vmul.f32 %v2651_v1, %v437_v35  ;;  %v951_v51 = vmul.f32 %v2651_v1, %v438_v36  ;;  %v459_v39 = vld [vmem:[%s2644_s11 + $0x840] sm:$0xff] }
  0xd3   : > { %1970 = vst [vmem:[%s2683_s25 + $0x760] sm:$0xff] %v1458_v40  ;;  %v952_v52 = vmul.f32 %v2651_v1, %v439_v37  ;;  %1971 = vst [vmem:[%s2683_s25 + $0x768] sm:$0xff] %v1459_v44  ;;  %v1462_v55 = vadd.f32 %v2653_v2, %v948_v46  ;;  %v1463_v56 = vadd.f32 %v2653_v2, %v949_v47  ;;  %v460_v40 = vld [vmem:[%s2644_s11 + $0x848] sm:$0xff]  ;;  %v462_v46 = vld [vmem:[%s2644_s11 + $0x858] sm:$0xff] }
  0xd4   : > { %1972 = vst [vmem:[%s2683_s25 + $0x770] sm:$0xff] %v1460_v45  ;;  %v953_v57 = vmul.f32 %v2651_v1, %v440_v42  ;;  %v954_v58 = vmul.f32 %v2651_v1, %v441_v43  ;;  %1973 = vst [vmem:[%s2683_s25 + $0x778] sm:$0xff] %v1461_v49  ;;  %v1464_v62 = vadd.f32 %v2653_v2, %v950_v50  ;;  %v461_v45 = vld [vmem:[%s2644_s11 + $0x850] sm:$0xff]  ;;  %v463_v47 = vld [vmem:[%s2644_s11 + $0x860] sm:$0xff] }
  0xd5   : > { %v1465_v63 = vadd.f32 %v2653_v2, %v951_v51  ;;  %v1466_v0 = vadd.f32 %v2653_v2, %v952_v52  ;;  %v955_v3 = vmul.f32 %v2651_v1, %v442_v48  ;;  %1974 = vst [vmem:[%s2683_s25 + $0x780] sm:$0xff] %v1462_v55  ;;  %1975 = vst [vmem:[%s2683_s25 + $0x788] sm:$0xff] %v1463_v56  ;;  %v464_v52 = vld [vmem:[%s2644_s11 + $0x868] sm:$0xff] }
  0xd6   : > { %v1467_v6 = vadd.f32 %v2653_v2, %v953_v57  ;;  %v1468_v7 = vadd.f32 %v2653_v2, %v954_v58  ;;  %v956_v8 = vmul.f32 %v2651_v1, %v443_v53  ;;  %v957_v9 = vmul.f32 %v2651_v1, %v444_v54  ;;  %1976 = vst [vmem:[%s2683_s25 + $0x790] sm:$0xff] %v1464_v62  ;;  %v465_v53 = vld [vmem:[%s2644_s11 + $0x870] sm:$0xff]  ;;  %v466_v58 = vld [vmem:[%s2644_s11 + $0x878] sm:$0xff] }
  0xd7   : > { %1977 = vst [vmem:[%s2683_s25 + $0x798] sm:$0xff] %v1465_v63  ;;  %1978 = vst [vmem:[%s2683_s25 + $0x7a0] sm:$0xff] %v1466_v0  ;;  %v1469_v11 = vadd.f32 %v2653_v2, %v955_v3  ;;  %v958_v12 = vmul.f32 %v2651_v1, %v445_v59  ;;  %v959_v13 = vmul.f32 %v2651_v1, %v446_v60  ;;  %v467_v63 = vld [vmem:[%s2644_s11 + $0x880] sm:$0xff]  ;;  %v468_v0 = vld [vmem:[%s2644_s11 + $0x888] sm:$0xff] }
  0xd8   : > { %v960_v14 = vmul.f32 %v2651_v1, %v447_v61  ;;  %1979 = vst [vmem:[%s2683_s25 + $0x7a8] sm:$0xff] %v1467_v6  ;;  %1980 = vst [vmem:[%s2683_s25 + $0x7b0] sm:$0xff] %v1468_v7  ;;  %v1470_v17 = vadd.f32 %v2653_v2, %v956_v8  ;;  %v1471_v18 = vadd.f32 %v2653_v2, %v957_v9  ;;  %v469_v7 = vld [vmem:[%s2644_s11 + $0x890] sm:$0xff]  ;;  %v470_v8 = vld [vmem:[%s2644_s11 + $0x898] sm:$0xff] }
  0xd9   : > { %v961_v19 = vmul.f32 %v2651_v1, %v448_v4  ;;  %v962_v20 = vmul.f32 %v2651_v1, %v449_v5  ;;  %1981 = vst [vmem:[%s2683_s25 + $0x7b8] sm:$0xff] %v1469_v11  ;;  %v1472_v24 = vadd.f32 %v2653_v2, %v958_v12  ;;  %v1473_v25 = vadd.f32 %v2653_v2, %v959_v13  ;;  %v471_v9 = vld [vmem:[%s2644_s11 + $0x8a0] sm:$0xff] }
  0xda   : > { %v1474_v26 = vadd.f32 %v2653_v2, %v960_v14  ;;  %v963_v27 = vmul.f32 %v2651_v1, %v450_v10  ;;  %1982 = vst [vmem:[%s2683_s25 + $0x7c0] sm:$0xff] %v1470_v17  ;;  %1983 = vst [vmem:[%s2683_s25 + $0x7c8] sm:$0xff] %v1471_v18  ;;  %v964_v32 = vmul.f32 %v2651_v1, %v451_v15  ;;  %v472_v14 = vld [vmem:[%s2644_s11 + $0x8a8] sm:$0xff]  ;;  %v473_v15 = vld [vmem:[%s2644_s11 + $0x8b0] sm:$0xff] }
  0xdb   : > { %v1475_v30 = vadd.f32 %v2653_v2, %v961_v19  ;;  %v1476_v31 = vadd.f32 %v2653_v2, %v962_v20  ;;  %v965_v33 = vmul.f32 %v2651_v1, %v452_v16  ;;  %1984 = vst [vmem:[%s2683_s25 + $0x7d0] sm:$0xff] %v1472_v24  ;;  %1985 = vst [vmem:[%s2683_s25 + $0x7d8] sm:$0xff] %v1473_v25  ;;  %v474_v20 = vld [vmem:[%s2644_s11 + $0x8b8] sm:$0xff]  ;;  %v475_v25 = vld [vmem:[%s2644_s11 + $0x8c0] sm:$0xff] }
  0xdc   : > { %1986 = vst [vmem:[%s2683_s25 + $0x7e0] sm:$0xff] %v1474_v26  ;;  %v1477_v35 = vadd.f32 %v2653_v2, %v963_v27  ;;  %v966_v36 = vmul.f32 %v2651_v1, %v453_v21  ;;  %v967_v37 = vmul.f32 %v2651_v1, %v454_v22  ;;  %v968_v38 = vmul.f32 %v2651_v1, %v455_v23  ;;  %v476_v26 = vld [vmem:[%s2644_s11 + $0x8c8] sm:$0xff] }
  0xdd   : > { %1987 = vst [vmem:[%s2683_s25 + $0x7e8] sm:$0xff] %v1475_v30  ;;  %1988 = vst [vmem:[%s2683_s25 + $0x7f0] sm:$0xff] %v1476_v31  ;;  %v1478_v41 = vadd.f32 %v2653_v2, %v964_v32  ;;  %v1479_v42 = vadd.f32 %v2653_v2, %v965_v33  ;;  %v969_v43 = vmul.f32 %v2651_v1, %v456_v28  ;;  %v477_v31 = vld [vmem:[%s2644_s11 + $0x8d0] sm:$0xff]  ;;  %v478_v32 = vld [vmem:[%s2644_s11 + $0x8d8] sm:$0xff] }
  0xde   : > { %v970_v44 = vmul.f32 %v2651_v1, %v457_v29  ;;  %1989 = vst [vmem:[%s2683_s25 + $0x7f8] sm:$0xff] %v1477_v35  ;;  %v1480_v48 = vadd.f32 %v2653_v2, %v966_v36  ;;  %v1481_v49 = vadd.f32 %v2653_v2, %v967_v37  ;;  %v1482_v50 = vadd.f32 %v2653_v2, %v968_v38  ;;  %v479_v33 = vld [vmem:[%s2644_s11 + $0x8e0] sm:$0xff]  ;;  %v480_v38 = vld [vmem:[%s2644_s11 + $0x8e8] sm:$0xff] }
  0xdf   : > { %v971_v51 = vmul.f32 %v2651_v1, %v458_v34  ;;  %1990 = vst [vmem:[%s2683_s25 + $0x800] sm:$0xff] %v1478_v41  ;;  %1991 = vst [vmem:[%s2683_s25 + $0x808] sm:$0xff] %v1479_v42  ;;  %v1483_v54 = vadd.f32 %v2653_v2, %v969_v43  ;;  %v972_v56 = vmul.f32 %v2651_v1, %v459_v39  ;;  %v481_v39 = vld [vmem:[%s2644_s11 + $0x8f0] sm:$0xff] }
  0xe0   : > { %v1484_v55 = vadd.f32 %v2653_v2, %v970_v44  ;;  %v973_v57 = vmul.f32 %v2651_v1, %v460_v40  ;;  %1992 = vst [vmem:[%s2683_s25 + $0x810] sm:$0xff] %v1480_v48  ;;  %1993 = vst [vmem:[%s2683_s25 + $0x818] sm:$0xff] %v1481_v49  ;;  %v974_v60 = vmul.f32 %v2651_v1, %v461_v45  ;;  %v482_v44 = vld [vmem:[%s2644_s11 + $0x8f8] sm:$0xff]  ;;  %v483_v49 = vld [vmem:[%s2644_s11 + $0x900] sm:$0xff] }
  0xe1   : > { %1994 = vst [vmem:[%s2683_s25 + $0x820] sm:$0xff] %v1482_v50  ;;  %v1485_v59 = vadd.f32 %v2653_v2, %v971_v51  ;;  %v975_v61 = vmul.f32 %v2651_v1, %v462_v46  ;;  %v976_v62 = vmul.f32 %v2651_v1, %v463_v47  ;;  %1995 = vst [vmem:[%s2683_s25 + $0x828] sm:$0xff] %v1483_v54  ;;  %v484_v50 = vld [vmem:[%s2644_s11 + $0x908] sm:$0xff] }
  0xe2   : > { %1996 = vst [vmem:[%s2683_s25 + $0x830] sm:$0xff] %v1484_v55  ;;  %v1486_v3 = vadd.f32 %v2653_v2, %v972_v56  ;;  %v1487_v4 = vadd.f32 %v2653_v2, %v973_v57  ;;  %v977_v5 = vmul.f32 %v2651_v1, %v464_v52  ;;  %v978_v6 = vmul.f32 %v2651_v1, %v465_v53  ;;  %v485_v55 = vld [vmem:[%s2644_s11 + $0x910] sm:$0xff]  ;;  %v486_v56 = vld [vmem:[%s2644_s11 + $0x918] sm:$0xff]  ;;  %v487_v57 = vld [vmem:[%s2644_s11 + $0x920] sm:$0xff] }
  0xe3   : > { %1997 = vst [vmem:[%s2683_s25 + $0x838] sm:$0xff] %v1485_v59  ;;  %v1488_v10 = vadd.f32 %v2653_v2, %v974_v60  ;;  %v1489_v11 = vadd.f32 %v2653_v2, %v975_v61  ;;  %v1490_v12 = vadd.f32 %v2653_v2, %v976_v62  ;;  %v979_v13 = vmul.f32 %v2651_v1, %v466_v58  ;;  %v488_v62 = vld [vmem:[%s2644_s11 + $0x928] sm:$0xff] }
  0xe4   : > { %1998 = vst [vmem:[%s2683_s25 + $0x840] sm:$0xff] %v1486_v3  ;;  %1999 = vst [vmem:[%s2683_s25 + $0x848] sm:$0xff] %v1487_v4  ;;  %v1491_v16 = vadd.f32 %v2653_v2, %v977_v5  ;;  %v1492_v17 = vadd.f32 %v2653_v2, %v978_v6  ;;  %v980_v18 = vmul.f32 %v2651_v1, %v467_v63  ;;  %v489_v63 = vld [vmem:[%s2644_s11 + $0x930] sm:$0xff]  ;;  %v490_v6 = vld [vmem:[%s2644_s11 + $0x938] sm:$0xff] }
  0xe5   : > { %v981_v19 = vmul.f32 %v2651_v1, %v468_v0  ;;  %2000 = vst [vmem:[%s2683_s25 + $0x850] sm:$0xff] %v1488_v10  ;;  %2001 = vst [vmem:[%s2683_s25 + $0x858] sm:$0xff] %v1489_v11  ;;  %v1493_v21 = vadd.f32 %v2653_v2, %v979_v13  ;;  %v982_v22 = vmul.f32 %v2651_v1, %v469_v7  ;;  %v491_v11 = vld [vmem:[%s2644_s11 + $0x940] sm:$0xff] }
  0xe6   : > { %2002 = vst [vmem:[%s2683_s25 + $0x860] sm:$0xff] %v1490_v12  ;;  %v983_v23 = vmul.f32 %v2651_v1, %v470_v8  ;;  %v984_v24 = vmul.f32 %v2651_v1, %v471_v9  ;;  %2003 = vst [vmem:[%s2683_s25 + $0x868] sm:$0xff] %v1491_v16  ;;  %v1494_v27 = vadd.f32 %v2653_v2, %v980_v18  ;;  %v492_v12 = vld [vmem:[%s2644_s11 + $0x948] sm:$0xff]  ;;  %v494_v18 = vld [vmem:[%s2644_s11 + $0x958] sm:$0xff] }
  0xe7   : > { %2004 = vst [vmem:[%s2683_s25 + $0x870] sm:$0xff] %v1492_v17  ;;  %v1495_v28 = vadd.f32 %v2653_v2, %v981_v19  ;;  %v985_v29 = vmul.f32 %v2651_v1, %v472_v14  ;;  %v986_v30 = vmul.f32 %v2651_v1, %v473_v15  ;;  %2005 = vst [vmem:[%s2683_s25 + $0x878] sm:$0xff] %v1493_v21  ;;  %v493_v17 = vld [vmem:[%s2644_s11 + $0x950] sm:$0xff]  ;;  %v495_v19 = vld [vmem:[%s2644_s11 + $0x960] sm:$0xff] }
  0xe8   : > { %v1496_v34 = vadd.f32 %v2653_v2, %v982_v22  ;;  %v1497_v35 = vadd.f32 %v2653_v2, %v983_v23  ;;  %v1498_v36 = vadd.f32 %v2653_v2, %v984_v24  ;;  %v987_v37 = vmul.f32 %v2651_v1, %v474_v20  ;;  %2006 = vst [vmem:[%s2683_s25 + $0x880] sm:$0xff] %v1494_v27  ;;  %v496_v24 = vld [vmem:[%s2644_s11 + $0x968] sm:$0xff] }
  0xe9   : > { %2007 = vst [vmem:[%s2683_s25 + $0x888] sm:$0xff] %v1495_v28  ;;  %v1499_v40 = vadd.f32 %v2653_v2, %v985_v29  ;;  %v1500_v41 = vadd.f32 %v2653_v2, %v986_v30  ;;  %v988_v42 = vmul.f32 %v2651_v1, %v475_v25  ;;  %v989_v43 = vmul.f32 %v2651_v1, %v476_v26  ;;  %v497_v25 = vld [vmem:[%s2644_s11 + $0x970] sm:$0xff]  ;;  %v498_v30 = vld [vmem:[%s2644_s11 + $0x978] sm:$0xff] }
  0xea   : > { %2008 = vst [vmem:[%s2683_s25 + $0x890] sm:$0xff] %v1496_v34  ;;  %2009 = vst [vmem:[%s2683_s25 + $0x898] sm:$0xff] %v1497_v35  ;;  %v1501_v45 = vadd.f32 %v2653_v2, %v987_v37  ;;  %v990_v46 = vmul.f32 %v2651_v1, %v477_v31  ;;  %v991_v47 = vmul.f32 %v2651_v1, %v478_v32  ;;  %v499_v35 = vld [vmem:[%s2644_s11 + $0x980] sm:$0xff] }
  0xeb   : > { %2010 = vst [vmem:[%s2683_s25 + $0x8a0] sm:$0xff] %v1498_v36  ;;  %v992_v48 = vmul.f32 %v2651_v1, %v479_v33  ;;  %2011 = vst [vmem:[%s2683_s25 + $0x8a8] sm:$0xff] %v1499_v40  ;;  %v1502_v51 = vadd.f32 %v2653_v2, %v988_v42  ;;  %v1503_v52 = vadd.f32 %v2653_v2, %v989_v43  ;;  %v500_v36 = vld [vmem:[%s2644_s11 + $0x988] sm:$0xff]  ;;  %v502_v42 = vld [vmem:[%s2644_s11 + $0x998] sm:$0xff] }
  0xec   : > { %2012 = vst [vmem:[%s2683_s25 + $0x8b0] sm:$0xff] %v1500_v41  ;;  %v993_v53 = vmul.f32 %v2651_v1, %v480_v38  ;;  %v994_v54 = vmul.f32 %v2651_v1, %v481_v39  ;;  %2013 = vst [vmem:[%s2683_s25 + $0x8b8] sm:$0xff] %v1501_v45  ;;  %v1504_v58 = vadd.f32 %v2653_v2, %v990_v46  ;;  %v501_v41 = vld [vmem:[%s2644_s11 + $0x990] sm:$0xff]  ;;  %v503_v43 = vld [vmem:[%s2644_s11 + $0x9a0] sm:$0xff] }
  0xed   : > { %v1505_v59 = vadd.f32 %v2653_v2, %v991_v47  ;;  %v1506_v60 = vadd.f32 %v2653_v2, %v992_v48  ;;  %v995_v61 = vmul.f32 %v2651_v1, %v482_v44  ;;  %2014 = vst [vmem:[%s2683_s25 + $0x8c0] sm:$0xff] %v1502_v51  ;;  %2015 = vst [vmem:[%s2683_s25 + $0x8c8] sm:$0xff] %v1503_v52  ;;  %v504_v48 = vld [vmem:[%s2644_s11 + $0x9a8] sm:$0xff] }
  0xee   : > { %v1507_v0 = vadd.f32 %v2653_v2, %v993_v53  ;;  %v1508_v3 = vadd.f32 %v2653_v2, %v994_v54  ;;  %v996_v4 = vmul.f32 %v2651_v1, %v483_v49  ;;  %v997_v5 = vmul.f32 %v2651_v1, %v484_v50  ;;  %2016 = vst [vmem:[%s2683_s25 + $0x8d0] sm:$0xff] %v1504_v58  ;;  %v505_v49 = vld [vmem:[%s2644_s11 + $0x9b0] sm:$0xff]  ;;  %v506_v54 = vld [vmem:[%s2644_s11 + $0x9b8] sm:$0xff] }
  0xef   : > { %2017 = vst [vmem:[%s2683_s25 + $0x8d8] sm:$0xff] %v1505_v59  ;;  %2018 = vst [vmem:[%s2683_s25 + $0x8e0] sm:$0xff] %v1506_v60  ;;  %v1509_v7 = vadd.f32 %v2653_v2, %v995_v61  ;;  %v998_v8 = vmul.f32 %v2651_v1, %v485_v55  ;;  %v999_v9 = vmul.f32 %v2651_v1, %v486_v56  ;;  %v507_v59 = vld [vmem:[%s2644_s11 + $0x9c0] sm:$0xff]  ;;  %v508_v60 = vld [vmem:[%s2644_s11 + $0x9c8] sm:$0xff] }
  0xf0   : > { %v1000_v10 = vmul.f32 %v2651_v1, %v487_v57  ;;  %2019 = vst [vmem:[%s2683_s25 + $0x8e8] sm:$0xff] %v1507_v0  ;;  %2020 = vst [vmem:[%s2683_s25 + $0x8f0] sm:$0xff] %v1508_v3  ;;  %v1510_v13 = vadd.f32 %v2653_v2, %v996_v4  ;;  %v1511_v14 = vadd.f32 %v2653_v2, %v997_v5  ;;  %v509_v3 = vld [vmem:[%s2644_s11 + $0x9d0] sm:$0xff]  ;;  %v510_v4 = vld [vmem:[%s2644_s11 + $0x9d8] sm:$0xff] }
  0xf1   : > { %v1001_v15 = vmul.f32 %v2651_v1, %v488_v62  ;;  %v1002_v16 = vmul.f32 %v2651_v1, %v489_v63  ;;  %2021 = vst [vmem:[%s2683_s25 + $0x8f8] sm:$0xff] %v1509_v7  ;;  %v1512_v20 = vadd.f32 %v2653_v2, %v998_v8  ;;  %v1513_v21 = vadd.f32 %v2653_v2, %v999_v9  ;;  %v511_v5 = vld [vmem:[%s2644_s11 + $0x9e0] sm:$0xff] }
  0xf2   : > { %v1514_v22 = vadd.f32 %v2653_v2, %v1000_v10  ;;  %v1003_v23 = vmul.f32 %v2651_v1, %v490_v6  ;;  %2022 = vst [vmem:[%s2683_s25 + $0x900] sm:$0xff] %v1510_v13  ;;  %2023 = vst [vmem:[%s2683_s25 + $0x908] sm:$0xff] %v1511_v14  ;;  %v1004_v28 = vmul.f32 %v2651_v1, %v491_v11  ;;  %v512_v10 = vld [vmem:[%s2644_s11 + $0x9e8] sm:$0xff]  ;;  %v513_v11 = vld [vmem:[%s2644_s11 + $0x9f0] sm:$0xff] }
  0xf3   : > { %v1515_v26 = vadd.f32 %v2653_v2, %v1001_v15  ;;  %v1516_v27 = vadd.f32 %v2653_v2, %v1002_v16  ;;  %v1005_v29 = vmul.f32 %v2651_v1, %v492_v12  ;;  %2024 = vst [vmem:[%s2683_s25 + $0x910] sm:$0xff] %v1512_v20  ;;  %2025 = vst [vmem:[%s2683_s25 + $0x918] sm:$0xff] %v1513_v21  ;;  %v514_v16 = vld [vmem:[%s2644_s11 + $0x9f8] sm:$0xff]  ;;  %v515_v21 = vld [vmem:[%s2644_s11 + $0xa00] sm:$0xff] }
  0xf4   : > { %2026 = vst [vmem:[%s2683_s25 + $0x920] sm:$0xff] %v1514_v22  ;;  %v1517_v31 = vadd.f32 %v2653_v2, %v1003_v23  ;;  %v1006_v32 = vmul.f32 %v2651_v1, %v493_v17  ;;  %v1007_v33 = vmul.f32 %v2651_v1, %v494_v18  ;;  %v1008_v34 = vmul.f32 %v2651_v1, %v495_v19  ;;  %v516_v22 = vld [vmem:[%s2644_s11 + $0xa08] sm:$0xff] }
  0xf5   : > { %2027 = vst [vmem:[%s2683_s25 + $0x928] sm:$0xff] %v1515_v26  ;;  %2028 = vst [vmem:[%s2683_s25 + $0x930] sm:$0xff] %v1516_v27  ;;  %v1518_v37 = vadd.f32 %v2653_v2, %v1004_v28  ;;  %v1519_v38 = vadd.f32 %v2653_v2, %v1005_v29  ;;  %v1009_v39 = vmul.f32 %v2651_v1, %v496_v24  ;;  %v517_v27 = vld [vmem:[%s2644_s11 + $0xa10] sm:$0xff]  ;;  %v518_v28 = vld [vmem:[%s2644_s11 + $0xa18] sm:$0xff] }
  0xf6   : > { %v1010_v40 = vmul.f32 %v2651_v1, %v497_v25  ;;  %2029 = vst [vmem:[%s2683_s25 + $0x938] sm:$0xff] %v1517_v31  ;;  %v1520_v44 = vadd.f32 %v2653_v2, %v1006_v32  ;;  %v1521_v45 = vadd.f32 %v2653_v2, %v1007_v33  ;;  %v1522_v46 = vadd.f32 %v2653_v2, %v1008_v34  ;;  %v519_v29 = vld [vmem:[%s2644_s11 + $0xa20] sm:$0xff]  ;;  %v520_v34 = vld [vmem:[%s2644_s11 + $0xa28] sm:$0xff] }
  0xf7   : > { %v1011_v47 = vmul.f32 %v2651_v1, %v498_v30  ;;  %2030 = vst [vmem:[%s2683_s25 + $0x940] sm:$0xff] %v1518_v37  ;;  %2031 = vst [vmem:[%s2683_s25 + $0x948] sm:$0xff] %v1519_v38  ;;  %v1523_v50 = vadd.f32 %v2653_v2, %v1009_v39  ;;  %v1012_v52 = vmul.f32 %v2651_v1, %v499_v35  ;;  %v521_v35 = vld [vmem:[%s2644_s11 + $0xa30] sm:$0xff] }
  0xf8   : > { %v1524_v51 = vadd.f32 %v2653_v2, %v1010_v40  ;;  %v1013_v53 = vmul.f32 %v2651_v1, %v500_v36  ;;  %2032 = vst [vmem:[%s2683_s25 + $0x950] sm:$0xff] %v1520_v44  ;;  %2033 = vst [vmem:[%s2683_s25 + $0x958] sm:$0xff] %v1521_v45  ;;  %v1014_v56 = vmul.f32 %v2651_v1, %v501_v41  ;;  %v522_v40 = vld [vmem:[%s2644_s11 + $0xa38] sm:$0xff]  ;;  %v523_v45 = vld [vmem:[%s2644_s11 + $0xa40] sm:$0xff] }
  0xf9   : > { %2034 = vst [vmem:[%s2683_s25 + $0x960] sm:$0xff] %v1522_v46  ;;  %v1525_v55 = vadd.f32 %v2653_v2, %v1011_v47  ;;  %v1015_v57 = vmul.f32 %v2651_v1, %v502_v42  ;;  %v1016_v58 = vmul.f32 %v2651_v1, %v503_v43  ;;  %2035 = vst [vmem:[%s2683_s25 + $0x968] sm:$0xff] %v1523_v50  ;;  %v524_v46 = vld [vmem:[%s2644_s11 + $0xa48] sm:$0xff] }
  0xfa   : > { %2036 = vst [vmem:[%s2683_s25 + $0x970] sm:$0xff] %v1524_v51  ;;  %v1526_v61 = vadd.f32 %v2653_v2, %v1012_v52  ;;  %v1527_v62 = vadd.f32 %v2653_v2, %v1013_v53  ;;  %v1017_v63 = vmul.f32 %v2651_v1, %v504_v48  ;;  %v1018_v0 = vmul.f32 %v2651_v1, %v505_v49  ;;  %v525_v51 = vld [vmem:[%s2644_s11 + $0xa50] sm:$0xff]  ;;  %v526_v52 = vld [vmem:[%s2644_s11 + $0xa58] sm:$0xff]  ;;  %v527_v53 = vld [vmem:[%s2644_s11 + $0xa60] sm:$0xff] }
  0xfb   : > { %2037 = vst [vmem:[%s2683_s25 + $0x978] sm:$0xff] %v1525_v55  ;;  %v1528_v6 = vadd.f32 %v2653_v2, %v1014_v56  ;;  %v1529_v7 = vadd.f32 %v2653_v2, %v1015_v57  ;;  %v1530_v8 = vadd.f32 %v2653_v2, %v1016_v58  ;;  %v1019_v9 = vmul.f32 %v2651_v1, %v506_v54  ;;  %v528_v58 = vld [vmem:[%s2644_s11 + $0xa68] sm:$0xff] }
  0xfc   : > { %2038 = vst [vmem:[%s2683_s25 + $0x980] sm:$0xff] %v1526_v61  ;;  %2039 = vst [vmem:[%s2683_s25 + $0x988] sm:$0xff] %v1527_v62  ;;  %v1531_v12 = vadd.f32 %v2653_v2, %v1017_v63  ;;  %v1532_v13 = vadd.f32 %v2653_v2, %v1018_v0  ;;  %v1020_v14 = vmul.f32 %v2651_v1, %v507_v59  ;;  %v529_v59 = vld [vmem:[%s2644_s11 + $0xa70] sm:$0xff]  ;;  %v530_v0 = vld [vmem:[%s2644_s11 + $0xa78] sm:$0xff] }
  0xfd   : > { %v1021_v15 = vmul.f32 %v2651_v1, %v508_v60  ;;  %2040 = vst [vmem:[%s2683_s25 + $0x990] sm:$0xff] %v1528_v6  ;;  %2041 = vst [vmem:[%s2683_s25 + $0x998] sm:$0xff] %v1529_v7  ;;  %v1533_v17 = vadd.f32 %v2653_v2, %v1019_v9  ;;  %v1022_v18 = vmul.f32 %v2651_v1, %v509_v3  ;;  %v531_v7 = vld [vmem:[%s2644_s11 + $0xa80] sm:$0xff] }
  0xfe   : > { %2042 = vst [vmem:[%s2683_s25 + $0x9a0] sm:$0xff] %v1530_v8  ;;  %v1023_v19 = vmul.f32 %v2651_v1, %v510_v4  ;;  %v1024_v20 = vmul.f32 %v2651_v1, %v511_v5  ;;  %2043 = vst [vmem:[%s2683_s25 + $0x9a8] sm:$0xff] %v1531_v12  ;;  %v1534_v23 = vadd.f32 %v2653_v2, %v1020_v14  ;;  %v532_v8 = vld [vmem:[%s2644_s11 + $0xa88] sm:$0xff]  ;;  %v534_v14 = vld [vmem:[%s2644_s11 + $0xa98] sm:$0xff] }
  0xff   : > { %2044 = vst [vmem:[%s2683_s25 + $0x9b0] sm:$0xff] %v1532_v13  ;;  %v1535_v24 = vadd.f32 %v2653_v2, %v1021_v15  ;;  %v1025_v25 = vmul.f32 %v2651_v1, %v512_v10  ;;  %v1026_v26 = vmul.f32 %v2651_v1, %v513_v11  ;;  %2045 = vst [vmem:[%s2683_s25 + $0x9b8] sm:$0xff] %v1533_v17  ;;  %v533_v13 = vld [vmem:[%s2644_s11 + $0xa90] sm:$0xff]  ;;  %v535_v15 = vld [vmem:[%s2644_s11 + $0xaa0] sm:$0xff] }
 0x100   : > { %v1536_v30 = vadd.f32 %v2653_v2, %v1022_v18  ;;  %v1537_v31 = vadd.f32 %v2653_v2, %v1023_v19  ;;  %v1538_v32 = vadd.f32 %v2653_v2, %v1024_v20  ;;  %v1027_v33 = vmul.f32 %v2651_v1, %v514_v16  ;;  %2046 = vst [vmem:[%s2683_s25 + $0x9c0] sm:$0xff] %v1534_v23  ;;  %v536_v20 = vld [vmem:[%s2644_s11 + $0xaa8] sm:$0xff] }
 0x101   : > { %2047 = vst [vmem:[%s2683_s25 + $0x9c8] sm:$0xff] %v1535_v24  ;;  %v1539_v36 = vadd.f32 %v2653_v2, %v1025_v25  ;;  %v1540_v37 = vadd.f32 %v2653_v2, %v1026_v26  ;;  %v1028_v38 = vmul.f32 %v2651_v1, %v515_v21  ;;  %v1029_v39 = vmul.f32 %v2651_v1, %v516_v22  ;;  %v537_v21 = vld [vmem:[%s2644_s11 + $0xab0] sm:$0xff]  ;;  %v538_v26 = vld [vmem:[%s2644_s11 + $0xab8] sm:$0xff] }
 0x102   : > { %2048 = vst [vmem:[%s2683_s25 + $0x9d0] sm:$0xff] %v1536_v30  ;;  %2049 = vst [vmem:[%s2683_s25 + $0x9d8] sm:$0xff] %v1537_v31  ;;  %v1541_v41 = vadd.f32 %v2653_v2, %v1027_v33  ;;  %v1030_v42 = vmul.f32 %v2651_v1, %v517_v27  ;;  %v1031_v43 = vmul.f32 %v2651_v1, %v518_v28  ;;  %v539_v31 = vld [vmem:[%s2644_s11 + $0xac0] sm:$0xff] }
 0x103   : > { %2050 = vst [vmem:[%s2683_s25 + $0x9e0] sm:$0xff] %v1538_v32  ;;  %v1032_v44 = vmul.f32 %v2651_v1, %v519_v29  ;;  %2051 = vst [vmem:[%s2683_s25 + $0x9e8] sm:$0xff] %v1539_v36  ;;  %v1542_v47 = vadd.f32 %v2653_v2, %v1028_v38  ;;  %v1543_v48 = vadd.f32 %v2653_v2, %v1029_v39  ;;  %v540_v32 = vld [vmem:[%s2644_s11 + $0xac8] sm:$0xff]  ;;  %v542_v38 = vld [vmem:[%s2644_s11 + $0xad8] sm:$0xff] }
 0x104   : > { %2052 = vst [vmem:[%s2683_s25 + $0x9f0] sm:$0xff] %v1540_v37  ;;  %v1033_v49 = vmul.f32 %v2651_v1, %v520_v34  ;;  %v1034_v50 = vmul.f32 %v2651_v1, %v521_v35  ;;  %2053 = vst [vmem:[%s2683_s25 + $0x9f8] sm:$0xff] %v1541_v41  ;;  %v1544_v54 = vadd.f32 %v2653_v2, %v1030_v42  ;;  %v541_v37 = vld [vmem:[%s2644_s11 + $0xad0] sm:$0xff]  ;;  %v543_v39 = vld [vmem:[%s2644_s11 + $0xae0] sm:$0xff] }
 0x105   : > { %v1545_v55 = vadd.f32 %v2653_v2, %v1031_v43  ;;  %v1546_v56 = vadd.f32 %v2653_v2, %v1032_v44  ;;  %v1035_v57 = vmul.f32 %v2651_v1, %v522_v40  ;;  %2054 = vst [vmem:[%s2683_s25 + $0xa00] sm:$0xff] %v1542_v47  ;;  %2055 = vst [vmem:[%s2683_s25 + $0xa08] sm:$0xff] %v1543_v48  ;;  %v544_v44 = vld [vmem:[%s2644_s11 + $0xae8] sm:$0xff] }
 0x106   : > { %v1547_v60 = vadd.f32 %v2653_v2, %v1033_v49  ;;  %v1548_v61 = vadd.f32 %v2653_v2, %v1034_v50  ;;  %v1036_v62 = vmul.f32 %v2651_v1, %v523_v45  ;;  %v1037_v63 = vmul.f32 %v2651_v1, %v524_v46  ;;  %2056 = vst [vmem:[%s2683_s25 + $0xa10] sm:$0xff] %v1544_v54  ;;  %v545_v45 = vld [vmem:[%s2644_s11 + $0xaf0] sm:$0xff]  ;;  %v546_v50 = vld [vmem:[%s2644_s11 + $0xaf8] sm:$0xff] }
 0x107   : > { %2057 = vst [vmem:[%s2683_s25 + $0xa18] sm:$0xff] %v1545_v55  ;;  %2058 = vst [vmem:[%s2683_s25 + $0xa20] sm:$0xff] %v1546_v56  ;;  %v1549_v3 = vadd.f32 %v2653_v2, %v1035_v57  ;;  %v1038_v4 = vmul.f32 %v2651_v1, %v525_v51  ;;  %v1039_v5 = vmul.f32 %v2651_v1, %v526_v52  ;;  %v547_v55 = vld [vmem:[%s2644_s11 + $0xb00] sm:$0xff]  ;;  %v548_v56 = vld [vmem:[%s2644_s11 + $0xb08] sm:$0xff] }
 0x108   : > { %v1040_v6 = vmul.f32 %v2651_v1, %v527_v53  ;;  %2059 = vst [vmem:[%s2683_s25 + $0xa28] sm:$0xff] %v1547_v60  ;;  %2060 = vst [vmem:[%s2683_s25 + $0xa30] sm:$0xff] %v1548_v61  ;;  %v1550_v9 = vadd.f32 %v2653_v2, %v1036_v62  ;;  %v1551_v10 = vadd.f32 %v2653_v2, %v1037_v63  ;;  %v549_v61 = vld [vmem:[%s2644_s11 + $0xb10] sm:$0xff]  ;;  %v550_v62 = vld [vmem:[%s2644_s11 + $0xb18] sm:$0xff] }
 0x109   : > { %v1041_v11 = vmul.f32 %v2651_v1, %v528_v58  ;;  %v1042_v12 = vmul.f32 %v2651_v1, %v529_v59  ;;  %2061 = vst [vmem:[%s2683_s25 + $0xa38] sm:$0xff] %v1549_v3  ;;  %v1552_v16 = vadd.f32 %v2653_v2, %v1038_v4  ;;  %v1553_v17 = vadd.f32 %v2653_v2, %v1039_v5  ;;  %v551_v63 = vld [vmem:[%s2644_s11 + $0xb20] sm:$0xff] }
 0x10a   : > { %v1554_v18 = vadd.f32 %v2653_v2, %v1040_v6  ;;  %v1043_v19 = vmul.f32 %v2651_v1, %v530_v0  ;;  %2062 = vst [vmem:[%s2683_s25 + $0xa40] sm:$0xff] %v1550_v9  ;;  %2063 = vst [vmem:[%s2683_s25 + $0xa48] sm:$0xff] %v1551_v10  ;;  %v1044_v24 = vmul.f32 %v2651_v1, %v531_v7  ;;  %v552_v6 = vld [vmem:[%s2644_s11 + $0xb28] sm:$0xff]  ;;  %v553_v7 = vld [vmem:[%s2644_s11 + $0xb30] sm:$0xff] }
 0x10b   : > { %v1555_v22 = vadd.f32 %v2653_v2, %v1041_v11  ;;  %v1556_v23 = vadd.f32 %v2653_v2, %v1042_v12  ;;  %v1045_v25 = vmul.f32 %v2651_v1, %v532_v8  ;;  %2064 = vst [vmem:[%s2683_s25 + $0xa50] sm:$0xff] %v1552_v16  ;;  %2065 = vst [vmem:[%s2683_s25 + $0xa58] sm:$0xff] %v1553_v17  ;;  %v554_v12 = vld [vmem:[%s2644_s11 + $0xb38] sm:$0xff]  ;;  %v555_v17 = vld [vmem:[%s2644_s11 + $0xb40] sm:$0xff] }
 0x10c   : > { %2066 = vst [vmem:[%s2683_s25 + $0xa60] sm:$0xff] %v1554_v18  ;;  %v1557_v27 = vadd.f32 %v2653_v2, %v1043_v19  ;;  %v1046_v28 = vmul.f32 %v2651_v1, %v533_v13  ;;  %v1047_v29 = vmul.f32 %v2651_v1, %v534_v14  ;;  %v1048_v30 = vmul.f32 %v2651_v1, %v535_v15  ;;  %v556_v18 = vld [vmem:[%s2644_s11 + $0xb48] sm:$0xff] }
 0x10d   : > { %2067 = vst [vmem:[%s2683_s25 + $0xa68] sm:$0xff] %v1555_v22  ;;  %2068 = vst [vmem:[%s2683_s25 + $0xa70] sm:$0xff] %v1556_v23  ;;  %v1558_v33 = vadd.f32 %v2653_v2, %v1044_v24  ;;  %v1559_v34 = vadd.f32 %v2653_v2, %v1045_v25  ;;  %v1049_v35 = vmul.f32 %v2651_v1, %v536_v20  ;;  %v557_v23 = vld [vmem:[%s2644_s11 + $0xb50] sm:$0xff]  ;;  %v558_v24 = vld [vmem:[%s2644_s11 + $0xb58] sm:$0xff] }
 0x10e   : > { %v1050_v36 = vmul.f32 %v2651_v1, %v537_v21  ;;  %2069 = vst [vmem:[%s2683_s25 + $0xa78] sm:$0xff] %v1557_v27  ;;  %v1560_v40 = vadd.f32 %v2653_v2, %v1046_v28  ;;  %v1561_v41 = vadd.f32 %v2653_v2, %v1047_v29  ;;  %v1562_v42 = vadd.f32 %v2653_v2, %v1048_v30  ;;  %v559_v25 = vld [vmem:[%s2644_s11 + $0xb60] sm:$0xff]  ;;  %v560_v30 = vld [vmem:[%s2644_s11 + $0xb68] sm:$0xff] }
 0x10f   : > { %v1051_v43 = vmul.f32 %v2651_v1, %v538_v26  ;;  %2070 = vst [vmem:[%s2683_s25 + $0xa80] sm:$0xff] %v1558_v33  ;;  %2071 = vst [vmem:[%s2683_s25 + $0xa88] sm:$0xff] %v1559_v34  ;;  %v1563_v46 = vadd.f32 %v2653_v2, %v1049_v35  ;;  %v1052_v48 = vmul.f32 %v2651_v1, %v539_v31  ;;  %v561_v31 = vld [vmem:[%s2644_s11 + $0xb70] sm:$0xff] }
 0x110   : > { %v1564_v47 = vadd.f32 %v2653_v2, %v1050_v36  ;;  %v1053_v49 = vmul.f32 %v2651_v1, %v540_v32  ;;  %2072 = vst [vmem:[%s2683_s25 + $0xa90] sm:$0xff] %v1560_v40  ;;  %2073 = vst [vmem:[%s2683_s25 + $0xa98] sm:$0xff] %v1561_v41  ;;  %v1054_v52 = vmul.f32 %v2651_v1, %v541_v37  ;;  %v562_v36 = vld [vmem:[%s2644_s11 + $0xb78] sm:$0xff]  ;;  %v563_v41 = vld [vmem:[%s2644_s11 + $0xb80] sm:$0xff] }
 0x111   : > { %2074 = vst [vmem:[%s2683_s25 + $0xaa0] sm:$0xff] %v1562_v42  ;;  %v1565_v51 = vadd.f32 %v2653_v2, %v1051_v43  ;;  %v1055_v53 = vmul.f32 %v2651_v1, %v542_v38  ;;  %v1056_v54 = vmul.f32 %v2651_v1, %v543_v39  ;;  %2075 = vst [vmem:[%s2683_s25 + $0xaa8] sm:$0xff] %v1563_v46  ;;  %v564_v42 = vld [vmem:[%s2644_s11 + $0xb88] sm:$0xff] }
 0x112   : > { %2076 = vst [vmem:[%s2683_s25 + $0xab0] sm:$0xff] %v1564_v47  ;;  %v1566_v57 = vadd.f32 %v2653_v2, %v1052_v48  ;;  %v1567_v58 = vadd.f32 %v2653_v2, %v1053_v49  ;;  %v1057_v59 = vmul.f32 %v2651_v1, %v544_v44  ;;  %v1058_v60 = vmul.f32 %v2651_v1, %v545_v45  ;;  %v565_v47 = vld [vmem:[%s2644_s11 + $0xb90] sm:$0xff]  ;;  %v566_v48 = vld [vmem:[%s2644_s11 + $0xb98] sm:$0xff]  ;;  %v567_v49 = vld [vmem:[%s2644_s11 + $0xba0] sm:$0xff] }
 0x113   : > { %2077 = vst [vmem:[%s2683_s25 + $0xab8] sm:$0xff] %v1565_v51  ;;  %v1568_v0 = vadd.f32 %v2653_v2, %v1054_v52  ;;  %v1569_v3 = vadd.f32 %v2653_v2, %v1055_v53  ;;  %v1570_v4 = vadd.f32 %v2653_v2, %v1056_v54  ;;  %v1059_v5 = vmul.f32 %v2651_v1, %v546_v50  ;;  %v568_v54 = vld [vmem:[%s2644_s11 + $0xba8] sm:$0xff] }
 0x114   : > { %2078 = vst [vmem:[%s2683_s25 + $0xac0] sm:$0xff] %v1566_v57  ;;  %2079 = vst [vmem:[%s2683_s25 + $0xac8] sm:$0xff] %v1567_v58  ;;  %v1571_v8 = vadd.f32 %v2653_v2, %v1057_v59  ;;  %v1572_v9 = vadd.f32 %v2653_v2, %v1058_v60  ;;  %v1060_v10 = vmul.f32 %v2651_v1, %v547_v55  ;;  %v569_v55 = vld [vmem:[%s2644_s11 + $0xbb0] sm:$0xff]  ;;  %v570_v60 = vld [vmem:[%s2644_s11 + $0xbb8] sm:$0xff] }
 0x115   : > { %v1061_v11 = vmul.f32 %v2651_v1, %v548_v56  ;;  %2080 = vst [vmem:[%s2683_s25 + $0xad0] sm:$0xff] %v1568_v0  ;;  %2081 = vst [vmem:[%s2683_s25 + $0xad8] sm:$0xff] %v1569_v3  ;;  %v1573_v13 = vadd.f32 %v2653_v2, %v1059_v5  ;;  %v1062_v14 = vmul.f32 %v2651_v1, %v549_v61  ;;  %v571_v3 = vld [vmem:[%s2644_s11 + $0xbc0] sm:$0xff] }
 0x116   : > { %2082 = vst [vmem:[%s2683_s25 + $0xae0] sm:$0xff] %v1570_v4  ;;  %v1063_v15 = vmul.f32 %v2651_v1, %v550_v62  ;;  %v1064_v16 = vmul.f32 %v2651_v1, %v551_v63  ;;  %2083 = vst [vmem:[%s2683_s25 + $0xae8] sm:$0xff] %v1571_v8  ;;  %v1574_v19 = vadd.f32 %v2653_v2, %v1060_v10  ;;  %v572_v4 = vld [vmem:[%s2644_s11 + $0xbc8] sm:$0xff]  ;;  %v574_v10 = vld [vmem:[%s2644_s11 + $0xbd8] sm:$0xff] }
 0x117   : > { %2084 = vst [vmem:[%s2683_s25 + $0xaf0] sm:$0xff] %v1572_v9  ;;  %v1575_v20 = vadd.f32 %v2653_v2, %v1061_v11  ;;  %v1065_v21 = vmul.f32 %v2651_v1, %v552_v6  ;;  %v1066_v22 = vmul.f32 %v2651_v1, %v553_v7  ;;  %2085 = vst [vmem:[%s2683_s25 + $0xaf8] sm:$0xff] %v1573_v13  ;;  %v573_v9 = vld [vmem:[%s2644_s11 + $0xbd0] sm:$0xff]  ;;  %v575_v11 = vld [vmem:[%s2644_s11 + $0xbe0] sm:$0xff] }
 0x118   : > { %v1576_v26 = vadd.f32 %v2653_v2, %v1062_v14  ;;  %v1577_v27 = vadd.f32 %v2653_v2, %v1063_v15  ;;  %v1578_v28 = vadd.f32 %v2653_v2, %v1064_v16  ;;  %v1067_v29 = vmul.f32 %v2651_v1, %v554_v12  ;;  %2086 = vst [vmem:[%s2683_s25 + $0xb00] sm:$0xff] %v1574_v19  ;;  %v576_v16 = vld [vmem:[%s2644_s11 + $0xbe8] sm:$0xff] }
 0x119   : > { %2087 = vst [vmem:[%s2683_s25 + $0xb08] sm:$0xff] %v1575_v20  ;;  %v1579_v32 = vadd.f32 %v2653_v2, %v1065_v21  ;;  %v1580_v33 = vadd.f32 %v2653_v2, %v1066_v22  ;;  %v1068_v34 = vmul.f32 %v2651_v1, %v555_v17  ;;  %v1069_v35 = vmul.f32 %v2651_v1, %v556_v18  ;;  %v577_v17 = vld [vmem:[%s2644_s11 + $0xbf0] sm:$0xff]  ;;  %v578_v22 = vld [vmem:[%s2644_s11 + $0xbf8] sm:$0xff] }
 0x11a   : > { %2088 = vst [vmem:[%s2683_s25 + $0xb10] sm:$0xff] %v1576_v26  ;;  %2089 = vst [vmem:[%s2683_s25 + $0xb18] sm:$0xff] %v1577_v27  ;;  %v1581_v37 = vadd.f32 %v2653_v2, %v1067_v29  ;;  %v1070_v38 = vmul.f32 %v2651_v1, %v557_v23  ;;  %v1071_v39 = vmul.f32 %v2651_v1, %v558_v24  ;;  %v579_v27 = vld [vmem:[%s2644_s11 + $0xc00] sm:$0xff] }
 0x11b   : > { %2090 = vst [vmem:[%s2683_s25 + $0xb20] sm:$0xff] %v1578_v28  ;;  %v1072_v40 = vmul.f32 %v2651_v1, %v559_v25  ;;  %2091 = vst [vmem:[%s2683_s25 + $0xb28] sm:$0xff] %v1579_v32  ;;  %v1582_v43 = vadd.f32 %v2653_v2, %v1068_v34  ;;  %v1583_v44 = vadd.f32 %v2653_v2, %v1069_v35  ;;  %v580_v28 = vld [vmem:[%s2644_s11 + $0xc08] sm:$0xff]  ;;  %v582_v34 = vld [vmem:[%s2644_s11 + $0xc18] sm:$0xff] }
 0x11c   : > { %2092 = vst [vmem:[%s2683_s25 + $0xb30] sm:$0xff] %v1580_v33  ;;  %v1073_v45 = vmul.f32 %v2651_v1, %v560_v30  ;;  %v1074_v46 = vmul.f32 %v2651_v1, %v561_v31  ;;  %2093 = vst [vmem:[%s2683_s25 + $0xb38] sm:$0xff] %v1581_v37  ;;  %v1584_v50 = vadd.f32 %v2653_v2, %v1070_v38  ;;  %v581_v33 = vld [vmem:[%s2644_s11 + $0xc10] sm:$0xff]  ;;  %v583_v35 = vld [vmem:[%s2644_s11 + $0xc20] sm:$0xff] }
 0x11d   : > { %v1585_v51 = vadd.f32 %v2653_v2, %v1071_v39  ;;  %v1586_v52 = vadd.f32 %v2653_v2, %v1072_v40  ;;  %v1075_v53 = vmul.f32 %v2651_v1, %v562_v36  ;;  %2094 = vst [vmem:[%s2683_s25 + $0xb40] sm:$0xff] %v1582_v43  ;;  %2095 = vst [vmem:[%s2683_s25 + $0xb48] sm:$0xff] %v1583_v44  ;;  %v584_v40 = vld [vmem:[%s2644_s11 + $0xc28] sm:$0xff] }
 0x11e   : > { %v1587_v56 = vadd.f32 %v2653_v2, %v1073_v45  ;;  %v1588_v57 = vadd.f32 %v2653_v2, %v1074_v46  ;;  %v1076_v58 = vmul.f32 %v2651_v1, %v563_v41  ;;  %v1077_v59 = vmul.f32 %v2651_v1, %v564_v42  ;;  %2096 = vst [vmem:[%s2683_s25 + $0xb50] sm:$0xff] %v1584_v50  ;;  %v585_v41 = vld [vmem:[%s2644_s11 + $0xc30] sm:$0xff]  ;;  %v586_v46 = vld [vmem:[%s2644_s11 + $0xc38] sm:$0xff] }
 0x11f   : > { %2097 = vst [vmem:[%s2683_s25 + $0xb58] sm:$0xff] %v1585_v51  ;;  %2098 = vst [vmem:[%s2683_s25 + $0xb60] sm:$0xff] %v1586_v52  ;;  %v1589_v61 = vadd.f32 %v2653_v2, %v1075_v53  ;;  %v1078_v62 = vmul.f32 %v2651_v1, %v565_v47  ;;  %v1079_v63 = vmul.f32 %v2651_v1, %v566_v48  ;;  %v587_v51 = vld [vmem:[%s2644_s11 + $0xc40] sm:$0xff]  ;;  %v588_v52 = vld [vmem:[%s2644_s11 + $0xc48] sm:$0xff] }
 0x120   : > { %v1080_v0 = vmul.f32 %v2651_v1, %v567_v49  ;;  %2099 = vst [vmem:[%s2683_s25 + $0xb68] sm:$0xff] %v1587_v56  ;;  %2100 = vst [vmem:[%s2683_s25 + $0xb70] sm:$0xff] %v1588_v57  ;;  %v1590_v5 = vadd.f32 %v2653_v2, %v1076_v58  ;;  %v1591_v6 = vadd.f32 %v2653_v2, %v1077_v59  ;;  %v589_v57 = vld [vmem:[%s2644_s11 + $0xc50] sm:$0xff]  ;;  %v590_v58 = vld [vmem:[%s2644_s11 + $0xc58] sm:$0xff] }
 0x121   : > { %v1081_v7 = vmul.f32 %v2651_v1, %v568_v54  ;;  %v1082_v8 = vmul.f32 %v2651_v1, %v569_v55  ;;  %2101 = vst [vmem:[%s2683_s25 + $0xb78] sm:$0xff] %v1589_v61  ;;  %v1592_v12 = vadd.f32 %v2653_v2, %v1078_v62  ;;  %v1593_v13 = vadd.f32 %v2653_v2, %v1079_v63  ;;  %v591_v59 = vld [vmem:[%s2644_s11 + $0xc60] sm:$0xff] }
 0x122   : > { %v1594_v14 = vadd.f32 %v2653_v2, %v1080_v0  ;;  %v1083_v15 = vmul.f32 %v2651_v1, %v570_v60  ;;  %2102 = vst [vmem:[%s2683_s25 + $0xb80] sm:$0xff] %v1590_v5  ;;  %2103 = vst [vmem:[%s2683_s25 + $0xb88] sm:$0xff] %v1591_v6  ;;  %v1084_v20 = vmul.f32 %v2651_v1, %v571_v3  ;;  %v592_v0 = vld [vmem:[%s2644_s11 + $0xc68] sm:$0xff]  ;;  %v593_v3 = vld [vmem:[%s2644_s11 + $0xc70] sm:$0xff] }
 0x123   : > { %v1595_v18 = vadd.f32 %v2653_v2, %v1081_v7  ;;  %v1596_v19 = vadd.f32 %v2653_v2, %v1082_v8  ;;  %v1085_v21 = vmul.f32 %v2651_v1, %v572_v4  ;;  %2104 = vst [vmem:[%s2683_s25 + $0xb90] sm:$0xff] %v1592_v12  ;;  %2105 = vst [vmem:[%s2683_s25 + $0xb98] sm:$0xff] %v1593_v13  ;;  %v594_v8 = vld [vmem:[%s2644_s11 + $0xc78] sm:$0xff]  ;;  %v595_v13 = vld [vmem:[%s2644_s11 + $0xc80] sm:$0xff] }
 0x124   : > { %2106 = vst [vmem:[%s2683_s25 + $0xba0] sm:$0xff] %v1594_v14  ;;  %v1597_v23 = vadd.f32 %v2653_v2, %v1083_v15  ;;  %v1086_v24 = vmul.f32 %v2651_v1, %v573_v9  ;;  %v1087_v25 = vmul.f32 %v2651_v1, %v574_v10  ;;  %v1088_v26 = vmul.f32 %v2651_v1, %v575_v11  ;;  %v596_v14 = vld [vmem:[%s2644_s11 + $0xc88] sm:$0xff] }
 0x125   : > { %2107 = vst [vmem:[%s2683_s25 + $0xba8] sm:$0xff] %v1595_v18  ;;  %2108 = vst [vmem:[%s2683_s25 + $0xbb0] sm:$0xff] %v1596_v19  ;;  %v1598_v29 = vadd.f32 %v2653_v2, %v1084_v20  ;;  %v1599_v30 = vadd.f32 %v2653_v2, %v1085_v21  ;;  %v1089_v31 = vmul.f32 %v2651_v1, %v576_v16  ;;  %v597_v19 = vld [vmem:[%s2644_s11 + $0xc90] sm:$0xff]  ;;  %v598_v20 = vld [vmem:[%s2644_s11 + $0xc98] sm:$0xff] }
 0x126   : > { %v1090_v32 = vmul.f32 %v2651_v1, %v577_v17  ;;  %2109 = vst [vmem:[%s2683_s25 + $0xbb8] sm:$0xff] %v1597_v23  ;;  %v1600_v36 = vadd.f32 %v2653_v2, %v1086_v24  ;;  %v1601_v37 = vadd.f32 %v2653_v2, %v1087_v25  ;;  %v1602_v38 = vadd.f32 %v2653_v2, %v1088_v26  ;;  %v599_v21 = vld [vmem:[%s2644_s11 + $0xca0] sm:$0xff]  ;;  %v600_v26 = vld [vmem:[%s2644_s11 + $0xca8] sm:$0xff] }
 0x127   : > { %v1091_v39 = vmul.f32 %v2651_v1, %v578_v22  ;;  %2110 = vst [vmem:[%s2683_s25 + $0xbc0] sm:$0xff] %v1598_v29  ;;  %2111 = vst [vmem:[%s2683_s25 + $0xbc8] sm:$0xff] %v1599_v30  ;;  %v1603_v42 = vadd.f32 %v2653_v2, %v1089_v31  ;;  %v1092_v44 = vmul.f32 %v2651_v1, %v579_v27  ;;  %v601_v27 = vld [vmem:[%s2644_s11 + $0xcb0] sm:$0xff] }
 0x128   : > { %v1604_v43 = vadd.f32 %v2653_v2, %v1090_v32  ;;  %v1093_v45 = vmul.f32 %v2651_v1, %v580_v28  ;;  %2112 = vst [vmem:[%s2683_s25 + $0xbd0] sm:$0xff] %v1600_v36  ;;  %2113 = vst [vmem:[%s2683_s25 + $0xbd8] sm:$0xff] %v1601_v37  ;;  %v1094_v48 = vmul.f32 %v2651_v1, %v581_v33  ;;  %v602_v32 = vld [vmem:[%s2644_s11 + $0xcb8] sm:$0xff]  ;;  %v603_v37 = vld [vmem:[%s2644_s11 + $0xcc0] sm:$0xff] }
 0x129   : > { %2114 = vst [vmem:[%s2683_s25 + $0xbe0] sm:$0xff] %v1602_v38  ;;  %v1605_v47 = vadd.f32 %v2653_v2, %v1091_v39  ;;  %v1095_v49 = vmul.f32 %v2651_v1, %v582_v34  ;;  %v1096_v50 = vmul.f32 %v2651_v1, %v583_v35  ;;  %2115 = vst [vmem:[%s2683_s25 + $0xbe8] sm:$0xff] %v1603_v42  ;;  %v604_v38 = vld [vmem:[%s2644_s11 + $0xcc8] sm:$0xff] }
 0x12a   : > { %2116 = vst [vmem:[%s2683_s25 + $0xbf0] sm:$0xff] %v1604_v43  ;;  %v1606_v53 = vadd.f32 %v2653_v2, %v1092_v44  ;;  %v1607_v54 = vadd.f32 %v2653_v2, %v1093_v45  ;;  %v1097_v55 = vmul.f32 %v2651_v1, %v584_v40  ;;  %v1098_v56 = vmul.f32 %v2651_v1, %v585_v41  ;;  %v605_v43 = vld [vmem:[%s2644_s11 + $0xcd0] sm:$0xff]  ;;  %v606_v44 = vld [vmem:[%s2644_s11 + $0xcd8] sm:$0xff]  ;;  %v607_v45 = vld [vmem:[%s2644_s11 + $0xce0] sm:$0xff] }
 0x12b   : > { %2117 = vst [vmem:[%s2683_s25 + $0xbf8] sm:$0xff] %v1605_v47  ;;  %v1608_v60 = vadd.f32 %v2653_v2, %v1094_v48  ;;  %v1609_v61 = vadd.f32 %v2653_v2, %v1095_v49  ;;  %v1610_v62 = vadd.f32 %v2653_v2, %v1096_v50  ;;  %v1099_v63 = vmul.f32 %v2651_v1, %v586_v46  ;;  %v608_v50 = vld [vmem:[%s2644_s11 + $0xce8] sm:$0xff] }
 0x12c   : > { %2118 = vst [vmem:[%s2683_s25 + $0xc00] sm:$0xff] %v1606_v53  ;;  %2119 = vst [vmem:[%s2683_s25 + $0xc08] sm:$0xff] %v1607_v54  ;;  %v1611_v4 = vadd.f32 %v2653_v2, %v1097_v55  ;;  %v1612_v5 = vadd.f32 %v2653_v2, %v1098_v56  ;;  %v1100_v6 = vmul.f32 %v2651_v1, %v587_v51  ;;  %v609_v51 = vld [vmem:[%s2644_s11 + $0xcf0] sm:$0xff]  ;;  %v610_v56 = vld [vmem:[%s2644_s11 + $0xcf8] sm:$0xff] }
 0x12d   : > { %v1101_v7 = vmul.f32 %v2651_v1, %v588_v52  ;;  %2120 = vst [vmem:[%s2683_s25 + $0xc10] sm:$0xff] %v1608_v60  ;;  %2121 = vst [vmem:[%s2683_s25 + $0xc18] sm:$0xff] %v1609_v61  ;;  %v1613_v9 = vadd.f32 %v2653_v2, %v1099_v63  ;;  %v1102_v10 = vmul.f32 %v2651_v1, %v589_v57  ;;  %v611_v61 = vld [vmem:[%s2644_s11 + $0xd00] sm:$0xff] }
 0x12e   : > { %2122 = vst [vmem:[%s2683_s25 + $0xc20] sm:$0xff] %v1610_v62  ;;  %v1103_v11 = vmul.f32 %v2651_v1, %v590_v58  ;;  %v1104_v12 = vmul.f32 %v2651_v1, %v591_v59  ;;  %2123 = vst [vmem:[%s2683_s25 + $0xc28] sm:$0xff] %v1611_v4  ;;  %v1614_v15 = vadd.f32 %v2653_v2, %v1100_v6  ;;  %v612_v62 = vld [vmem:[%s2644_s11 + $0xd08] sm:$0xff]  ;;  %v614_v6 = vld [vmem:[%s2644_s11 + $0xd18] sm:$0xff] }
 0x12f   : > { %2124 = vst [vmem:[%s2683_s25 + $0xc30] sm:$0xff] %v1612_v5  ;;  %v1615_v16 = vadd.f32 %v2653_v2, %v1101_v7  ;;  %v1105_v17 = vmul.f32 %v2651_v1, %v592_v0  ;;  %v1106_v18 = vmul.f32 %v2651_v1, %v593_v3  ;;  %2125 = vst [vmem:[%s2683_s25 + $0xc38] sm:$0xff] %v1613_v9  ;;  %v613_v5 = vld [vmem:[%s2644_s11 + $0xd10] sm:$0xff]  ;;  %v615_v7 = vld [vmem:[%s2644_s11 + $0xd20] sm:$0xff] }
 0x130   : > { %v1616_v22 = vadd.f32 %v2653_v2, %v1102_v10  ;;  %v1617_v23 = vadd.f32 %v2653_v2, %v1103_v11  ;;  %v1618_v24 = vadd.f32 %v2653_v2, %v1104_v12  ;;  %v1107_v25 = vmul.f32 %v2651_v1, %v594_v8  ;;  %2126 = vst [vmem:[%s2683_s25 + $0xc40] sm:$0xff] %v1614_v15  ;;  %v616_v12 = vld [vmem:[%s2644_s11 + $0xd28] sm:$0xff] }
 0x131   : > { %2127 = vst [vmem:[%s2683_s25 + $0xc48] sm:$0xff] %v1615_v16  ;;  %v1619_v28 = vadd.f32 %v2653_v2, %v1105_v17  ;;  %v1620_v29 = vadd.f32 %v2653_v2, %v1106_v18  ;;  %v1108_v30 = vmul.f32 %v2651_v1, %v595_v13  ;;  %v1109_v31 = vmul.f32 %v2651_v1, %v596_v14  ;;  %v617_v13 = vld [vmem:[%s2644_s11 + $0xd30] sm:$0xff]  ;;  %v618_v18 = vld [vmem:[%s2644_s11 + $0xd38] sm:$0xff] }
 0x132   : > { %2128 = vst [vmem:[%s2683_s25 + $0xc50] sm:$0xff] %v1616_v22  ;;  %2129 = vst [vmem:[%s2683_s25 + $0xc58] sm:$0xff] %v1617_v23  ;;  %v1621_v33 = vadd.f32 %v2653_v2, %v1107_v25  ;;  %v1110_v34 = vmul.f32 %v2651_v1, %v597_v19  ;;  %v1111_v35 = vmul.f32 %v2651_v1, %v598_v20  ;;  %v619_v23 = vld [vmem:[%s2644_s11 + $0xd40] sm:$0xff] }
 0x133   : > { %2130 = vst [vmem:[%s2683_s25 + $0xc60] sm:$0xff] %v1618_v24  ;;  %v1112_v36 = vmul.f32 %v2651_v1, %v599_v21  ;;  %2131 = vst [vmem:[%s2683_s25 + $0xc68] sm:$0xff] %v1619_v28  ;;  %v1622_v39 = vadd.f32 %v2653_v2, %v1108_v30  ;;  %v1623_v40 = vadd.f32 %v2653_v2, %v1109_v31  ;;  %v620_v24 = vld [vmem:[%s2644_s11 + $0xd48] sm:$0xff]  ;;  %v622_v30 = vld [vmem:[%s2644_s11 + $0xd58] sm:$0xff] }
 0x134   : > { %2132 = vst [vmem:[%s2683_s25 + $0xc70] sm:$0xff] %v1620_v29  ;;  %v1113_v41 = vmul.f32 %v2651_v1, %v600_v26  ;;  %v1114_v42 = vmul.f32 %v2651_v1, %v601_v27  ;;  %2133 = vst [vmem:[%s2683_s25 + $0xc78] sm:$0xff] %v1621_v33  ;;  %v1624_v46 = vadd.f32 %v2653_v2, %v1110_v34  ;;  %v621_v29 = vld [vmem:[%s2644_s11 + $0xd50] sm:$0xff]  ;;  %v623_v31 = vld [vmem:[%s2644_s11 + $0xd60] sm:$0xff] }
 0x135   : > { %v1625_v47 = vadd.f32 %v2653_v2, %v1111_v35  ;;  %v1626_v48 = vadd.f32 %v2653_v2, %v1112_v36  ;;  %v1115_v49 = vmul.f32 %v2651_v1, %v602_v32  ;;  %2134 = vst [vmem:[%s2683_s25 + $0xc80] sm:$0xff] %v1622_v39  ;;  %2135 = vst [vmem:[%s2683_s25 + $0xc88] sm:$0xff] %v1623_v40  ;;  %v624_v36 = vld [vmem:[%s2644_s11 + $0xd68] sm:$0xff] }
 0x136   : > { %v1627_v52 = vadd.f32 %v2653_v2, %v1113_v41  ;;  %v1628_v53 = vadd.f32 %v2653_v2, %v1114_v42  ;;  %v1116_v54 = vmul.f32 %v2651_v1, %v603_v37  ;;  %v1117_v55 = vmul.f32 %v2651_v1, %v604_v38  ;;  %2136 = vst [vmem:[%s2683_s25 + $0xc90] sm:$0xff] %v1624_v46  ;;  %v625_v37 = vld [vmem:[%s2644_s11 + $0xd70] sm:$0xff]  ;;  %v626_v42 = vld [vmem:[%s2644_s11 + $0xd78] sm:$0xff] }
 0x137   : > { %2137 = vst [vmem:[%s2683_s25 + $0xc98] sm:$0xff] %v1625_v47  ;;  %2138 = vst [vmem:[%s2683_s25 + $0xca0] sm:$0xff] %v1626_v48  ;;  %v1629_v57 = vadd.f32 %v2653_v2, %v1115_v49  ;;  %v1118_v58 = vmul.f32 %v2651_v1, %v605_v43  ;;  %v1119_v59 = vmul.f32 %v2651_v1, %v606_v44  ;;  %v627_v47 = vld [vmem:[%s2644_s11 + $0xd80] sm:$0xff]  ;;  %v628_v48 = vld [vmem:[%s2644_s11 + $0xd88] sm:$0xff] }
 0x138   : > { %v1120_v60 = vmul.f32 %v2651_v1, %v607_v45  ;;  %2139 = vst [vmem:[%s2683_s25 + $0xca8] sm:$0xff] %v1627_v52  ;;  %2140 = vst [vmem:[%s2683_s25 + $0xcb0] sm:$0xff] %v1628_v53  ;;  %v1630_v63 = vadd.f32 %v2653_v2, %v1116_v54  ;;  %v1631_v0 = vadd.f32 %v2653_v2, %v1117_v55  ;;  %v629_v53 = vld [vmem:[%s2644_s11 + $0xd90] sm:$0xff]  ;;  %v630_v54 = vld [vmem:[%s2644_s11 + $0xd98] sm:$0xff] }
 0x139   : > { %v1121_v3 = vmul.f32 %v2651_v1, %v608_v50  ;;  %v1122_v4 = vmul.f32 %v2651_v1, %v609_v51  ;;  %2141 = vst [vmem:[%s2683_s25 + $0xcb8] sm:$0xff] %v1629_v57  ;;  %v1632_v8 = vadd.f32 %v2653_v2, %v1118_v58  ;;  %v1633_v9 = vadd.f32 %v2653_v2, %v1119_v59  ;;  %v631_v55 = vld [vmem:[%s2644_s11 + $0xda0] sm:$0xff] }
 0x13a   : > { %v1634_v10 = vadd.f32 %v2653_v2, %v1120_v60  ;;  %v1123_v11 = vmul.f32 %v2651_v1, %v610_v56  ;;  %2142 = vst [vmem:[%s2683_s25 + $0xcc0] sm:$0xff] %v1630_v63  ;;  %2143 = vst [vmem:[%s2683_s25 + $0xcc8] sm:$0xff] %v1631_v0  ;;  %v1124_v16 = vmul.f32 %v2651_v1, %v611_v61  ;;  %v632_v60 = vld [vmem:[%s2644_s11 + $0xda8] sm:$0xff]  ;;  %v633_v61 = vld [vmem:[%s2644_s11 + $0xdb0] sm:$0xff] }
 0x13b   : > { %v1635_v14 = vadd.f32 %v2653_v2, %v1121_v3  ;;  %v1636_v15 = vadd.f32 %v2653_v2, %v1122_v4  ;;  %v1125_v17 = vmul.f32 %v2651_v1, %v612_v62  ;;  %2144 = vst [vmem:[%s2683_s25 + $0xcd0] sm:$0xff] %v1632_v8  ;;  %2145 = vst [vmem:[%s2683_s25 + $0xcd8] sm:$0xff] %v1633_v9  ;;  %v634_v4 = vld [vmem:[%s2644_s11 + $0xdb8] sm:$0xff]  ;;  %v635_v9 = vld [vmem:[%s2644_s11 + $0xdc0] sm:$0xff] }
 0x13c   : > { %2146 = vst [vmem:[%s2683_s25 + $0xce0] sm:$0xff] %v1634_v10  ;;  %v1637_v19 = vadd.f32 %v2653_v2, %v1123_v11  ;;  %v1126_v20 = vmul.f32 %v2651_v1, %v613_v5  ;;  %v1127_v21 = vmul.f32 %v2651_v1, %v614_v6  ;;  %v1128_v22 = vmul.f32 %v2651_v1, %v615_v7  ;;  %v636_v10 = vld [vmem:[%s2644_s11 + $0xdc8] sm:$0xff] }
 0x13d   : > { %2147 = vst [vmem:[%s2683_s25 + $0xce8] sm:$0xff] %v1635_v14  ;;  %2148 = vst [vmem:[%s2683_s25 + $0xcf0] sm:$0xff] %v1636_v15  ;;  %v1638_v25 = vadd.f32 %v2653_v2, %v1124_v16  ;;  %v1639_v26 = vadd.f32 %v2653_v2, %v1125_v17  ;;  %v1129_v27 = vmul.f32 %v2651_v1, %v616_v12  ;;  %v637_v15 = vld [vmem:[%s2644_s11 + $0xdd0] sm:$0xff]  ;;  %v638_v16 = vld [vmem:[%s2644_s11 + $0xdd8] sm:$0xff] }
 0x13e   : > { %v1130_v28 = vmul.f32 %v2651_v1, %v617_v13  ;;  %2149 = vst [vmem:[%s2683_s25 + $0xcf8] sm:$0xff] %v1637_v19  ;;  %v1640_v32 = vadd.f32 %v2653_v2, %v1126_v20  ;;  %v1641_v33 = vadd.f32 %v2653_v2, %v1127_v21  ;;  %v1642_v34 = vadd.f32 %v2653_v2, %v1128_v22  ;;  %v639_v17 = vld [vmem:[%s2644_s11 + $0xde0] sm:$0xff]  ;;  %v640_v22 = vld [vmem:[%s2644_s11 + $0xde8] sm:$0xff] }
 0x13f   : > { %v1131_v35 = vmul.f32 %v2651_v1, %v618_v18  ;;  %2150 = vst [vmem:[%s2683_s25 + $0xd00] sm:$0xff] %v1638_v25  ;;  %2151 = vst [vmem:[%s2683_s25 + $0xd08] sm:$0xff] %v1639_v26  ;;  %v1643_v38 = vadd.f32 %v2653_v2, %v1129_v27  ;;  %v1132_v40 = vmul.f32 %v2651_v1, %v619_v23  ;;  %v641_v23 = vld [vmem:[%s2644_s11 + $0xdf0] sm:$0xff] }
 0x140   : > { %v1644_v39 = vadd.f32 %v2653_v2, %v1130_v28  ;;  %v1133_v41 = vmul.f32 %v2651_v1, %v620_v24  ;;  %2152 = vst [vmem:[%s2683_s25 + $0xd10] sm:$0xff] %v1640_v32  ;;  %2153 = vst [vmem:[%s2683_s25 + $0xd18] sm:$0xff] %v1641_v33  ;;  %v1134_v44 = vmul.f32 %v2651_v1, %v621_v29  ;;  %v642_v28 = vld [vmem:[%s2644_s11 + $0xdf8] sm:$0xff]  ;;  %v643_v33 = vld [vmem:[%s2644_s11 + $0xe00] sm:$0xff] }
 0x141   : > { %2154 = vst [vmem:[%s2683_s25 + $0xd20] sm:$0xff] %v1642_v34  ;;  %v1645_v43 = vadd.f32 %v2653_v2, %v1131_v35  ;;  %v1135_v45 = vmul.f32 %v2651_v1, %v622_v30  ;;  %v1136_v46 = vmul.f32 %v2651_v1, %v623_v31  ;;  %2155 = vst [vmem:[%s2683_s25 + $0xd28] sm:$0xff] %v1643_v38  ;;  %v644_v34 = vld [vmem:[%s2644_s11 + $0xe08] sm:$0xff] }
 0x142   : > { %2156 = vst [vmem:[%s2683_s25 + $0xd30] sm:$0xff] %v1644_v39  ;;  %v1646_v49 = vadd.f32 %v2653_v2, %v1132_v40  ;;  %v1647_v50 = vadd.f32 %v2653_v2, %v1133_v41  ;;  %v1137_v51 = vmul.f32 %v2651_v1, %v624_v36  ;;  %v1138_v52 = vmul.f32 %v2651_v1, %v625_v37  ;;  %v645_v39 = vld [vmem:[%s2644_s11 + $0xe10] sm:$0xff]  ;;  %v646_v40 = vld [vmem:[%s2644_s11 + $0xe18] sm:$0xff]  ;;  %v647_v41 = vld [vmem:[%s2644_s11 + $0xe20] sm:$0xff] }
 0x143   : > { %2157 = vst [vmem:[%s2683_s25 + $0xd38] sm:$0xff] %v1645_v43  ;;  %v1648_v56 = vadd.f32 %v2653_v2, %v1134_v44  ;;  %v1649_v57 = vadd.f32 %v2653_v2, %v1135_v45  ;;  %v1650_v58 = vadd.f32 %v2653_v2, %v1136_v46  ;;  %v1139_v59 = vmul.f32 %v2651_v1, %v626_v42  ;;  %v648_v46 = vld [vmem:[%s2644_s11 + $0xe28] sm:$0xff] }
 0x144   : > { %2158 = vst [vmem:[%s2683_s25 + $0xd40] sm:$0xff] %v1646_v49  ;;  %2159 = vst [vmem:[%s2683_s25 + $0xd48] sm:$0xff] %v1647_v50  ;;  %v1651_v62 = vadd.f32 %v2653_v2, %v1137_v51  ;;  %v1652_v63 = vadd.f32 %v2653_v2, %v1138_v52  ;;  %v1140_v0 = vmul.f32 %v2651_v1, %v627_v47  ;;  %v649_v47 = vld [vmem:[%s2644_s11 + $0xe30] sm:$0xff]  ;;  %v650_v52 = vld [vmem:[%s2644_s11 + $0xe38] sm:$0xff] }
 0x145   : > { %v1141_v3 = vmul.f32 %v2651_v1, %v628_v48  ;;  %2160 = vst [vmem:[%s2683_s25 + $0xd50] sm:$0xff] %v1648_v56  ;;  %2161 = vst [vmem:[%s2683_s25 + $0xd58] sm:$0xff] %v1649_v57  ;;  %v1653_v5 = vadd.f32 %v2653_v2, %v1139_v59  ;;  %v1142_v6 = vmul.f32 %v2651_v1, %v629_v53  ;;  %v651_v57 = vld [vmem:[%s2644_s11 + $0xe40] sm:$0xff] }
 0x146   : > { %2162 = vst [vmem:[%s2683_s25 + $0xd60] sm:$0xff] %v1650_v58  ;;  %v1143_v7 = vmul.f32 %v2651_v1, %v630_v54  ;;  %v1144_v8 = vmul.f32 %v2651_v1, %v631_v55  ;;  %2163 = vst [vmem:[%s2683_s25 + $0xd68] sm:$0xff] %v1651_v62  ;;  %v1654_v11 = vadd.f32 %v2653_v2, %v1140_v0  ;;  %v652_v58 = vld [vmem:[%s2644_s11 + $0xe48] sm:$0xff]  ;;  %v654_v0 = vld [vmem:[%s2644_s11 + $0xe58] sm:$0xff] }
 0x147   : > { %2164 = vst [vmem:[%s2683_s25 + $0xd70] sm:$0xff] %v1652_v63  ;;  %v1655_v12 = vadd.f32 %v2653_v2, %v1141_v3  ;;  %v1145_v13 = vmul.f32 %v2651_v1, %v632_v60  ;;  %v1146_v14 = vmul.f32 %v2651_v1, %v633_v61  ;;  %2165 = vst [vmem:[%s2683_s25 + $0xd78] sm:$0xff] %v1653_v5  ;;  %v653_v63 = vld [vmem:[%s2644_s11 + $0xe50] sm:$0xff]  ;;  %v655_v3 = vld [vmem:[%s2644_s11 + $0xe60] sm:$0xff] }
 0x148   : > { %v1656_v18 = vadd.f32 %v2653_v2, %v1142_v6  ;;  %v1657_v19 = vadd.f32 %v2653_v2, %v1143_v7  ;;  %v1658_v20 = vadd.f32 %v2653_v2, %v1144_v8  ;;  %v1147_v21 = vmul.f32 %v2651_v1, %v634_v4  ;;  %2166 = vst [vmem:[%s2683_s25 + $0xd80] sm:$0xff] %v1654_v11  ;;  %v656_v8 = vld [vmem:[%s2644_s11 + $0xe68] sm:$0xff] }
 0x149   : > { %2167 = vst [vmem:[%s2683_s25 + $0xd88] sm:$0xff] %v1655_v12  ;;  %v1659_v24 = vadd.f32 %v2653_v2, %v1145_v13  ;;  %v1660_v25 = vadd.f32 %v2653_v2, %v1146_v14  ;;  %v1148_v26 = vmul.f32 %v2651_v1, %v635_v9  ;;  %v1149_v27 = vmul.f32 %v2651_v1, %v636_v10  ;;  %v657_v9 = vld [vmem:[%s2644_s11 + $0xe70] sm:$0xff]  ;;  %v658_v14 = vld [vmem:[%s2644_s11 + $0xe78] sm:$0xff] }
 0x14a   : > { %2168 = vst [vmem:[%s2683_s25 + $0xd90] sm:$0xff] %v1656_v18  ;;  %2169 = vst [vmem:[%s2683_s25 + $0xd98] sm:$0xff] %v1657_v19  ;;  %v1661_v29 = vadd.f32 %v2653_v2, %v1147_v21  ;;  %v1150_v30 = vmul.f32 %v2651_v1, %v637_v15  ;;  %v1151_v31 = vmul.f32 %v2651_v1, %v638_v16  ;;  %v659_v19 = vld [vmem:[%s2644_s11 + $0xe80] sm:$0xff] }
 0x14b   : > { %2170 = vst [vmem:[%s2683_s25 + $0xda0] sm:$0xff] %v1658_v20  ;;  %v1152_v32 = vmul.f32 %v2651_v1, %v639_v17  ;;  %2171 = vst [vmem:[%s2683_s25 + $0xda8] sm:$0xff] %v1659_v24  ;;  %v1662_v35 = vadd.f32 %v2653_v2, %v1148_v26  ;;  %v1663_v36 = vadd.f32 %v2653_v2, %v1149_v27  ;;  %v660_v20 = vld [vmem:[%s2644_s11 + $0xe88] sm:$0xff]  ;;  %v662_v26 = vld [vmem:[%s2644_s11 + $0xe98] sm:$0xff] }
 0x14c   : > { %2172 = vst [vmem:[%s2683_s25 + $0xdb0] sm:$0xff] %v1660_v25  ;;  %v1153_v37 = vmul.f32 %v2651_v1, %v640_v22  ;;  %v1154_v38 = vmul.f32 %v2651_v1, %v641_v23  ;;  %2173 = vst [vmem:[%s2683_s25 + $0xdb8] sm:$0xff] %v1661_v29  ;;  %v1664_v42 = vadd.f32 %v2653_v2, %v1150_v30  ;;  %v661_v25 = vld [vmem:[%s2644_s11 + $0xe90] sm:$0xff]  ;;  %v663_v27 = vld [vmem:[%s2644_s11 + $0xea0] sm:$0xff] }
 0x14d   : > { %v1665_v43 = vadd.f32 %v2653_v2, %v1151_v31  ;;  %v1666_v44 = vadd.f32 %v2653_v2, %v1152_v32  ;;  %v1155_v45 = vmul.f32 %v2651_v1, %v642_v28  ;;  %2174 = vst [vmem:[%s2683_s25 + $0xdc0] sm:$0xff] %v1662_v35  ;;  %2175 = vst [vmem:[%s2683_s25 + $0xdc8] sm:$0xff] %v1663_v36  ;;  %v664_v32 = vld [vmem:[%s2644_s11 + $0xea8] sm:$0xff] }
 0x14e   : > { %v1667_v48 = vadd.f32 %v2653_v2, %v1153_v37  ;;  %v1668_v49 = vadd.f32 %v2653_v2, %v1154_v38  ;;  %v1156_v50 = vmul.f32 %v2651_v1, %v643_v33  ;;  %v1157_v51 = vmul.f32 %v2651_v1, %v644_v34  ;;  %2176 = vst [vmem:[%s2683_s25 + $0xdd0] sm:$0xff] %v1664_v42  ;;  %v665_v33 = vld [vmem:[%s2644_s11 + $0xeb0] sm:$0xff]  ;;  %v666_v38 = vld [vmem:[%s2644_s11 + $0xeb8] sm:$0xff] }
 0x14f   : > { %2177 = vst [vmem:[%s2683_s25 + $0xdd8] sm:$0xff] %v1665_v43  ;;  %2178 = vst [vmem:[%s2683_s25 + $0xde0] sm:$0xff] %v1666_v44  ;;  %v1669_v53 = vadd.f32 %v2653_v2, %v1155_v45  ;;  %v1158_v54 = vmul.f32 %v2651_v1, %v645_v39  ;;  %v1159_v55 = vmul.f32 %v2651_v1, %v646_v40  ;;  %v667_v43 = vld [vmem:[%s2644_s11 + $0xec0] sm:$0xff]  ;;  %v668_v44 = vld [vmem:[%s2644_s11 + $0xec8] sm:$0xff] }
 0x150   : > { %v1160_v56 = vmul.f32 %v2651_v1, %v647_v41  ;;  %2179 = vst [vmem:[%s2683_s25 + $0xde8] sm:$0xff] %v1667_v48  ;;  %2180 = vst [vmem:[%s2683_s25 + $0xdf0] sm:$0xff] %v1668_v49  ;;  %v1670_v59 = vadd.f32 %v2653_v2, %v1156_v50  ;;  %v1671_v60 = vadd.f32 %v2653_v2, %v1157_v51  ;;  %v669_v49 = vld [vmem:[%s2644_s11 + $0xed0] sm:$0xff]  ;;  %v670_v50 = vld [vmem:[%s2644_s11 + $0xed8] sm:$0xff] }
 0x151   : > { %v1161_v61 = vmul.f32 %v2651_v1, %v648_v46  ;;  %v1162_v62 = vmul.f32 %v2651_v1, %v649_v47  ;;  %2181 = vst [vmem:[%s2683_s25 + $0xdf8] sm:$0xff] %v1669_v53  ;;  %v1672_v4 = vadd.f32 %v2653_v2, %v1158_v54  ;;  %v1673_v5 = vadd.f32 %v2653_v2, %v1159_v55  ;;  %v671_v51 = vld [vmem:[%s2644_s11 + $0xee0] sm:$0xff] }
 0x152   : > { %v1674_v6 = vadd.f32 %v2653_v2, %v1160_v56  ;;  %v1163_v7 = vmul.f32 %v2651_v1, %v650_v52  ;;  %2182 = vst [vmem:[%s2683_s25 + $0xe00] sm:$0xff] %v1670_v59  ;;  %2183 = vst [vmem:[%s2683_s25 + $0xe08] sm:$0xff] %v1671_v60  ;;  %v1164_v12 = vmul.f32 %v2651_v1, %v651_v57  ;;  %v672_v56 = vld [vmem:[%s2644_s11 + $0xee8] sm:$0xff]  ;;  %v673_v57 = vld [vmem:[%s2644_s11 + $0xef0] sm:$0xff] }
 0x153   : > { %v1675_v10 = vadd.f32 %v2653_v2, %v1161_v61  ;;  %v1676_v11 = vadd.f32 %v2653_v2, %v1162_v62  ;;  %v1165_v13 = vmul.f32 %v2651_v1, %v652_v58  ;;  %2184 = vst [vmem:[%s2683_s25 + $0xe10] sm:$0xff] %v1672_v4  ;;  %2185 = vst [vmem:[%s2683_s25 + $0xe18] sm:$0xff] %v1673_v5  ;;  %v674_v62 = vld [vmem:[%s2644_s11 + $0xef8] sm:$0xff]  ;;  %v675_v5 = vld [vmem:[%s2644_s11 + $0xf00] sm:$0xff] }
 0x154   : > { %2186 = vst [vmem:[%s2683_s25 + $0xe20] sm:$0xff] %v1674_v6  ;;  %v1677_v15 = vadd.f32 %v2653_v2, %v1163_v7  ;;  %v1166_v16 = vmul.f32 %v2651_v1, %v653_v63  ;;  %v1167_v17 = vmul.f32 %v2651_v1, %v654_v0  ;;  %v1168_v18 = vmul.f32 %v2651_v1, %v655_v3  ;;  %v676_v6 = vld [vmem:[%s2644_s11 + $0xf08] sm:$0xff] }
 0x155   : > { %2187 = vst [vmem:[%s2683_s25 + $0xe28] sm:$0xff] %v1675_v10  ;;  %2188 = vst [vmem:[%s2683_s25 + $0xe30] sm:$0xff] %v1676_v11  ;;  %v1678_v21 = vadd.f32 %v2653_v2, %v1164_v12  ;;  %v1679_v22 = vadd.f32 %v2653_v2, %v1165_v13  ;;  %v1169_v23 = vmul.f32 %v2651_v1, %v656_v8  ;;  %v677_v11 = vld [vmem:[%s2644_s11 + $0xf10] sm:$0xff]  ;;  %v678_v12 = vld [vmem:[%s2644_s11 + $0xf18] sm:$0xff] }
 0x156   : > { %v1170_v24 = vmul.f32 %v2651_v1, %v657_v9  ;;  %2189 = vst [vmem:[%s2683_s25 + $0xe38] sm:$0xff] %v1677_v15  ;;  %v1680_v28 = vadd.f32 %v2653_v2, %v1166_v16  ;;  %v1681_v29 = vadd.f32 %v2653_v2, %v1167_v17  ;;  %v1682_v30 = vadd.f32 %v2653_v2, %v1168_v18  ;;  %v679_v13 = vld [vmem:[%s2644_s11 + $0xf20] sm:$0xff]  ;;  %v680_v18 = vld [vmem:[%s2644_s11 + $0xf28] sm:$0xff] }
 0x157   : > { %v1171_v31 = vmul.f32 %v2651_v1, %v658_v14  ;;  %2190 = vst [vmem:[%s2683_s25 + $0xe40] sm:$0xff] %v1678_v21  ;;  %2191 = vst [vmem:[%s2683_s25 + $0xe48] sm:$0xff] %v1679_v22  ;;  %v1683_v34 = vadd.f32 %v2653_v2, %v1169_v23  ;;  %v1172_v36 = vmul.f32 %v2651_v1, %v659_v19  ;;  %v681_v19 = vld [vmem:[%s2644_s11 + $0xf30] sm:$0xff] }
 0x158   : > { %v1684_v35 = vadd.f32 %v2653_v2, %v1170_v24  ;;  %v1173_v37 = vmul.f32 %v2651_v1, %v660_v20  ;;  %2192 = vst [vmem:[%s2683_s25 + $0xe50] sm:$0xff] %v1680_v28  ;;  %2193 = vst [vmem:[%s2683_s25 + $0xe58] sm:$0xff] %v1681_v29  ;;  %v1174_v40 = vmul.f32 %v2651_v1, %v661_v25  ;;  %v682_v24 = vld [vmem:[%s2644_s11 + $0xf38] sm:$0xff]  ;;  %v683_v29 = vld [vmem:[%s2644_s11 + $0xf40] sm:$0xff] }
 0x159   : > { %2194 = vst [vmem:[%s2683_s25 + $0xe60] sm:$0xff] %v1682_v30  ;;  %v1685_v39 = vadd.f32 %v2653_v2, %v1171_v31  ;;  %v1175_v41 = vmul.f32 %v2651_v1, %v662_v26  ;;  %v1176_v42 = vmul.f32 %v2651_v1, %v663_v27  ;;  %2195 = vst [vmem:[%s2683_s25 + $0xe68] sm:$0xff] %v1683_v34  ;;  %v684_v30 = vld [vmem:[%s2644_s11 + $0xf48] sm:$0xff] }
 0x15a   : > { %2196 = vst [vmem:[%s2683_s25 + $0xe70] sm:$0xff] %v1684_v35  ;;  %v1686_v45 = vadd.f32 %v2653_v2, %v1172_v36  ;;  %v1687_v46 = vadd.f32 %v2653_v2, %v1173_v37  ;;  %v1177_v47 = vmul.f32 %v2651_v1, %v664_v32  ;;  %v1178_v48 = vmul.f32 %v2651_v1, %v665_v33  ;;  %v685_v35 = vld [vmem:[%s2644_s11 + $0xf50] sm:$0xff]  ;;  %v686_v36 = vld [vmem:[%s2644_s11 + $0xf58] sm:$0xff]  ;;  %v687_v37 = vld [vmem:[%s2644_s11 + $0xf60] sm:$0xff] }
 0x15b   : > { %2197 = vst [vmem:[%s2683_s25 + $0xe78] sm:$0xff] %v1685_v39  ;;  %v1688_v52 = vadd.f32 %v2653_v2, %v1174_v40  ;;  %v1689_v53 = vadd.f32 %v2653_v2, %v1175_v41  ;;  %v1690_v54 = vadd.f32 %v2653_v2, %v1176_v42  ;;  %v1179_v55 = vmul.f32 %v2651_v1, %v666_v38  ;;  %v688_v42 = vld [vmem:[%s2644_s11 + $0xf68] sm:$0xff] }
 0x15c   : > { %2198 = vst [vmem:[%s2683_s25 + $0xe80] sm:$0xff] %v1686_v45  ;;  %2199 = vst [vmem:[%s2683_s25 + $0xe88] sm:$0xff] %v1687_v46  ;;  %v1691_v58 = vadd.f32 %v2653_v2, %v1177_v47  ;;  %v1692_v59 = vadd.f32 %v2653_v2, %v1178_v48  ;;  %v1180_v60 = vmul.f32 %v2651_v1, %v667_v43  ;;  %v689_v43 = vld [vmem:[%s2644_s11 + $0xf70] sm:$0xff]  ;;  %v690_v48 = vld [vmem:[%s2644_s11 + $0xf78] sm:$0xff] }
 0x15d   : > { %v1181_v61 = vmul.f32 %v2651_v1, %v668_v44  ;;  %2200 = vst [vmem:[%s2683_s25 + $0xe90] sm:$0xff] %v1688_v52  ;;  %2201 = vst [vmem:[%s2683_s25 + $0xe98] sm:$0xff] %v1689_v53  ;;  %v1693_v63 = vadd.f32 %v2653_v2, %v1179_v55  ;;  %v1182_v0 = vmul.f32 %v2651_v1, %v669_v49  ;;  %v691_v53 = vld [vmem:[%s2644_s11 + $0xf80] sm:$0xff] }
 0x15e   : > { %2202 = vst [vmem:[%s2683_s25 + $0xea0] sm:$0xff] %v1690_v54  ;;  %v1183_v3 = vmul.f32 %v2651_v1, %v670_v50  ;;  %v1184_v4 = vmul.f32 %v2651_v1, %v671_v51  ;;  %2203 = vst [vmem:[%s2683_s25 + $0xea8] sm:$0xff] %v1691_v58  ;;  %v1694_v7 = vadd.f32 %v2653_v2, %v1180_v60  ;;  %v692_v54 = vld [vmem:[%s2644_s11 + $0xf88] sm:$0xff]  ;;  %v694_v60 = vld [vmem:[%s2644_s11 + $0xf98] sm:$0xff] }
 0x15f   : > { %2204 = vst [vmem:[%s2683_s25 + $0xeb0] sm:$0xff] %v1692_v59  ;;  %v1695_v8 = vadd.f32 %v2653_v2, %v1181_v61  ;;  %v1185_v9 = vmul.f32 %v2651_v1, %v672_v56  ;;  %v1186_v10 = vmul.f32 %v2651_v1, %v673_v57  ;;  %2205 = vst [vmem:[%s2683_s25 + $0xeb8] sm:$0xff] %v1693_v63  ;;  %v693_v59 = vld [vmem:[%s2644_s11 + $0xf90] sm:$0xff]  ;;  %v695_v61 = vld [vmem:[%s2644_s11 + $0xfa0] sm:$0xff] }
 0x160   : > { %v1696_v14 = vadd.f32 %v2653_v2, %v1182_v0  ;;  %v1697_v15 = vadd.f32 %v2653_v2, %v1183_v3  ;;  %v1698_v16 = vadd.f32 %v2653_v2, %v1184_v4  ;;  %v1187_v17 = vmul.f32 %v2651_v1, %v674_v62  ;;  %2206 = vst [vmem:[%s2683_s25 + $0xec0] sm:$0xff] %v1694_v7  ;;  %v696_v4 = vld [vmem:[%s2644_s11 + $0xfa8] sm:$0xff] }
 0x161   : > { %2207 = vst [vmem:[%s2683_s25 + $0xec8] sm:$0xff] %v1695_v8  ;;  %v1699_v20 = vadd.f32 %v2653_v2, %v1185_v9  ;;  %v1700_v21 = vadd.f32 %v2653_v2, %v1186_v10  ;;  %v1188_v22 = vmul.f32 %v2651_v1, %v675_v5  ;;  %v1189_v23 = vmul.f32 %v2651_v1, %v676_v6  ;;  %v697_v5 = vld [vmem:[%s2644_s11 + $0xfb0] sm:$0xff]  ;;  %v698_v10 = vld [vmem:[%s2644_s11 + $0xfb8] sm:$0xff] }
 0x162   : > { %2208 = vst [vmem:[%s2683_s25 + $0xed0] sm:$0xff] %v1696_v14  ;;  %2209 = vst [vmem:[%s2683_s25 + $0xed8] sm:$0xff] %v1697_v15  ;;  %v1701_v25 = vadd.f32 %v2653_v2, %v1187_v17  ;;  %v1190_v26 = vmul.f32 %v2651_v1, %v677_v11  ;;  %v1191_v27 = vmul.f32 %v2651_v1, %v678_v12  ;;  %v699_v15 = vld [vmem:[%s2644_s11 + $0xfc0] sm:$0xff] }
 0x163   : > { %2210 = vst [vmem:[%s2683_s25 + $0xee0] sm:$0xff] %v1698_v16  ;;  %v1192_v28 = vmul.f32 %v2651_v1, %v679_v13  ;;  %2211 = vst [vmem:[%s2683_s25 + $0xee8] sm:$0xff] %v1699_v20  ;;  %v1702_v31 = vadd.f32 %v2653_v2, %v1188_v22  ;;  %v1703_v32 = vadd.f32 %v2653_v2, %v1189_v23  ;;  %v700_v16 = vld [vmem:[%s2644_s11 + $0xfc8] sm:$0xff]  ;;  %v702_v22 = vld [vmem:[%s2644_s11 + $0xfd8] sm:$0xff] }
 0x164   : > { %2212 = vst [vmem:[%s2683_s25 + $0xef0] sm:$0xff] %v1700_v21  ;;  %v1193_v33 = vmul.f32 %v2651_v1, %v680_v18  ;;  %v1194_v34 = vmul.f32 %v2651_v1, %v681_v19  ;;  %2213 = vst [vmem:[%s2683_s25 + $0xef8] sm:$0xff] %v1701_v25  ;;  %v1704_v38 = vadd.f32 %v2653_v2, %v1190_v26  ;;  %v701_v21 = vld [vmem:[%s2644_s11 + $0xfd0] sm:$0xff]  ;;  %v703_v23 = vld [vmem:[%s2644_s11 + $0xfe0] sm:$0xff] }
 0x165   : > { %v1705_v39 = vadd.f32 %v2653_v2, %v1191_v27  ;;  %v1706_v40 = vadd.f32 %v2653_v2, %v1192_v28  ;;  %v1195_v41 = vmul.f32 %v2651_v1, %v682_v24  ;;  %2214 = vst [vmem:[%s2683_s25 + $0xf00] sm:$0xff] %v1702_v31  ;;  %2215 = vst [vmem:[%s2683_s25 + $0xf08] sm:$0xff] %v1703_v32  ;;  %v704_v28 = vld [vmem:[%s2644_s11 + $0xfe8] sm:$0xff] }
 0x166   : > { %v1707_v44 = vadd.f32 %v2653_v2, %v1193_v33  ;;  %v1708_v45 = vadd.f32 %v2653_v2, %v1194_v34  ;;  %v1196_v46 = vmul.f32 %v2651_v1, %v683_v29  ;;  %v1197_v47 = vmul.f32 %v2651_v1, %v684_v30  ;;  %2216 = vst [vmem:[%s2683_s25 + $0xf10] sm:$0xff] %v1704_v38  ;;  %v705_v29 = vld [vmem:[%s2644_s11 + $0xff0] sm:$0xff]  ;;  %v706_v34 = vld [vmem:[%s2644_s11 + $0xff8] sm:$0xff] }
 0x167   : > { %2217 = vst [vmem:[%s2683_s25 + $0xf18] sm:$0xff] %v1705_v39  ;;  %2218 = vst [vmem:[%s2683_s25 + $0xf20] sm:$0xff] %v1706_v40  ;;  %v1709_v49 = vadd.f32 %v2653_v2, %v1195_v41  ;;  %v1198_v50 = vmul.f32 %v2651_v1, %v685_v35  ;;  %v1199_v51 = vmul.f32 %v2651_v1, %v686_v36 }
 0x168   : > { %v1200_v52 = vmul.f32 %v2651_v1, %v687_v37  ;;  %2219 = vst [vmem:[%s2683_s25 + $0xf28] sm:$0xff] %v1707_v44  ;;  %2220 = vst [vmem:[%s2683_s25 + $0xf30] sm:$0xff] %v1708_v45  ;;  %v1710_v55 = vadd.f32 %v2653_v2, %v1196_v46  ;;  %v1711_v56 = vadd.f32 %v2653_v2, %v1197_v47 }
 0x169   : > { %v1201_v57 = vmul.f32 %v2651_v1, %v688_v42  ;;  %v1202_v58 = vmul.f32 %v2651_v1, %v689_v43  ;;  %2221 = vst [vmem:[%s2683_s25 + $0xf38] sm:$0xff] %v1709_v49  ;;  %v1712_v62 = vadd.f32 %v2653_v2, %v1198_v50  ;;  %v1713_v63 = vadd.f32 %v2653_v2, %v1199_v51 }
 0x16a   : > { %v1714_v0 = vadd.f32 %v2653_v2, %v1200_v52  ;;  %v1203_v3 = vmul.f32 %v2651_v1, %v690_v48  ;;  %2222 = vst [vmem:[%s2683_s25 + $0xf40] sm:$0xff] %v1710_v55  ;;  %2223 = vst [vmem:[%s2683_s25 + $0xf48] sm:$0xff] %v1711_v56  ;;  %v1204_v8 = vmul.f32 %v2651_v1, %v691_v53 }
 0x16b   : > { %v1715_v6 = vadd.f32 %v2653_v2, %v1201_v57  ;;  %v1716_v7 = vadd.f32 %v2653_v2, %v1202_v58  ;;  %v1205_v9 = vmul.f32 %v2651_v1, %v692_v54  ;;  %2224 = vst [vmem:[%s2683_s25 + $0xf50] sm:$0xff] %v1712_v62  ;;  %2225 = vst [vmem:[%s2683_s25 + $0xf58] sm:$0xff] %v1713_v63 }
 0x16c   : > { %2226 = vst [vmem:[%s2683_s25 + $0xf60] sm:$0xff] %v1714_v0  ;;  %v1717_v11 = vadd.f32 %v2653_v2, %v1203_v3  ;;  %v1206_v12 = vmul.f32 %v2651_v1, %v693_v59  ;;  %v1207_v13 = vmul.f32 %v2651_v1, %v694_v60  ;;  %v1208_v14 = vmul.f32 %v2651_v1, %v695_v61 }
 0x16d   : > { %2227 = vst [vmem:[%s2683_s25 + $0xf68] sm:$0xff] %v1715_v6  ;;  %2228 = vst [vmem:[%s2683_s25 + $0xf70] sm:$0xff] %v1716_v7  ;;  %v1718_v17 = vadd.f32 %v2653_v2, %v1204_v8  ;;  %v1719_v18 = vadd.f32 %v2653_v2, %v1205_v9  ;;  %v1209_v19 = vmul.f32 %v2651_v1, %v696_v4 }
 0x16e   : > { %v1210_v20 = vmul.f32 %v2651_v1, %v697_v5  ;;  %2229 = vst [vmem:[%s2683_s25 + $0xf78] sm:$0xff] %v1717_v11  ;;  %v1720_v24 = vadd.f32 %v2653_v2, %v1206_v12  ;;  %v1721_v25 = vadd.f32 %v2653_v2, %v1207_v13  ;;  %v1722_v26 = vadd.f32 %v2653_v2, %v1208_v14 }
 0x16f   : > { %v1211_v27 = vmul.f32 %v2651_v1, %v698_v10  ;;  %2230 = vst [vmem:[%s2683_s25 + $0xf80] sm:$0xff] %v1718_v17  ;;  %2231 = vst [vmem:[%s2683_s25 + $0xf88] sm:$0xff] %v1719_v18  ;;  %v1723_v30 = vadd.f32 %v2653_v2, %v1209_v19  ;;  %v1212_v32 = vmul.f32 %v2651_v1, %v699_v15 }
 0x170   : > { %v1724_v31 = vadd.f32 %v2653_v2, %v1210_v20  ;;  %v1213_v33 = vmul.f32 %v2651_v1, %v700_v16  ;;  %2232 = vst [vmem:[%s2683_s25 + $0xf90] sm:$0xff] %v1720_v24  ;;  %2233 = vst [vmem:[%s2683_s25 + $0xf98] sm:$0xff] %v1721_v25  ;;  %v1214_v36 = vmul.f32 %v2651_v1, %v701_v21 }
 0x171   : > { %2234 = vst [vmem:[%s2683_s25 + $0xfa0] sm:$0xff] %v1722_v26  ;;  %v1725_v35 = vadd.f32 %v2653_v2, %v1211_v27  ;;  %v1215_v37 = vmul.f32 %v2651_v1, %v702_v22  ;;  %v1216_v38 = vmul.f32 %v2651_v1, %v703_v23  ;;  %2235 = vst [vmem:[%s2683_s25 + $0xfa8] sm:$0xff] %v1723_v30 }
 0x172   : > { %2236 = vst [vmem:[%s2683_s25 + $0xfb0] sm:$0xff] %v1724_v31  ;;  %v1726_v39 = vadd.f32 %v2653_v2, %v1212_v32  ;;  %v1727_v40 = vadd.f32 %v2653_v2, %v1213_v33  ;;  %v1217_v41 = vmul.f32 %v2651_v1, %v704_v28  ;;  %v1218_v42 = vmul.f32 %v2651_v1, %v705_v29 }
 0x173   : > { %2237 = vst [vmem:[%s2683_s25 + $0xfb8] sm:$0xff] %v1725_v35  ;;  %v1728_v43 = vadd.f32 %v2653_v2, %v1214_v36  ;;  %v1729_v44 = vadd.f32 %v2653_v2, %v1215_v37  ;;  %v1730_v45 = vadd.f32 %v2653_v2, %v1216_v38  ;;  %v1219_v46 = vmul.f32 %v2651_v1, %v706_v34 }
 0x174   : > { %2238 = vst [vmem:[%s2683_s25 + $0xfc0] sm:$0xff] %v1726_v39  ;;  %2239 = vst [vmem:[%s2683_s25 + $0xfc8] sm:$0xff] %v1727_v40  ;;  %v1731_v47 = vadd.f32 %v2653_v2, %v1217_v41  ;;  %v1732_v48 = vadd.f32 %v2653_v2, %v1218_v42 }
 0x175   : > { %2240 = vst [vmem:[%s2683_s25 + $0xfd0] sm:$0xff] %v1728_v43  ;;  %2241 = vst [vmem:[%s2683_s25 + $0xfd8] sm:$0xff] %v1729_v44  ;;  %v1733_v1 = vadd.f32 %v2653_v2, %v1219_v46 }
 0x176   : > { %2242 = vst [vmem:[%s2683_s25 + $0xfe0] sm:$0xff] %v1730_v45  ;;  %2243 = vst [vmem:[%s2683_s25 + $0xfe8] sm:$0xff] %v1731_v47 }
 0x177   : > { %2244 = vst [vmem:[%s2683_s25 + $0xff0] sm:$0xff] %v1732_v48  ;;  %2245 = vst [vmem:[%s2683_s25 + $0xff8] sm:$0xff] %v1733_v1 }
 0x178   : > { %2447 = shalt.err (!%p2444_p2)
}
 0x179   : > { %s2448_s24 = scalar_lea.hbm %s4704_s13, 65536  ;;  %s2452_s30 = scalar_lea.hbm %s4760_s3, 131072 }
 0x17a   : > { %p2449_p4 = scmp.ne.s32.totalorder %s4704_s13, %s2448_s24  ;;  %p2453_p9 = scmp.lt.u32.totalorder %s4704_s13, %s4760_s3 }
 0x17b   : > { %p2454_p1 = scmp.lt.u32.totalorder %s2452_s30, %s2448_s24  ;;  %p2456_p6 = scmp.lt.u32.totalorder %s2448_s24, %s4704_s13 }
 0x17c   : > { %p2450_p5 = pnand %p2449_p4, %p4767_p11 }
 0x17d   : > { %p2455_p3 = por %p2454_p1, %p2453_p9 }
 0x17e   : > { %p2451_p7 = pneg %p2450_p5 }
 0x17f   : > { %p2457_p12 = por %p2456_p6, %p2455_p3 }
 0x181   : > { %p2458_p13 = pnand %p2457_p12, %p2451_p7 }
 0x183   : > { %2461 = shalt.err (!%p2458_p13)
}
 0x184   : > { %s2506_s11 = smov 1024   ;;  %s2507_s6 = smov 64  }
 0x185   : > { %2356 = dma.vmem_to_hbm [thread:$0]  (%p4767_p11), %s4706_s10, 65536, %s4704_s13, %s2247_s14, %s2506_s11, %s2506_s11, %s2507_s6  }
 0x186 PF: > { %s2276_s8 = sand.u32 1, %s2488_s16   ;;  %p4768_p8 = scmp.ne.s32.totalorder %s4765_s27, 0 }
 0x187   : > { %p4769_p10 = scmp.ge.s32.totalorder %s2500_s19, 2  ;;  %s2277_s25 = scalar_lea.sflag [#allocation6], %s2276_s8 }
 0x189   : > { %p2363_p0 = pnand %p4769_p10, %p4768_p8 }
 0x18b   : > { %2483 = dma.done.wait (!%p2363_p0), %s2277_s25, 65536  }
 0x18c   : > { %2485 = vsyncadd (!%p2363_p0), %s2277_s25, 4294901760  ;;  %p18_p2 = scmp.ge.s32.totalorder %s2559_s20, 4   ;;  %s4770_s16 = smov %s2492_s17 }
 0x18d   : > { %s4771_s17 = smov %s2496_s18  ;;  %s4772_s18 = smov %s2571_s23 }
 0x18e   : > { %s4773_s19 = smov %s2559_s20  ;;  %20 = sbr.rel (!%p18_p2) target bundleno = 8 (0x8), region = 77 }
 0x195   :  { %2282 = vsyncpa [#allocation5], 1 }
 0x196   :  { %2284 = vsyncpa [#allocation5 + $0x1], 1 }
 0x197   :  { %2285 = vsyncpa [#allocation6], 1 }
 0x198   :  { %2287 = vsyncpa [#allocation6 + $0x1], 1 }

</bundles_post_ra>
